<compile_context>
chip_gen: v7x
topology: tpu7x:2x2x1
jax: 0.10.0
libtpu: 0.0.40
codegen_flags: <defaults>
</compile_context>

<pallas_src>
import functools

import jax
import jax.numpy as jnp
import numpy as np
from jax.experimental import pallas as pl
from jax.experimental.pallas import tpu as pltpu

EPS = 1e-5  # torch.nn.BatchNorm2d default eps
_VMEM = functools.partial(pl.BlockSpec, memory_space=pltpu.MemorySpace.VMEM)


# --------------------------------------------------------------------------------------
# Trace-time weight folding helpers (constants only — the data path is all in-kernel)
# --------------------------------------------------------------------------------------
def _convt_operator(w, H, W, *, out_chw):
    """Dense operator for ConvTranspose2d(k=4, s=2, p=1) from PyTorch weight (Cin,Cout,4,4).

    Rows are NHWC-flat input (iy, ix, ci); columns are NHWC-flat output (oy, ox, co),
    or CHW-flat (co, oy, ox) when out_chw=True (used for the last layer so the kernel
    output is already in PyTorch NCHW order).
    out[oy, ox] = sum_{iy,ix,ky,kx} x[iy, ix] * w[ky, kx]  with  oy = 2*iy - 1 + ky, etc.
    """
    Cin, Cout, KH, KW = w.shape
    OH, OW = 2 * H, 2 * W
    P = (jnp.arange(OH)[None, None, :]
         == 2 * jnp.arange(H)[:, None, None] + jnp.arange(KH)[None, :, None] - 1
         ).astype(jnp.float32)                                    # (H, KH, OH)
    Q = (jnp.arange(OW)[None, None, :]
         == 2 * jnp.arange(W)[:, None, None] + jnp.arange(KW)[None, :, None] - 1
         ).astype(jnp.float32)                                    # (W, KW, OW)
    eq = "yko,xlp,cdkl->yxcdop" if out_chw else "yko,xlp,cdkl->yxcopd"
    M = jnp.einsum(eq, P, Q, w)
    return M.reshape(H * W * Cin, OH * OW * Cout)


def _group_matrices(D, C, *, chw, spatial):
    """0/1 per-channel grouping matrix G (D, C) and its transpose for the BN matmuls."""
    chan = (jnp.arange(D) // spatial) if chw else (jnp.arange(D) % C)
    G = (chan[:, None] == jnp.arange(C)[None, :]).astype(jnp.float32)
    return G, G.T


# --------------------------------------------------------------------------------------
# The single fused kernel: Linear(+bias)+BN+ReLU, then N x (ConvT-as-matmul + BN + act)
# refs = [z, per stage: (W [, bias], G, GT, GB) ..., out]
# --------------------------------------------------------------------------------------
def generator_kernel(*refs, inv_counts, has_bias, batch):
    out_ref = refs[-1]
    x = refs[0][...]
    n_stages = len(inv_counts)
    idx = 1
    for s in range(n_stages):                                     # statically unrolled
        w = refs[idx][...]
        idx += 1
        # layer matmul (lane-dense output width, K = full flattened input)
        y = jnp.dot(x, w, preferred_element_type=jnp.float32)
        if has_bias[s]:                                           # only the Linear stage
            y = y + refs[idx][...]
            idx += 1
        g, gt, gb = refs[idx][...], refs[idx + 1][...], refs[idx + 2][...]
        idx += 3
        # BatchNorm2d (training mode): per-channel stats over (batch, H, W) columns.
        # One grouping matmul yields sums of y and y^2; var = E[y^2] - mean^2; the
        # per-channel scale/shift broadcast is one (2, C) @ (C, D) matmul.
        inv_n = inv_counts[s]
        yy = jnp.concatenate([y, y * y], axis=0)                  # (2B, D)
        stat = jnp.dot(yy, g, preferred_element_type=jnp.float32)  # (2B, C)
        mean = jnp.sum(stat[:batch], axis=0, keepdims=True) * inv_n
        e2 = jnp.sum(stat[batch:], axis=0, keepdims=True) * inv_n
        var = e2 - mean * mean                                    # biased var (torch BN)
        a = gb[0:1, :] * jax.lax.rsqrt(var + EPS)                 # gamma * inv_std
        b = gb[1:2, :] - mean * a                                 # beta - mean * a
        ab = jnp.dot(jnp.concatenate([a, b], axis=0), gt,
                     preferred_element_type=jnp.float32)          # (2, D) column-broadcast
        y = y * ab[0:1, :] + ab[1:2, :]
        x = jnp.tanh(y) if s == n_stages - 1 else jnp.maximum(y, 0.0)
    out_ref[...] = x


# --------------------------------------------------------------------------------------
# Parameter init (deterministic, PyTorch weight layouts) + forward
# --------------------------------------------------------------------------------------
def init_generator_params(key, latent_dim_size=32, img_size=16, img_channels=3,
                          hidden_channels=(8, 16, 32)):
    n_layers = len(hidden_channels)
    assert img_size % 2 ** n_layers == 0, "activation size must double at each layer"
    h0 = w0 = img_size // 2 ** n_layers
    c0 = hidden_channels[-1]
    D = c0 * h0 * w0
    keys = iter(jax.random.split(key, 4 + 4 * n_layers))
    lim = 1.0 / np.sqrt(latent_dim_size)
    params = {
        "lin_w": jax.random.uniform(next(keys), (D, latent_dim_size), jnp.float32, -lim, lim),
        "lin_b": jax.random.uniform(next(keys), (D,), jnp.float32, -lim, lim),
        "bn0_gamma": 1.0 + 0.1 * jax.random.normal(next(keys), (c0,), jnp.float32),
        "bn0_beta": 0.1 * jax.random.normal(next(keys), (c0,), jnp.float32),
        "convs": [],
    }
    chans = list(hidden_channels)
    for i in range(n_layers - 1, -1, -1):
        cin = chans[i]
        cout = chans[i - 1] if i > 0 else img_channels
        lim = 1.0 / np.sqrt(cin * 4 * 4)
        params["convs"].append({
            "w": jax.random.uniform(next(keys), (cin, cout, 4, 4), jnp.float32, -lim, lim),
            "b": jax.random.uniform(next(keys), (cout,), jnp.float32, -lim, lim),
            "gamma": 1.0 + 0.1 * jax.random.normal(next(keys), (cout,), jnp.float32),
            "beta": 0.1 * jax.random.normal(next(keys), (cout,), jnp.float32),
        })
    meta = dict(c0=c0, h0=h0, w0=w0, img_size=img_size, img_channels=img_channels)
    return params, meta


def generator_forward(params, meta, z):
    c0, h0, w0 = meta["c0"], meta["h0"], meta["w0"]
    img_size, img_channels = meta["img_size"], meta["img_channels"]
    B, _ = z.shape
    D0 = c0 * h0 * w0

    # Stage 0: Linear with columns permuted to NHWC-flat order 'b (h w c)' so it feeds
    # the first conv operator directly (no in-kernel reshape/transpose). Its bias varies
    # spatially within a channel, so it is NOT absorbed by the following BatchNorm.
    perm = (jnp.arange(D0) % c0) * (h0 * w0) + (jnp.arange(D0) // c0)
    g0, gt0 = _group_matrices(D0, c0, chw=False, spatial=h0 * w0)
    stages = [dict(W=params["lin_w"].T[:, perm],
                   bias=params["lin_b"][perm].reshape(1, D0),
                   G=g0, GT=gt0,
                   GB=jnp.stack([params["bn0_gamma"], params["bn0_beta"]], axis=0),
                   inv_n=1.0 / float(B * h0 * w0))]

    # Conv-transpose stages: each is one dense trace-time-folded operator matmul.
    # The per-channel conv bias is exactly cancelled by the following training-mode
    # BatchNorm2d (mean subtraction; variance unchanged) so it is dropped from the kernel.
    H = W_sp = h0
    n_conv = len(params["convs"])
    for idx, layer in enumerate(params["convs"]):
        cout = layer["w"].shape[1]
        OH, OW = 2 * H, 2 * W_sp
        last = idx == n_conv - 1
        M = _convt_operator(layer["w"], H, W_sp, out_chw=last)
        g, gt = _group_matrices(OH * OW * cout, cout, chw=last, spatial=OH * OW)
        stages.append(dict(W=M, G=g, GT=gt,
                           GB=jnp.stack([layer["gamma"], layer["beta"]], axis=0),
                           inv_n=1.0 / float(B * OH * OW)))
        H, W_sp = OH, OW

    flat, has_bias = [z], []
    for st in stages:
        flat.append(st["W"])
        hb = "bias" in st
        has_bias.append(hb)
        if hb:
            flat.append(st["bias"])
        flat += [st["G"], st["GT"], st["GB"]]
    inv_counts = tuple(st["inv_n"] for st in stages)

    D_out = img_channels * img_size * img_size          # 768 = 6*128 -> lane-dense store
    out2d = pl.pallas_call(
        functools.partial(generator_kernel, inv_counts=inv_counts,
                          has_bias=tuple(has_bias), batch=B),
        out_shape=jax.ShapeDtypeStruct((B, D_out), jnp.float32),
        in_specs=[_VMEM()] * len(flat),
        out_specs=_VMEM(),
    )(*flat)
    # last stage emitted CHW-flat columns -> NCHW is a free reshape (no transpose)
    return out2d.reshape(B, img_channels, img_size, img_size)


# --------------------------------------------------------------------------------------
# Pure-JAX reference (XLA conv, biases included) for a correctness check
# --------------------------------------------------------------------------------------
def _bn_train_nchw(x, gamma, beta):
    mean = jnp.mean(x, axis=(0, 2, 3), keepdims=True)
    var = jnp.mean((x - mean) ** 2, axis=(0, 2, 3), keepdims=True)
    return (x - mean) * jax.lax.rsqrt(var + EPS) * gamma.reshape(1, -1, 1, 1) \
        + beta.reshape(1, -1, 1, 1)


def generator_reference(params, meta, z):
    c0, h0, w0 = meta["c0"], meta["h0"], meta["w0"]
    B = z.shape[0]
    y = jnp.dot(z, params["lin_w"].T, precision=jax.lax.Precision.HIGHEST) + params["lin_b"]
    x = y.reshape(B, c0, h0, w0)
    x = jnp.maximum(_bn_train_nchw(x, params["bn0_gamma"], params["bn0_beta"]), 0.0)
    n = len(params["convs"])
    for idx, layer in enumerate(params["convs"]):
        k = jnp.transpose(layer["w"][:, :, ::-1, ::-1], (1, 0, 2, 3))   # OIHW, flipped
        x = jax.lax.conv_general_dilated(
            x, k, window_strides=(1, 1), padding=((2, 2), (2, 2)), lhs_dilation=(2, 2),
            dimension_numbers=("NCHW", "OIHW", "NCHW"), precision=jax.lax.Precision.HIGHEST)
        x = x + layer["b"].reshape(1, -1, 1, 1)
        x = _bn_train_nchw(x, layer["gamma"], layer["beta"])
        if idx == n - 1:
            # the module's custom Tanh: (exp(x) - exp(-x)) / (exp(x) + exp(-x))
            x = (jnp.exp(x) - jnp.exp(-x)) / (jnp.exp(x) + jnp.exp(-x))
        else:
            x = jnp.maximum(x, 0.0)
    return x


if __name__ == "__main__":
    key = jax.random.PRNGKey(0)
    pkey, zkey = jax.random.split(key)
    params, meta = init_generator_params(pkey, latent_dim_size=32, img_size=16,
                                         img_channels=3, hidden_channels=(8, 16, 32))
    z = jax.random.normal(zkey, (2, 32), jnp.float32)

    out = generator_forward(params, meta, z)
    out = jax.block_until_ready(out)
    assert out.shape == (2, 3, 16, 16), out.shape

    ref = generator_reference(params, meta, z)
    np.testing.assert_allclose(np.asarray(out), np.asarray(ref), atol=2e-2, rtol=2e-2)
    print("KERNEL_OK")
</pallas_src>

<mosaic_0001>
module attributes {stable_mosaic.version = 11 : i64} {
  func.func @generator_kernel(%arg0: memref<2x32xf32, #tpu.memory_space<vmem>>, %arg1: memref<32x128xf32, #tpu.memory_space<vmem>>, %arg2: memref<1x128xf32, #tpu.memory_space<vmem>>, %arg3: memref<128x32xf32, #tpu.memory_space<vmem>>, %arg4: memref<32x128xf32, #tpu.memory_space<vmem>>, %arg5: memref<2x32xf32, #tpu.memory_space<vmem>>, %arg6: memref<128x256xf32, #tpu.memory_space<vmem>>, %arg7: memref<256x16xf32, #tpu.memory_space<vmem>>, %arg8: memref<16x256xf32, #tpu.memory_space<vmem>>, %arg9: memref<2x16xf32, #tpu.memory_space<vmem>>, %arg10: memref<256x512xf32, #tpu.memory_space<vmem>>, %arg11: memref<512x8xf32, #tpu.memory_space<vmem>>, %arg12: memref<8x512xf32, #tpu.memory_space<vmem>>, %arg13: memref<2x8xf32, #tpu.memory_space<vmem>>, %arg14: memref<512x768xf32, #tpu.memory_space<vmem>>, %arg15: memref<768x3xf32, #tpu.memory_space<vmem>>, %arg16: memref<3x768xf32, #tpu.memory_space<vmem>>, %arg17: memref<2x3xf32, #tpu.memory_space<vmem>>, %arg18: memref<2x768xf32, #tpu.memory_space<vmem>>) attributes {dimension_semantics = [], scalar_prefetch = 0 : i64, scratch_operands = 0 : i64, tpu.core_type = #tpu.core_type<tc>} {
    %c0 = arith.constant 0 : index
    %c0_0 = arith.constant 0 : index
    %0 = vector.load %arg0[%c0, %c0_0] : memref<2x32xf32, #tpu.memory_space<vmem>>, vector<2x32xf32>
    %c0_1 = arith.constant 0 : index
    %c0_2 = arith.constant 0 : index
    %1 = vector.load %arg1[%c0_1, %c0_2] : memref<32x128xf32, #tpu.memory_space<vmem>>, vector<32x128xf32>
    %cst = arith.constant dense<0.000000e+00> : vector<2x128xf32>
    %2 = tpu.matmul %0, %1, %cst {dimension_numbers = #tpu.dot_dimension_numbers<[1], [0], [0], [1], [0, 0, 1, 1], [], []>} : vector<2x32xf32>, vector<32x128xf32>, vector<2x128xf32> -> vector<2x128xf32>
    %c0_3 = arith.constant 0 : index
    %c0_4 = arith.constant 0 : index
    %3 = vector.load %arg2[%c0_3, %c0_4] : memref<1x128xf32, #tpu.memory_space<vmem>>, vector<1x128xf32>
    %4 = vector.broadcast %3 : vector<1x128xf32> to vector<2x128xf32>
    %5 = arith.addf %2, %4 : vector<2x128xf32>
    %c0_5 = arith.constant 0 : index
    %c0_6 = arith.constant 0 : index
    %6 = vector.load %arg3[%c0_5, %c0_6] : memref<128x32xf32, #tpu.memory_space<vmem>>, vector<128x32xf32>
    %c0_7 = arith.constant 0 : index
    %c0_8 = arith.constant 0 : index
    %7 = vector.load %arg4[%c0_7, %c0_8] : memref<32x128xf32, #tpu.memory_space<vmem>>, vector<32x128xf32>
    %c0_9 = arith.constant 0 : index
    %c0_10 = arith.constant 0 : index
    %8 = vector.load %arg5[%c0_9, %c0_10] : memref<2x32xf32, #tpu.memory_space<vmem>>, vector<2x32xf32>
    %9 = arith.mulf %5, %5 : vector<2x128xf32>
    %10 = tpu.concatenate %5, %9 in 0 : vector<2x128xf32>, vector<2x128xf32> -> vector<4x128xf32>
    %cst_11 = arith.constant dense<0.000000e+00> : vector<4x32xf32>
    %11 = tpu.matmul %10, %6, %cst_11 {dimension_numbers = #tpu.dot_dimension_numbers<[1], [0], [0], [1], [0, 0, 1, 1], [], []>} : vector<4x128xf32>, vector<128x32xf32>, vector<4x32xf32> -> vector<4x32xf32>
    %12 = vector.extract_strided_slice %11 {offsets = [0, 0], sizes = [2, 32], strides = [1, 1]} : vector<4x32xf32> to vector<2x32xf32>
    %cst_12 = arith.constant dense<0.000000e+00> : vector<32xf32>
    %13 = vector.multi_reduction <add>, %12, %cst_12 [0] : vector<2x32xf32> to vector<32xf32>
    %14 = vector.shape_cast %13 : vector<32xf32> to vector<1x32xf32>
    %cst_13 = arith.constant 1.250000e-01 : f32
    %15 = vector.broadcast %cst_13 : f32 to vector<1x32xf32>
    %16 = arith.mulf %14, %15 : vector<1x32xf32>
    %17 = vector.extract_strided_slice %11 {offsets = [2, 0], sizes = [2, 32], strides = [1, 1]} : vector<4x32xf32> to vector<2x32xf32>
    %cst_14 = arith.constant dense<0.000000e+00> : vector<32xf32>
    %18 = vector.multi_reduction <add>, %17, %cst_14 [0] : vector<2x32xf32> to vector<32xf32>
    %19 = vector.shape_cast %18 : vector<32xf32> to vector<1x32xf32>
    %cst_15 = arith.constant 1.250000e-01 : f32
    %20 = vector.broadcast %cst_15 : f32 to vector<1x32xf32>
    %21 = arith.mulf %19, %20 : vector<1x32xf32>
    %22 = arith.mulf %16, %16 : vector<1x32xf32>
    %23 = arith.subf %21, %22 : vector<1x32xf32>
    %24 = vector.extract_strided_slice %8 {offsets = [0, 0], sizes = [1, 32], strides = [1, 1]} : vector<2x32xf32> to vector<1x32xf32>
    %cst_16 = arith.constant 9.99999974E-6 : f32
    %25 = vector.broadcast %cst_16 : f32 to vector<1x32xf32>
    %26 = arith.addf %23, %25 : vector<1x32xf32>
    %27 = math.rsqrt %26 : vector<1x32xf32>
    %28 = arith.mulf %24, %27 : vector<1x32xf32>
    %29 = vector.extract_strided_slice %8 {offsets = [1, 0], sizes = [1, 32], strides = [1, 1]} : vector<2x32xf32> to vector<1x32xf32>
    %30 = arith.mulf %16, %28 : vector<1x32xf32>
    %31 = arith.subf %29, %30 : vector<1x32xf32>
    %32 = tpu.concatenate %28, %31 in 0 : vector<1x32xf32>, vector<1x32xf32> -> vector<2x32xf32>
    %cst_17 = arith.constant dense<0.000000e+00> : vector<2x128xf32>
    %33 = tpu.matmul %32, %7, %cst_17 {dimension_numbers = #tpu.dot_dimension_numbers<[1], [0], [0], [1], [0, 0, 1, 1], [], []>} : vector<2x32xf32>, vector<32x128xf32>, vector<2x128xf32> -> vector<2x128xf32>
    %34 = vector.extract_strided_slice %33 {offsets = [0, 0], sizes = [1, 128], strides = [1, 1]} : vector<2x128xf32> to vector<1x128xf32>
    %35 = vector.broadcast %34 : vector<1x128xf32> to vector<2x128xf32>
    %36 = arith.mulf %5, %35 : vector<2x128xf32>
    %37 = vector.extract_strided_slice %33 {offsets = [1, 0], sizes = [1, 128], strides = [1, 1]} : vector<2x128xf32> to vector<1x128xf32>
    %38 = vector.broadcast %37 : vector<1x128xf32> to vector<2x128xf32>
    %39 = arith.addf %36, %38 : vector<2x128xf32>
    %cst_18 = arith.constant 0.000000e+00 : f32
    %40 = vector.broadcast %cst_18 : f32 to vector<2x128xf32>
    %41 = arith.maximumf %39, %40 : vector<2x128xf32>
    %c0_19 = arith.constant 0 : index
    %c0_20 = arith.constant 0 : index
    %42 = vector.load %arg6[%c0_19, %c0_20] : memref<128x256xf32, #tpu.memory_space<vmem>>, vector<128x256xf32>
    %cst_21 = arith.constant dense<0.000000e+00> : vector<2x256xf32>
    %43 = tpu.matmul %41, %42, %cst_21 {dimension_numbers = #tpu.dot_dimension_numbers<[1], [0], [0], [1], [0, 0, 1, 1], [], []>} : vector<2x128xf32>, vector<128x256xf32>, vector<2x256xf32> -> vector<2x256xf32>
    %c0_22 = arith.constant 0 : index
    %c0_23 = arith.constant 0 : index
    %44 = vector.load %arg7[%c0_22, %c0_23] : memref<256x16xf32, #tpu.memory_space<vmem>>, vector<256x16xf32>
    %c0_24 = arith.constant 0 : index
    %c0_25 = arith.constant 0 : index
    %45 = vector.load %arg8[%c0_24, %c0_25] : memref<16x256xf32, #tpu.memory_space<vmem>>, vector<16x256xf32>
    %c0_26 = arith.constant 0 : index
    %c0_27 = arith.constant 0 : index
    %46 = vector.load %arg9[%c0_26, %c0_27] : memref<2x16xf32, #tpu.memory_space<vmem>>, vector<2x16xf32>
    %47 = arith.mulf %43, %43 : vector<2x256xf32>
    %48 = tpu.concatenate %43, %47 in 0 : vector<2x256xf32>, vector<2x256xf32> -> vector<4x256xf32>
    %cst_28 = arith.constant dense<0.000000e+00> : vector<4x16xf32>
    %49 = tpu.matmul %48, %44, %cst_28 {dimension_numbers = #tpu.dot_dimension_numbers<[1], [0], [0], [1], [0, 0, 1, 1], [], []>} : vector<4x256xf32>, vector<256x16xf32>, vector<4x16xf32> -> vector<4x16xf32>
    %50 = vector.extract_strided_slice %49 {offsets = [0, 0], sizes = [2, 16], strides = [1, 1]} : vector<4x16xf32> to vector<2x16xf32>
    %cst_29 = arith.constant dense<0.000000e+00> : vector<16xf32>
    %51 = vector.multi_reduction <add>, %50, %cst_29 [0] : vector<2x16xf32> to vector<16xf32>
    %52 = vector.shape_cast %51 : vector<16xf32> to vector<1x16xf32>
    %cst_30 = arith.constant 3.125000e-02 : f32
    %53 = vector.broadcast %cst_30 : f32 to vector<1x16xf32>
    %54 = arith.mulf %52, %53 : vector<1x16xf32>
    %55 = vector.extract_strided_slice %49 {offsets = [2, 0], sizes = [2, 16], strides = [1, 1]} : vector<4x16xf32> to vector<2x16xf32>
    %cst_31 = arith.constant dense<0.000000e+00> : vector<16xf32>
    %56 = vector.multi_reduction <add>, %55, %cst_31 [0] : vector<2x16xf32> to vector<16xf32>
    %57 = vector.shape_cast %56 : vector<16xf32> to vector<1x16xf32>
    %cst_32 = arith.constant 3.125000e-02 : f32
    %58 = vector.broadcast %cst_32 : f32 to vector<1x16xf32>
    %59 = arith.mulf %57, %58 : vector<1x16xf32>
    %60 = arith.mulf %54, %54 : vector<1x16xf32>
    %61 = arith.subf %59, %60 : vector<1x16xf32>
    %62 = vector.extract_strided_slice %46 {offsets = [0, 0], sizes = [1, 16], strides = [1, 1]} : vector<2x16xf32> to vector<1x16xf32>
    %cst_33 = arith.constant 9.99999974E-6 : f32
    %63 = vector.broadcast %cst_33 : f32 to vector<1x16xf32>
    %64 = arith.addf %61, %63 : vector<1x16xf32>
    %65 = math.rsqrt %64 : vector<1x16xf32>
    %66 = arith.mulf %62, %65 : vector<1x16xf32>
    %67 = vector.extract_strided_slice %46 {offsets = [1, 0], sizes = [1, 16], strides = [1, 1]} : vector<2x16xf32> to vector<1x16xf32>
    %68 = arith.mulf %54, %66 : vector<1x16xf32>
    %69 = arith.subf %67, %68 : vector<1x16xf32>
    %70 = tpu.concatenate %66, %69 in 0 : vector<1x16xf32>, vector<1x16xf32> -> vector<2x16xf32>
    %cst_34 = arith.constant dense<0.000000e+00> : vector<2x256xf32>
    %71 = tpu.matmul %70, %45, %cst_34 {dimension_numbers = #tpu.dot_dimension_numbers<[1], [0], [0], [1], [0, 0, 1, 1], [], []>} : vector<2x16xf32>, vector<16x256xf32>, vector<2x256xf32> -> vector<2x256xf32>
    %72 = vector.extract_strided_slice %71 {offsets = [0, 0], sizes = [1, 256], strides = [1, 1]} : vector<2x256xf32> to vector<1x256xf32>
    %73 = vector.broadcast %72 : vector<1x256xf32> to vector<2x256xf32>
    %74 = arith.mulf %43, %73 : vector<2x256xf32>
    %75 = vector.extract_strided_slice %71 {offsets = [1, 0], sizes = [1, 256], strides = [1, 1]} : vector<2x256xf32> to vector<1x256xf32>
    %76 = vector.broadcast %75 : vector<1x256xf32> to vector<2x256xf32>
    %77 = arith.addf %74, %76 : vector<2x256xf32>
    %cst_35 = arith.constant 0.000000e+00 : f32
    %78 = vector.broadcast %cst_35 : f32 to vector<2x256xf32>
    %79 = arith.maximumf %77, %78 : vector<2x256xf32>
    %c0_36 = arith.constant 0 : index
    %c0_37 = arith.constant 0 : index
    %80 = vector.load %arg10[%c0_36, %c0_37] : memref<256x512xf32, #tpu.memory_space<vmem>>, vector<256x512xf32>
    %cst_38 = arith.constant dense<0.000000e+00> : vector<2x512xf32>
    %81 = tpu.matmul %79, %80, %cst_38 {dimension_numbers = #tpu.dot_dimension_numbers<[1], [0], [0], [1], [0, 0, 1, 1], [], []>} : vector<2x256xf32>, vector<256x512xf32>, vector<2x512xf32> -> vector<2x512xf32>
    %c0_39 = arith.constant 0 : index
    %c0_40 = arith.constant 0 : index
    %82 = vector.load %arg11[%c0_39, %c0_40] : memref<512x8xf32, #tpu.memory_space<vmem>>, vector<512x8xf32>
    %c0_41 = arith.constant 0 : index
    %c0_42 = arith.constant 0 : index
    %83 = vector.load %arg12[%c0_41, %c0_42] : memref<8x512xf32, #tpu.memory_space<vmem>>, vector<8x512xf32>
    %c0_43 = arith.constant 0 : index
    %c0_44 = arith.constant 0 : index
    %84 = vector.load %arg13[%c0_43, %c0_44] : memref<2x8xf32, #tpu.memory_space<vmem>>, vector<2x8xf32>
    %85 = arith.mulf %81, %81 : vector<2x512xf32>
    %86 = tpu.concatenate %81, %85 in 0 : vector<2x512xf32>, vector<2x512xf32> -> vector<4x512xf32>
    %cst_45 = arith.constant dense<0.000000e+00> : vector<4x8xf32>
    %87 = tpu.matmul %86, %82, %cst_45 {dimension_numbers = #tpu.dot_dimension_numbers<[1], [0], [0], [1], [0, 0, 1, 1], [], []>} : vector<4x512xf32>, vector<512x8xf32>, vector<4x8xf32> -> vector<4x8xf32>
    %88 = vector.extract_strided_slice %87 {offsets = [0, 0], sizes = [2, 8], strides = [1, 1]} : vector<4x8xf32> to vector<2x8xf32>
    %cst_46 = arith.constant dense<0.000000e+00> : vector<8xf32>
    %89 = vector.multi_reduction <add>, %88, %cst_46 [0] : vector<2x8xf32> to vector<8xf32>
    %90 = vector.shape_cast %89 : vector<8xf32> to vector<1x8xf32>
    %cst_47 = arith.constant 7.812500e-03 : f32
    %91 = vector.broadcast %cst_47 : f32 to vector<1x8xf32>
    %92 = arith.mulf %90, %91 : vector<1x8xf32>
    %93 = vector.extract_strided_slice %87 {offsets = [2, 0], sizes = [2, 8], strides = [1, 1]} : vector<4x8xf32> to vector<2x8xf32>
    %cst_48 = arith.constant dense<0.000000e+00> : vector<8xf32>
    %94 = vector.multi_reduction <add>, %93, %cst_48 [0] : vector<2x8xf32> to vector<8xf32>
    %95 = vector.shape_cast %94 : vector<8xf32> to vector<1x8xf32>
    %cst_49 = arith.constant 7.812500e-03 : f32
    %96 = vector.broadcast %cst_49 : f32 to vector<1x8xf32>
    %97 = arith.mulf %95, %96 : vector<1x8xf32>
    %98 = arith.mulf %92, %92 : vector<1x8xf32>
    %99 = arith.subf %97, %98 : vector<1x8xf32>
    %100 = vector.extract_strided_slice %84 {offsets = [0, 0], sizes = [1, 8], strides = [1, 1]} : vector<2x8xf32> to vector<1x8xf32>
    %cst_50 = arith.constant 9.99999974E-6 : f32
    %101 = vector.broadcast %cst_50 : f32 to vector<1x8xf32>
    %102 = arith.addf %99, %101 : vector<1x8xf32>
    %103 = math.rsqrt %102 : vector<1x8xf32>
    %104 = arith.mulf %100, %103 : vector<1x8xf32>
    %105 = vector.extract_strided_slice %84 {offsets = [1, 0], sizes = [1, 8], strides = [1, 1]} : vector<2x8xf32> to vector<1x8xf32>
    %106 = arith.mulf %92, %104 : vector<1x8xf32>
    %107 = arith.subf %105, %106 : vector<1x8xf32>
    %108 = tpu.concatenate %104, %107 in 0 : vector<1x8xf32>, vector<1x8xf32> -> vector<2x8xf32>
    %cst_51 = arith.constant dense<0.000000e+00> : vector<2x512xf32>
    %109 = tpu.matmul %108, %83, %cst_51 {dimension_numbers = #tpu.dot_dimension_numbers<[1], [0], [0], [1], [0, 0, 1, 1], [], []>} : vector<2x8xf32>, vector<8x512xf32>, vector<2x512xf32> -> vector<2x512xf32>
    %110 = vector.extract_strided_slice %109 {offsets = [0, 0], sizes = [1, 512], strides = [1, 1]} : vector<2x512xf32> to vector<1x512xf32>
    %111 = vector.broadcast %110 : vector<1x512xf32> to vector<2x512xf32>
    %112 = arith.mulf %81, %111 : vector<2x512xf32>
    %113 = vector.extract_strided_slice %109 {offsets = [1, 0], sizes = [1, 512], strides = [1, 1]} : vector<2x512xf32> to vector<1x512xf32>
    %114 = vector.broadcast %113 : vector<1x512xf32> to vector<2x512xf32>
    %115 = arith.addf %112, %114 : vector<2x512xf32>
    %cst_52 = arith.constant 0.000000e+00 : f32
    %116 = vector.broadcast %cst_52 : f32 to vector<2x512xf32>
    %117 = arith.maximumf %115, %116 : vector<2x512xf32>
    %c0_53 = arith.constant 0 : index
    %c0_54 = arith.constant 0 : index
    %118 = vector.load %arg14[%c0_53, %c0_54] : memref<512x768xf32, #tpu.memory_space<vmem>>, vector<512x768xf32>
    %cst_55 = arith.constant dense<0.000000e+00> : vector<2x768xf32>
    %119 = tpu.matmul %117, %118, %cst_55 {dimension_numbers = #tpu.dot_dimension_numbers<[1], [0], [0], [1], [0, 0, 1, 1], [], []>} : vector<2x512xf32>, vector<512x768xf32>, vector<2x768xf32> -> vector<2x768xf32>
    %c0_56 = arith.constant 0 : index
    %c0_57 = arith.constant 0 : index
    %120 = vector.load %arg15[%c0_56, %c0_57] : memref<768x3xf32, #tpu.memory_space<vmem>>, vector<768x3xf32>
    %c0_58 = arith.constant 0 : index
    %c0_59 = arith.constant 0 : index
    %121 = vector.load %arg16[%c0_58, %c0_59] : memref<3x768xf32, #tpu.memory_space<vmem>>, vector<3x768xf32>
    %c0_60 = arith.constant 0 : index
    %c0_61 = arith.constant 0 : index
    %122 = vector.load %arg17[%c0_60, %c0_61] : memref<2x3xf32, #tpu.memory_space<vmem>>, vector<2x3xf32>
    %123 = arith.mulf %119, %119 : vector<2x768xf32>
    %124 = tpu.concatenate %119, %123 in 0 : vector<2x768xf32>, vector<2x768xf32> -> vector<4x768xf32>
    %cst_62 = arith.constant dense<0.000000e+00> : vector<4x3xf32>
    %125 = tpu.matmul %124, %120, %cst_62 {dimension_numbers = #tpu.dot_dimension_numbers<[1], [0], [0], [1], [0, 0, 1, 1], [], []>} : vector<4x768xf32>, vector<768x3xf32>, vector<4x3xf32> -> vector<4x3xf32>
    %126 = vector.extract_strided_slice %125 {offsets = [0, 0], sizes = [2, 3], strides = [1, 1]} : vector<4x3xf32> to vector<2x3xf32>
    %cst_63 = arith.constant dense<0.000000e+00> : vector<3xf32>
    %127 = vector.multi_reduction <add>, %126, %cst_63 [0] : vector<2x3xf32> to vector<3xf32>
    %128 = vector.shape_cast %127 : vector<3xf32> to vector<1x3xf32>
    %cst_64 = arith.constant 0.001953125 : f32
    %129 = vector.broadcast %cst_64 : f32 to vector<1x3xf32>
    %130 = arith.mulf %128, %129 : vector<1x3xf32>
    %131 = vector.extract_strided_slice %125 {offsets = [2, 0], sizes = [2, 3], strides = [1, 1]} : vector<4x3xf32> to vector<2x3xf32>
    %cst_65 = arith.constant dense<0.000000e+00> : vector<3xf32>
    %132 = vector.multi_reduction <add>, %131, %cst_65 [0] : vector<2x3xf32> to vector<3xf32>
    %133 = vector.shape_cast %132 : vector<3xf32> to vector<1x3xf32>
    %cst_66 = arith.constant 0.001953125 : f32
    %134 = vector.broadcast %cst_66 : f32 to vector<1x3xf32>
    %135 = arith.mulf %133, %134 : vector<1x3xf32>
    %136 = arith.mulf %130, %130 : vector<1x3xf32>
    %137 = arith.subf %135, %136 : vector<1x3xf32>
    %138 = vector.extract_strided_slice %122 {offsets = [0, 0], sizes = [1, 3], strides = [1, 1]} : vector<2x3xf32> to vector<1x3xf32>
    %cst_67 = arith.constant 9.99999974E-6 : f32
    %139 = vector.broadcast %cst_67 : f32 to vector<1x3xf32>
    %140 = arith.addf %137, %139 : vector<1x3xf32>
    %141 = math.rsqrt %140 : vector<1x3xf32>
    %142 = arith.mulf %138, %141 : vector<1x3xf32>
    %143 = vector.extract_strided_slice %122 {offsets = [1, 0], sizes = [1, 3], strides = [1, 1]} : vector<2x3xf32> to vector<1x3xf32>
    %144 = arith.mulf %130, %142 : vector<1x3xf32>
    %145 = arith.subf %143, %144 : vector<1x3xf32>
    %146 = tpu.concatenate %142, %145 in 0 : vector<1x3xf32>, vector<1x3xf32> -> vector<2x3xf32>
    %cst_68 = arith.constant dense<0.000000e+00> : vector<2x768xf32>
    %147 = tpu.matmul %146, %121, %cst_68 {dimension_numbers = #tpu.dot_dimension_numbers<[1], [0], [0], [1], [0, 0, 1, 1], [], []>} : vector<2x3xf32>, vector<3x768xf32>, vector<2x768xf32> -> vector<2x768xf32>
    %148 = vector.extract_strided_slice %147 {offsets = [0, 0], sizes = [1, 768], strides = [1, 1]} : vector<2x768xf32> to vector<1x768xf32>
    %149 = vector.broadcast %148 : vector<1x768xf32> to vector<2x768xf32>
    %150 = arith.mulf %119, %149 : vector<2x768xf32>
    %151 = vector.extract_strided_slice %147 {offsets = [1, 0], sizes = [1, 768], strides = [1, 1]} : vector<2x768xf32> to vector<1x768xf32>
    %152 = vector.broadcast %151 : vector<1x768xf32> to vector<2x768xf32>
    %153 = arith.addf %150, %152 : vector<2x768xf32>
    %154 = math.tanh %153 : vector<2x768xf32>
    %c0_69 = arith.constant 0 : index
    %c0_70 = arith.constant 0 : index
    %155 = vector.load %arg18[%c0_69, %c0_70] : memref<2x768xf32, #tpu.memory_space<vmem>>, vector<2x768xf32>
    tpu.vector_store %arg18[%c0_69, %c0_70], %154 {strides = array<i32>} : memref<2x768xf32, #tpu.memory_space<vmem>>, vector<2x768xf32>,
    return
  }
}

</mosaic_0001>

<bundles_post_ra>
// kernel: tpu_custom_call.1
= control target key start
LH: loop header
LB: loop body
LE: loop exit
PB: predicated region body
PF: predicated region fallthrough
CT: control target
= control target key end

     0   :  { %s5758_s0 = inlined_call_operand.hbm [shape: f32[2,32], index: 0, kind: input, shape index: {}]   ;;  %s5759_s1 = inlined_call_operand.hbm [shape: f32[32,128], index: 1, kind: input, shape index: {}]   ;;  %s5760_s2 = inlined_call_operand.hbm [shape: f32[1,128], index: 2, kind: input, shape index: {}]   ;;  %s5761_s3 = inlined_call_operand.vmem [shape: f32[128,32], index: 3, kind: input, shape index: {}]   ;;  %s5762_s4 = inlined_call_operand.hbm [shape: f32[32,128], index: 4, kind: input, shape index: {}]   ;;  %s5763_s5 = inlined_call_operand.hbm [shape: f32[2,32], index: 5, kind: input, shape index: {}]   ;;  %s5764_s6 = inlined_call_operand.hbm [shape: f32[128,256], index: 6, kind: input, shape index: {}]   ;;  %s5765_s7 = inlined_call_operand.vmem [shape: f32[256,16], index: 7, kind: input, shape index: {}]   ;;  %s5766_s8 = inlined_call_operand.hbm [shape: f32[16,256], index: 8, kind: input, shape index: {}]   ;;  %s5767_s9 = inlined_call_operand.hbm [shape: f32[2,16], index: 9, kind: input, shape index: {}]   ;;  %s5768_s10 = inlined_call_operand.hbm [shape: f32[256,512], index: 10, kind: input, shape index: {}]   ;;  %s5769_s11 = inlined_call_operand.vmem [shape: f32[512,8], index: 11, kind: input, shape index: {}]   ;;  %s5770_s12 = inlined_call_operand.hbm [shape: f32[8,512], index: 12, kind: input, shape index: {}]   ;;  %s5771_s13 = inlined_call_operand.hbm [shape: f32[2,8], index: 13, kind: input, shape index: {}]   ;;  %s5772_s14 = inlined_call_operand.hbm [shape: f32[512,768], index: 14, kind: input, shape index: {}]   ;;  %s5773_s15 = inlined_call_operand.vmem [shape: f32[768,3], index: 15, kind: input, shape index: {}]   ;;  %s5774_s16 = inlined_call_operand.hbm [shape: f32[3,768], index: 16, kind: input, shape index: {}]   ;;  %s5775_s17 = inlined_call_operand.hbm [shape: f32[2,3], index: 17, kind: input, shape index: {}]   ;;  %s5776_s18 = inlined_call_operand.hbm [shape: f32[2,768], index: 18, kind: output, shape index: {}]  }
   0x1   :  { %5782 = sst [smem:[#allocation35_spill]] %s5758_s0 }
   0x2   :  { %5783 = sst [smem:[#allocation36_spill]] %s5759_s1 }
   0x3   :  { %5784 = sst [smem:[#allocation37_spill]] %s5760_s2 }
   0x4   :  { %5785 = sst [smem:[#allocation38_spill]] %s5773_s15 }
   0x5   :  { %5786 = sst [smem:[#allocation39_spill]] %s5776_s18 }
   0x6   :  { %23 = vsyncpa [#allocation3], 0 }
   0x7   :  { %24 = vsyncpa [#allocation6], 0 }
   0x8   :  { %25 = vsyncpa [#allocation9], 0 }
   0x9   :  { %26 = vsyncpa [#allocation12], 0 }
   0xa   :  { %27 = vsyncpa [#allocation15], 0 }
   0xb   :  { %28 = vsyncpa [#allocation18], 0 }
   0xc   :  { %29 = vsyncpa [#allocation21], 0 }
   0xd   :  { %30 = vsyncpa [#allocation24], 0 }
   0xe   :  { %31 = vsyncpa [#allocation4], 0  ;;  %s4631_s27 = smov [#allocation5]   ;;  %s5787_s0 = sld [smem:[#allocation36_spill]] }
   0xf   :  { %s47_s28 = sshll.u32 %s4631_s27, 4  ;;  %s48_s28 = int_to_ptr.vmem [resolvable:$true] %s47_s28 }
  0x14   :  { %s4283_s19 = scalar_lea.hbm %s5787_s0, 512 }
  0x15   :  { %p4284_p0 = scmp.ne.s32.totalorder %s5787_s0, %s4283_s19  ;;  %p4287_p1 = scmp.lt.u32.totalorder %s4283_s19, %s5787_s0 }
  0x17   :  { %p4289_p2 = pnand %p4287_p1, %p4284_p0 }
  0x19   :  { %4292 = shalt.err (!%p4289_p2)
}
  0x1a   :  { %s4293_s2 = scalar_lea.vmem %s48_s28, 512  ;;  %p4298_p4 = scmp.lt.s32.totalorder %s48_s28, %s48_s28 }
  0x1b   :  { %p4294_p3 = scmp.ne.s32.totalorder %s48_s28, %s4293_s2  ;;  %p4299_p5 = scmp.lt.s32.totalorder %s4293_s2, %s4293_s2 }
  0x1d   :  { %p4300_p6 = por %p4299_p5, %p4298_p4 }
  0x1f   :  { %p4301_p7 = pnand %p4300_p6, %p4294_p3 }
  0x21   :  { %4304 = shalt.err (!%p4301_p7)
}
  0x22   :  { %s4632_s23 = smov 128   ;;  %s4633_s24 = smov 8  }
  0x23   :  { %53 = dma.hbm_to_vmem [thread:$0]  %s5787_s0, 512, %s48_s28, [#allocation6], %s4632_s23, %s4632_s23, %s4633_s24  }
  0x24   :  { %s4634_s27 = smov [#allocation8]   ;;  %s4635_s30 = smov [#allocation11]  }
  0x25   :  { %s71_s29 = sshll.u32 %s4634_s27, 4  ;;  %s93_s19 = sshll.u32 %s4635_s30, 4  ;;  %s72_s29 = int_to_ptr.vmem [resolvable:$true] %s71_s29  ;;  %s94_s19 = int_to_ptr.vmem [resolvable:$true] %s93_s19 }
  0x26   :  { %s4305_s21 = scalar_lea.hbm %s5762_s4, 512 }
  0x27   :  { %p4306_p8 = scmp.ne.s32.totalorder %s5762_s4, %s4305_s21  ;;  %p4309_p9 = scmp.lt.u32.totalorder %s4305_s21, %s5762_s4 }
  0x29   :  { %p4311_p10 = pnand %p4309_p9, %p4306_p8 }
  0x2b   :  { %4314 = shalt.err (!%p4311_p10)
}
  0x2c   :  { %s4315_s28 = scalar_lea.vmem %s72_s29, 512  ;;  %p4320_p12 = scmp.lt.s32.totalorder %s72_s29, %s72_s29 }
  0x2d   :  { %p4316_p11 = scmp.ne.s32.totalorder %s72_s29, %s4315_s28  ;;  %p4321_p13 = scmp.lt.s32.totalorder %s4315_s28, %s4315_s28 }
  0x2f   :  { %p4322_p0 = por %p4321_p13, %p4320_p12 }
  0x31   :  { %p4323_p1 = pnand %p4322_p0, %p4316_p11 }
  0x33   :  { %4326 = shalt.err (!%p4323_p1)
}
  0x34   :  { %77 = dma.hbm_to_vmem [thread:$0]  %s5762_s4, 512, %s72_s29, [#allocation9], %s4632_s23, %s4632_s23, %s4633_s24  }
  0x35   :  { %s4327_s30 = scalar_lea.hbm %s5764_s6, 4096 }
  0x36   :  { %p4328_p2 = scmp.ne.s32.totalorder %s5764_s6, %s4327_s30  ;;  %p4331_p3 = scmp.lt.u32.totalorder %s4327_s30, %s5764_s6 }
  0x38   :  { %p4333_p4 = pnand %p4331_p3, %p4328_p2 }
  0x3a   :  { %4336 = shalt.err (!%p4333_p4)
}
  0x3b   :  { %s4337_s21 = scalar_lea.vmem %s94_s19, 4096  ;;  %p4342_p6 = scmp.lt.s32.totalorder %s94_s19, %s94_s19 }
  0x3c   :  { %p4338_p5 = scmp.ne.s32.totalorder %s94_s19, %s4337_s21  ;;  %p4343_p7 = scmp.lt.s32.totalorder %s4337_s21, %s4337_s21 }
  0x3e   :  { %p4344_p8 = por %p4343_p7, %p4342_p6 }
  0x40   :  { %p4345_p9 = pnand %p4344_p8, %p4338_p5 }
  0x42   :  { %4348 = shalt.err (!%p4345_p9)
}
  0x43   :  { %s4636_s4 = smov 256   ;;  %s4637_s23 = smov 16  }
  0x44   :  { %99 = dma.hbm_to_vmem [thread:$0]  %s5764_s6, 4096, %s94_s19, [#allocation12], %s4636_s4, %s4636_s4, %s4637_s23  }
  0x45   :  { %s4638_s22 = smov [#allocation14]   ;;  %s4639_s28 = smov [#allocation17]  }
  0x46   :  { %s120_s2 = sshll.u32 %s4638_s22, 4  ;;  %s144_s0 = sshll.u32 %s4639_s28, 4  ;;  %s121_s2 = int_to_ptr.vmem [resolvable:$true] %s120_s2  ;;  %s145_s0 = int_to_ptr.vmem [resolvable:$true] %s144_s0 }
  0x47   :  { %s4349_s27 = scalar_lea.hbm %s5767_s9, 32 }
  0x48   :  { %p4350_p10 = scmp.ne.s32.totalorder %s5767_s9, %s4349_s27  ;;  %p4353_p11 = scmp.lt.u32.totalorder %s4349_s27, %s5767_s9 }
  0x4a   :  { %p4355_p12 = pnand %p4353_p11, %p4350_p10 }
  0x4c   :  { %4358 = shalt.err (!%p4355_p12)
}
  0x4d   :  { %s4359_s6 = scalar_lea.vmem %s121_s2, 32  ;;  %p4364_p0 = scmp.lt.s32.totalorder %s121_s2, %s121_s2 }
  0x4e   :  { %p4360_p13 = scmp.ne.s32.totalorder %s121_s2, %s4359_s6  ;;  %p4365_p1 = scmp.lt.s32.totalorder %s4359_s6, %s4359_s6 }
  0x50   :  { %p4366_p2 = por %p4365_p1, %p4364_p0 }
  0x52   :  { %p4367_p3 = pnand %p4366_p2, %p4360_p13 }
  0x54   :  { %4370 = shalt.err (!%p4367_p3)
}
  0x55   :  { %123 = dma.hbm_to_vmem [thread:$0]  %s5767_s9, 32, %s121_s2, [#allocation15]  }
  0x56   :  { %s4371_s29 = scalar_lea.hbm %s5770_s12, 512 }
  0x57   :  { %p4372_p4 = scmp.ne.s32.totalorder %s5770_s12, %s4371_s29  ;;  %p4375_p5 = scmp.lt.u32.totalorder %s4371_s29, %s5770_s12 }
  0x59   :  { %p4377_p6 = pnand %p4375_p5, %p4372_p4 }
  0x5b   :  { %4380 = shalt.err (!%p4377_p6)
}
  0x5c   :  { %s4381_s27 = scalar_lea.vmem %s145_s0, 512  ;;  %p4386_p8 = scmp.lt.s32.totalorder %s145_s0, %s145_s0 }
  0x5d   :  { %p4382_p7 = scmp.ne.s32.totalorder %s145_s0, %s4381_s27  ;;  %p4387_p9 = scmp.lt.s32.totalorder %s4381_s27, %s4381_s27 }
  0x5f   :  { %p4388_p10 = por %p4387_p9, %p4386_p8 }
  0x61   :  { %p4389_p11 = pnand %p4388_p10, %p4382_p7 }
  0x63   :  { %4392 = shalt.err (!%p4389_p11)
}
  0x64   :  { %147 = dma.hbm_to_vmem [thread:$0]  %s5770_s12, 512, %s145_s0, [#allocation18]  }
  0x65   :  { %s4640_s30 = smov [#allocation20]   ;;  %s4393_s6 = scalar_lea.hbm %s5772_s14, 49152 }
  0x66   :  { %s163_s15 = sshll.u32 %s4640_s30, 4  ;;  %p4394_p12 = scmp.ne.s32.totalorder %s5772_s14, %s4393_s6  ;;  %s164_s15 = int_to_ptr.vmem [resolvable:$true] %s163_s15 }
  0x67   :  { %p4397_p13 = scmp.lt.u32.totalorder %s4393_s6, %s5772_s14 }
  0x69   :  { %p4399_p0 = pnand %p4397_p13, %p4394_p12 }
  0x6b   :  { %4402 = shalt.err (!%p4399_p0)
}
  0x6c   :  { %s4403_s29 = scalar_lea.vmem %s164_s15, 49152  ;;  %p4408_p2 = scmp.lt.s32.totalorder %s164_s15, %s164_s15 }
  0x6d   :  { %p4404_p1 = scmp.ne.s32.totalorder %s164_s15, %s4403_s29  ;;  %p4409_p3 = scmp.lt.s32.totalorder %s4403_s29, %s4403_s29 }
  0x6f   :  { %p4410_p4 = por %p4409_p3, %p4408_p2 }
  0x71   :  { %p4411_p5 = pnand %p4410_p4, %p4404_p1 }
  0x73   :  { %4414 = shalt.err (!%p4411_p5)
}
  0x74   :  { %s4641_s12 = smov 768   ;;  %s4642_s0 = smov 48  }
  0x75   :  { %169 = dma.hbm_to_vmem [thread:$0]  %s5772_s14, 49152, %s164_s15, [#allocation21], %s4641_s12, %s4641_s12, %s4642_s0  }
  0x76   :  { %s4643_s25 = smov [#allocation2]   ;;  %s4644_s27 = smov [#allocation7]  }
  0x77   :  { %s38_s26 = sshll.u32 %s4643_s25, 4  ;;  %s60_s9 = sshll.u32 %s4644_s27, 4  ;;  %s39_s26 = int_to_ptr.vmem [resolvable:$true] %s38_s26  ;;  %s61_s9 = int_to_ptr.vmem [resolvable:$true] %s60_s9 }
  0x78   :  { %s5788_s18 = sld [smem:[#allocation35_spill]] }
  0x7e   :  { %s4415_s1 = scalar_lea.hbm %s5788_s18, 32 }
  0x7f   :  { %p4416_p6 = scmp.ne.s32.totalorder %s5788_s18, %s4415_s1  ;;  %p4419_p7 = scmp.lt.u32.totalorder %s4415_s1, %s5788_s18 }
  0x81   :  { %p4421_p8 = pnand %p4419_p7, %p4416_p6 }
  0x83   :  { %4424 = shalt.err (!%p4421_p8)
}
  0x84   :  { %s4425_s14 = scalar_lea.vmem %s39_s26, 32  ;;  %p4430_p10 = scmp.lt.s32.totalorder %s39_s26, %s39_s26 }
  0x85   :  { %p4426_p9 = scmp.ne.s32.totalorder %s39_s26, %s4425_s14  ;;  %p4431_p11 = scmp.lt.s32.totalorder %s4425_s14, %s4425_s14 }
  0x87   :  { %p4432_p12 = por %p4431_p11, %p4430_p10 }
  0x89   :  { %p4433_p13 = pnand %p4432_p12, %p4426_p9 }
  0x8b   :  { %4436 = shalt.err (!%p4433_p13)
}
  0x8c   :  { %41 = dma.hbm_to_vmem [thread:$0]  %s5788_s18, 32, %s39_s26, [#allocation3]  }
  0x8d   :  { %s5789_s0 = sld [smem:[#allocation37_spill]] }
  0x93   :  { %s4437_s22 = scalar_lea.hbm %s5789_s0, 16 }
  0x94   :  { %p4438_p0 = scmp.ne.s32.totalorder %s5789_s0, %s4437_s22  ;;  %p4441_p1 = scmp.lt.u32.totalorder %s4437_s22, %s5789_s0 }
  0x96   :  { %p4443_p2 = pnand %p4441_p1, %p4438_p0 }
  0x98   :  { %4446 = shalt.err (!%p4443_p2)
}
  0x99   :  { %s4447_s30 = scalar_lea.vmem %s61_s9, 16  ;;  %s4451_s1 = scalar_lea.vmem %s61_s9, 32 }
  0x9a   :  { %p4448_p3 = scmp.ne.s32.totalorder %s61_s9, %s4447_s30  ;;  %p4452_p4 = scmp.lt.s32.totalorder %s61_s9, %s61_s9 }
  0x9b   :  { %p4453_p5 = scmp.lt.s32.totalorder %s4451_s1, %s4447_s30 }
  0x9d   :  { %p4454_p6 = por %p4453_p5, %p4452_p4 }
  0x9f   :  { %p4455_p7 = pnand %p4454_p6, %p4448_p3 }
  0xa1   :  { %4458 = shalt.err (!%p4455_p7)
}
  0xa2   :  { %63 = dma.hbm_to_vmem [thread:$0]  %s5789_s0, 16, %s61_s9, [#allocation6]  }
  0xa3   :  { %s4645_s6 = smov [#allocation10]   ;;  %s4646_s20 = smov [#allocation13]  }
  0xa4   :  { %s84_s19 = sshll.u32 %s4645_s6, 4  ;;  %s107_s21 = sshll.u32 %s4646_s20, 4  ;;  %s85_s19 = int_to_ptr.vmem [resolvable:$true] %s84_s19  ;;  %s4852_s21 = int_to_ptr.vmem [resolvable:$true] %s107_s21 }
  0xa5   :  { %s4459_s24 = scalar_lea.hbm %s5763_s5, 32 }
  0xa6   :  { %p4460_p8 = scmp.ne.s32.totalorder %s5763_s5, %s4459_s24  ;;  %p4463_p9 = scmp.lt.u32.totalorder %s4459_s24, %s5763_s5 }
  0xa8   :  { %p4465_p10 = pnand %p4463_p9, %p4460_p8 }
  0xaa   :  { %4468 = shalt.err (!%p4465_p10)
}
  0xab   :  { %s4469_s9 = scalar_lea.vmem %s85_s19, 32  ;;  %p4474_p12 = scmp.lt.s32.totalorder %s85_s19, %s85_s19 }
  0xac   :  { %p4470_p11 = scmp.ne.s32.totalorder %s85_s19, %s4469_s9  ;;  %p4475_p13 = scmp.lt.s32.totalorder %s4469_s9, %s4469_s9 }
  0xae   :  { %p4476_p0 = por %p4475_p13, %p4474_p12 }
  0xb0   :  { %p4477_p1 = pnand %p4476_p0, %p4470_p11 }
  0xb2   :  { %4480 = shalt.err (!%p4477_p1)
}
  0xb3   :  { %87 = dma.hbm_to_vmem [thread:$0]  %s5763_s5, 32, %s85_s19, [#allocation9]  }
  0xb4   :  { %s4481_s30 = scalar_lea.hbm %s5766_s8, 512 }
  0xb5   :  { %p4482_p2 = scmp.ne.s32.totalorder %s5766_s8, %s4481_s30  ;;  %p4485_p3 = scmp.lt.u32.totalorder %s4481_s30, %s5766_s8 }
  0xb7   :  { %p4487_p4 = pnand %p4485_p3, %p4482_p2 }
  0xb9   :  { %4490 = shalt.err (!%p4487_p4)
}
  0xba   :  { %s4491_s20 = scalar_lea.vmem %s4852_s21, 512  ;;  %p4496_p6 = scmp.lt.s32.totalorder %s4852_s21, %s4852_s21 }
  0xbb   :  { %p4492_p5 = scmp.ne.s32.totalorder %s4852_s21, %s4491_s20  ;;  %p4497_p7 = scmp.lt.s32.totalorder %s4491_s20, %s4491_s20 }
  0xbd   :  { %p4498_p8 = por %p4497_p7, %p4496_p6 }
  0xbf   :  { %p4499_p9 = pnand %p4498_p8, %p4492_p5 }
  0xc1   :  { %4502 = shalt.err (!%p4499_p9)
}
  0xc2   :  { %113 = dma.hbm_to_vmem [thread:$0]  %s5766_s8, 512, %s4852_s21, [#allocation12], %s4636_s4, %s4636_s4, %s4637_s23  }
  0xc3   :  { %s4647_s14 = smov [#allocation16]   ;;  %s4503_s12 = scalar_lea.hbm %s5768_s10, 16384 }
  0xc4   :  { %s129_s15 = sshll.u32 %s4647_s14, 4  ;;  %p4504_p10 = scmp.ne.s32.totalorder %s5768_s10, %s4503_s12  ;;  %s130_s15 = int_to_ptr.vmem [resolvable:$true] %s129_s15 }
  0xc5   :  { %p4507_p11 = scmp.lt.u32.totalorder %s4503_s12, %s5768_s10 }
  0xc7   :  { %p4509_p12 = pnand %p4507_p11, %p4504_p10 }
  0xc9   :  { %4512 = shalt.err (!%p4509_p12)
}
  0xca   :  { %s4513_s25 = scalar_lea.vmem %s130_s15, 16384  ;;  %p4518_p0 = scmp.lt.s32.totalorder %s130_s15, %s130_s15 }
  0xcb   :  { %p4514_p13 = scmp.ne.s32.totalorder %s130_s15, %s4513_s25  ;;  %p4519_p1 = scmp.lt.s32.totalorder %s4513_s25, %s4513_s25 }
  0xcd   :  { %p4520_p2 = por %p4519_p1, %p4518_p0 }
  0xcf   :  { %p4521_p3 = pnand %p4520_p2, %p4514_p13 }
  0xd1   :  { %4524 = shalt.err (!%p4521_p3)
}
  0xd2   :  { %s4648_s8 = smov 512   ;;  %s4649_s4 = smov 32  }
  0xd3   :  { %135 = dma.hbm_to_vmem [thread:$0]  %s5768_s10, 16384, %s130_s15, [#allocation15], %s4648_s8, %s4648_s8, %s4649_s4  }
  0xd4   :  { %s4650_s27 = smov [#allocation19]   ;;  %s4651_s30 = smov [#allocation22]  }
  0xd5   :  { %s154_s2 = sshll.u32 %s4650_s27, 4  ;;  %s178_s1 = sshll.u32 %s4651_s30, 4  ;;  %s155_s2 = int_to_ptr.vmem [resolvable:$true] %s154_s2  ;;  %s179_s1 = int_to_ptr.vmem [resolvable:$true] %s178_s1 }
  0xd6   :  { %s4525_s6 = scalar_lea.hbm %s5771_s13, 32 }
  0xd7   :  { %p4526_p4 = scmp.ne.s32.totalorder %s5771_s13, %s4525_s6  ;;  %p4529_p5 = scmp.lt.u32.totalorder %s4525_s6, %s5771_s13 }
  0xd9   :  { %p4531_p6 = pnand %p4529_p5, %p4526_p4 }
  0xdb   :  { %4534 = shalt.err (!%p4531_p6)
}
  0xdc   :  { %s4535_s10 = scalar_lea.vmem %s155_s2, 32  ;;  %p4540_p8 = scmp.lt.s32.totalorder %s155_s2, %s155_s2 }
  0xdd   :  { %p4536_p7 = scmp.ne.s32.totalorder %s155_s2, %s4535_s10  ;;  %p4541_p9 = scmp.lt.s32.totalorder %s4535_s10, %s4535_s10 }
  0xdf   :  { %p4542_p10 = por %p4541_p9, %p4540_p8 }
  0xe1   :  { %p4543_p11 = pnand %p4542_p10, %p4536_p7 }
  0xe3   :  { %4546 = shalt.err (!%p4543_p11)
}
  0xe4   :  { %157 = dma.hbm_to_vmem [thread:$0]  %s5771_s13, 32, %s155_s2, [#allocation18]  }
  0xe5   :  { %s4547_s22 = scalar_lea.hbm %s5774_s16, 384 }
  0xe6   :  { %p4548_p12 = scmp.ne.s32.totalorder %s5774_s16, %s4547_s22  ;;  %p4551_p13 = scmp.lt.u32.totalorder %s4547_s22, %s5774_s16 }
  0xe8   :  { %p4553_p0 = pnand %p4551_p13, %p4548_p12 }
  0xea   :  { %4556 = shalt.err (!%p4553_p0)
}
  0xeb   :  { %s4557_s8 = scalar_lea.vmem %s179_s1, 384  ;;  %p4562_p2 = scmp.lt.s32.totalorder %s179_s1, %s179_s1 }
  0xec   :  { %p4558_p1 = scmp.ne.s32.totalorder %s179_s1, %s4557_s8  ;;  %p4563_p3 = scmp.lt.s32.totalorder %s4557_s8, %s4557_s8 }
  0xee   :  { %p4564_p4 = por %p4563_p3, %p4562_p2 }
  0xf0   :  { %p4565_p5 = pnand %p4564_p4, %p4558_p1 }
  0xf2   :  { %4568 = shalt.err (!%p4565_p5)
}
  0xf3   :  { %181 = dma.hbm_to_vmem [thread:$0]  %s5774_s16, 384, %s179_s1, [#allocation21]  }
  0xf4   :  { %s4652_s23 = smov [#allocation23]   ;;  %s4569_s30 = scalar_lea.hbm %s5775_s17, 32 }
  0xf5   :  { %s188_s21 = sshll.u32 %s4652_s23, 4  ;;  %p4570_p6 = scmp.ne.s32.totalorder %s5775_s17, %s4569_s30  ;;  %s189_s21 = int_to_ptr.vmem [resolvable:$true] %s188_s21 }
  0xf6   :  { %p4573_p7 = scmp.lt.u32.totalorder %s4569_s30, %s5775_s17 }
  0xf8   :  { %p4575_p8 = pnand %p4573_p7, %p4570_p6 }
  0xfa   :  { %4578 = shalt.err (!%p4575_p8)
}
  0xfb   :  { %s4579_s5 = scalar_lea.vmem %s189_s21, 32  ;;  %p4584_p10 = scmp.lt.s32.totalorder %s189_s21, %s189_s21 }
  0xfc   :  { %p4580_p9 = scmp.ne.s32.totalorder %s189_s21, %s4579_s5  ;;  %p4585_p11 = scmp.lt.s32.totalorder %s4579_s5, %s4579_s5 }
  0xfe   :  { %p4586_p12 = por %p4585_p11, %p4584_p10 }
 0x100   :  { %p4587_p13 = pnand %p4586_p12, %p4580_p9 }
 0x102   :  { %4590 = shalt.err (!%p4587_p13)
}
 0x103   :  { %191 = dma.hbm_to_vmem [thread:$0]  %s5775_s17, 32, %s189_s21, [#allocation24]  }
 0x104   :  { %4613 = dma.done.wait [#allocation3], 32  }
 0x105   :  { %4614 = vsyncadd [#allocation3], 4294967264 }
 0x106   :  { %4615 = dma.done.wait [#allocation6], 528  }
 0x107   :  { %4616 = vsyncadd [#allocation6], 4294966768 }
 0x108   :  { %4617 = dma.done.wait [#allocation9], 544  }
 0x109   :  { %4618 = vsyncadd [#allocation9], 4294966752 }
 0x10a   :  { %4619 = dma.done.wait [#allocation12], 4608  }
 0x10b   :  { %4620 = vsyncadd [#allocation12], 4294962688 }
 0x10c   :  { %4621 = dma.done.wait [#allocation15], 16416  }
 0x10d   :  { %4622 = vsyncadd [#allocation15], 4294950880 }
 0x10e   :  { %4623 = dma.done.wait [#allocation18], 544  }
 0x10f   :  { %4624 = vsyncadd [#allocation18], 4294966752 }
 0x110   :  { %4625 = dma.done.wait [#allocation21], 49536  }
 0x111   :  { %4626 = vsyncadd [#allocation21], 4294917760 }
 0x112   :  { %4627 = dma.done.wait [#allocation24], 32  }
 0x113   :  { %4628 = vsyncadd [#allocation24], 4294967264  ;;  %v4653_v0 = vmov 0.0|0.0   ;;  %vm4654_vm0 = vmmov 0   ;;  %v4655_v1 = vmov 0.0   ;;  %v235_v2 = vld [vmem:[#allocation5] sm:$0xff] }
 0x114   :  { %3451 = vmatprep.subr.bf16.mxu1 %v4653_v0  ;;  %3402 = vmatprep.mubr.msk.f32.mxu1 %vm4654_vm0, %v4655_v1  ;;  %v236_v3 = vld [vmem:[#allocation5 + $0x8] sm:$0xff]  ;;  %v237_v4 = vld [vmem:[#allocation5 + $0x10] sm:$0xff]  ;;  %v238_v6 = vld [vmem:[#allocation5 + $0x18] sm:$0xff]  ;;  %vm246_vm1 = vcmask 261120   ;;  %vm345_vm2 = vcmask 1041408   ;;  %vm417_vm3 = vcmask 254976  }
 0x115   :  { %3481 = vmatprep.subr.bf16.mxu0 %v4653_v0  ;;  %3448 = vmatprep.mubr.msk.f32.mxu0 %vm4654_vm0, %v4655_v1  ;;  %v3452_v5 = vpack.c.bf16 %v236_v3, %v235_v2  ;;  %v3455_v7 = vpack.c.bf16 %v238_v6, %v237_v4  ;;  %v320_v8 = vld [vmem:[%s5761_s3] sm:$0xff]  ;;  %v321_v9 = vld [vmem:[%s5761_s3 + $0x8] sm:$0xff]  ;;  %v322_v12 = vld [vmem:[%s5761_s3 + $0x10] sm:$0xff]  ;;  %vm447_vm4 = vcmask 1040384   ;;  %vm753_vm5 = vcmask 123904   ;;  %s5790_s21 = sld [smem:[#allocation38_spill]] }
 0x116   :  { %v234_v10 = vld [vmem:[#allocation2] sm:$0x3]  ;;  %v3458_v11 = vpack.c.bf16 %v321_v9, %v320_v8  ;;  %v323_v13 = vld [vmem:[%s5761_s3 + $0x18] sm:$0xff]  ;;  %v325_v16 = vld [vmem:[%s5761_s3 + $0x28] sm:$0xff]  ;;  %vm784_vm6 = vcmask 130048   ;;  %vm1380_vm7 = vcmask 58368  }
 0x117   :  { %3453 = vmatpush3.bf16.msra.mxu1 %v3452_v5  ;;  %v3461_v14 = vpack.c.bf16 %v323_v13, %v322_v12  ;;  %v324_v15 = vld [vmem:[%s5761_s3 + $0x20] sm:$0xff]  ;;  %v326_v18 = vld [vmem:[%s5761_s3 + $0x30] sm:$0xff]  ;;  %v327_v19 = vld [vmem:[%s5761_s3 + $0x38] sm:$0xff]  ;;  %vm1411_vm8 = vcmask 64512   ;;  %vm2792_vm9 = vcmask 1042432   ;;  %vm2751_vm10 = vcmask 17408  }
 0x118   :  { %3454 = vmatprep.subr.bf16.mxu1 %v4653_v0  ;;  %v3464_v17 = vpack.c.bf16 %v325_v16, %v324_v15  ;;  %v3467_v20 = vpack.c.bf16 %v327_v19, %v326_v18  ;;  %v328_v21 = vld [vmem:[%s5761_s3 + $0x40] sm:$0xff]  ;;  %v329_v22 = vld [vmem:[%s5761_s3 + $0x48] sm:$0xff]  ;;  %v330_v24 = vld [vmem:[%s5761_s3 + $0x50] sm:$0xff]  ;;  %vm2788_vm11 = vcmask 23552  }
 0x119   :  { %v3470_v23 = vpack.c.bf16 %v329_v22, %v328_v21  ;;  %v331_v25 = vld [vmem:[%s5761_s3 + $0x58] sm:$0xff]  ;;  %v332_v27 = vld [vmem:[%s5761_s3 + $0x60] sm:$0xff]  ;;  %v333_v28 = vld [vmem:[%s5761_s3 + $0x68] sm:$0xff] }
 0x11a   :  { %v3473_v26 = vpack.c.bf16 %v331_v25, %v330_v24  ;;  %v3476_v29 = vpack.c.bf16 %v333_v28, %v332_v27  ;;  %v334_v30 = vld [vmem:[%s5761_s3 + $0x70] sm:$0xff]  ;;  %v335_v31 = vld [vmem:[%s5761_s3 + $0x78] sm:$0xff]  ;;  %v3141_v33 = vld [vmem:[#allocation7] ss:$0 sm:$0xff] }
 0x11b   :  { %3456 = vmatpush3.bf16.msra.mxu1 %v3455_v7  ;;  %v3479_v32 = vpack.c.bf16 %v335_v31, %v334_v30  ;;  %v336_v40 = vld [vmem:[#allocation8] sm:$0xff]  ;;  %v337_v41 = vld [vmem:[#allocation8 + $0x8] sm:$0xff]  ;;  %v338_v42 = vld [vmem:[#allocation8 + $0x10] sm:$0xff] }
 0x11c   :  { %3457 = vmatprep.subr.bf16.mxu1 %v4653_v0  ;;  %v3482_v43 = vpack.c.bf16 %v337_v41, %v336_v40  ;;  %v339_v44 = vld [vmem:[#allocation8 + $0x18] sm:$0xff]  ;;  %v534_v46 = vld [vmem:[#allocation11 + $0x8] sm:$0xff]  ;;  %v340_v8 = vld [vmem:[#allocation10] sm:$0x3] }
 0x11d   :  { %v3485_v45 = vpack.c.bf16 %v339_v44, %v338_v42  ;;  %v536_v47 = vld [vmem:[#allocation11 + $0x18] sm:$0xff]  ;;  %v533_v12 = vld [vmem:[#allocation11] sm:$0xff]  ;;  %v535_v13 = vld [vmem:[#allocation11 + $0x10] sm:$0xff] }
 0x11e   :  { %3403 = vmatmul.mubr.msk.f32.vlgmr.msra.gmra.mrb[0].mxu1 %vm246_vm1, %v234_v10  ;;  %3483 = vmatpush3.bf16.msra.mxu0 %v3482_v43  ;;  %v3487_v48 = vpack.c.bf16 %v536_v47, %v534_v46  ;;  %v538_v15 = vld [vmem:[#allocation11 + $0x28] sm:$0xff]  ;;  %v540_v16 = vld [vmem:[#allocation11 + $0x38] sm:$0xff]  ;;  %v3489_v18 = vpack.c.bf16 %v535_v13, %v533_v12  ;;  %v539_v21 = vld [vmem:[#allocation11 + $0x30] sm:$0xff] }
 0x11f   :  { %3459 = vmatpush3.bf16.msra.mxu1 %v3458_v11  ;;  %3437 = vmatprep.mubr.msk.f32.mxu1 %vm4654_vm0, %v4655_v1  ;;  %v3491_v19 = vpack.c.bf16 %v540_v16, %v538_v15  ;;  %v544_v24 = vld [vmem:[#allocation11 + $0x58] sm:$0xff]  ;;  %v541_v27 = vld [vmem:[#allocation11 + $0x40] sm:$0xff]  ;;  %v543_v28 = vld [vmem:[#allocation11 + $0x50] sm:$0xff] }
 0x120   :  { %3460 = vmatprep.subr.bf16.mxu1 %v4653_v0  ;;  %3484 = vmatprep.subr.bf16.mxu0 %v4653_v0  ;;  %v548_v30 = vld [vmem:[#allocation11 + $0x78] sm:$0xff]  ;;  %v3497_v31 = vpack.c.bf16 %v543_v28, %v541_v27  ;;  %v549_v40 = vld [vmem:[#allocation11 + $0x80] sm:$0xff]  ;;  %v551_v41 = vld [vmem:[#allocation11 + $0x90] sm:$0xff] }
 0x121   :  { %v554_v42 = vld [vmem:[#allocation11 + $0xa8] sm:$0xff]  ;;  %v556_v43 = vld [vmem:[#allocation11 + $0xb8] sm:$0xff]  ;;  %v3505_v44 = vpack.c.bf16 %v551_v41, %v549_v40  ;;  %v553_v46 = vld [vmem:[#allocation11 + $0xa0] sm:$0xff] }
 0x122   :  { %3486 = vmatpush3.bf16.msra.mxu0 %v3485_v45  ;;  %v3507_v45 = vpack.c.bf16 %v556_v43, %v554_v42  ;;  %v555_v47 = vld [vmem:[#allocation11 + $0xb0] sm:$0xff]  ;;  %v640_v13 = vld [vmem:[%s5765_s7 + $0x20] sm:$0xff] }
 0x123   :  { %3462 = vmatpush3.bf16.msra.mxu1 %v3461_v14  ;;  %3488 = vmatprep.subr.bf16.mxu0 %v3487_v48  ;;  %v3509_v48 = vpack.c.bf16 %v555_v47, %v553_v46  ;;  %v658_v15 = vld [vmem:[%s5765_s7 + $0xb0] sm:$0xff]  ;;  %v659_v16 = vld [vmem:[%s5765_s7 + $0xb8] sm:$0xff]  ;;  %v664_v46 = vld [vmem:[%s5765_s7 + $0xe0] sm:$0xff] }
 0x124   :  { %3463 = vmatprep.subr.bf16.mxu1 %v4653_v0  ;;  %v662_v27 = vld [vmem:[%s5765_s7 + $0xd0] sm:$0xff]  ;;  %v663_v28 = vld [vmem:[%s5765_s7 + $0xd8] sm:$0xff]  ;;  %v665_v47 = vld [vmem:[%s5765_s7 + $0xe8] sm:$0xff] }
 0x127   :  { %3465 = vmatpush3.bf16.msra.mxu1 %v3464_v17 }
 0x128   :  { %3466 = vmatprep.subr.bf16.mxu1 %v4653_v0 }
 0x12b   :  { %3468 = vmatpush3.bf16.msra.mxu1 %v3467_v20  ;;  %v537_v20 = vld [vmem:[#allocation11 + $0x20] sm:$0xff] }
 0x12c   :  { %3469 = vmatprep.subr.bf16.mxu1 %v4653_v0  ;;  %v3493_v25 = vpack.c.bf16 %v539_v21, %v537_v20  ;;  %v643_v20 = vld [vmem:[%s5765_s7 + $0x38] sm:$0xff]  ;;  %v660_v21 = vld [vmem:[%s5765_s7 + $0xc0] sm:$0xff] }
 0x12f   :  { %3471 = vmatpush3.bf16.msra.mxu1 %v3470_v23  ;;  %v542_v23 = vld [vmem:[#allocation11 + $0x48] sm:$0xff] }
 0x130   :  { %3472 = vmatprep.subr.bf16.mxu1 %v4653_v0 }
 0x133   :  { %3474 = vmatpush3.bf16.msra.mxu1 %v3473_v26  ;;  %v3495_v26 = vpack.c.bf16 %v544_v24, %v542_v23 }
 0x134   :  { %3475 = vmatprep.subr.bf16.mxu1 %v4653_v0 }
 0x137   :  { %3477 = vmatpush3.bf16.msra.mxu1 %v3476_v29  ;;  %v546_v29 = vld [vmem:[#allocation11 + $0x68] sm:$0xff] }
 0x138   :  { %3478 = vmatprep.subr.bf16.mxu1 %v4653_v0 }
 0x13b   :  { %3480 = vmatpush3.bf16.msra.mxu1 %v3479_v32  ;;  %v3499_v32 = vpack.c.bf16 %v548_v30, %v546_v29  ;;  %v3539_v30 = vpack.c.bf16 %v663_v28, %v662_v27  ;;  %v903_v27 = vld [vmem:[#allocation16 + $0xb0] sm:$0xff] }
 0x1f1   :  { %v316_v34 = vpop.f32.mrb[0].mxu1 }
 0x1f2   :  { %v5000_v35 = vadd.f32 %v3141_v33, %v316_v34  ;;  %v3404_v36 = vpop.f32.mrb[1].mxu1  ;;  %v545_v33 = vld [vmem:[#allocation11 + $0x60] sm:$0xff]  ;;  %v547_v34 = vld [vmem:[#allocation11 + $0x70] sm:$0xff] }
 0x1f3   :  { %v550_v36 = vld [vmem:[#allocation11 + $0x88] sm:$0xff] }
 0x1f4   :  { %v341_v37 = vmul.f32 %v5000_v35, %v5000_v35 }
 0x1f6   :  { %v343_v38 = vrot.slane %v341_v37, 6  ;;  %v552_v37 = vld [vmem:[#allocation11 + $0x98] sm:$0xff] }
 0x1f8   :  { %v346_v39 = vsel %vm345_vm2, %v5000_v35, %v343_v38  ;;  %v3501_v38 = vpack.c.bf16 %v547_v34, %v545_v33  ;;  %v522_v34 = vlaneseq }
 0x1f9   :  { %3438 = vmatmul.mubr.f32.vlgmr.msra.gmra.mrb[2].mxu1 %v346_v39  ;;  %v3503_v39 = vpack.c.bf16 %v552_v37, %v550_v36 }
 0x1fa   :  { %v5082_v36 = vshrl.u32 %v522_v34, 7 }
 0x1fc   :  { %v5085_v37 = vsub.s32 0, %v5082_v36 }
 0x2cc   :  { %v413_v49 = vpop.f32.mrb[2].mxu1 }
 0x2cd   :  { %v418_v50 = vsel %vm417_vm3, %v413_v49, 0.0  ;;  %v427_v51 = vrot.slane %v413_v49, 2  ;;  %v3439_v52 = vpop.f32.mrb[3].mxu1  ;;  %v558_v49 = vld [vmem:[#allocation11 + $0xc8] sm:$0xff] }
 0x2ce   :  { %v419_v53 = vrot.slane %v418_v50, 4  ;;  %v557_v52 = vld [vmem:[#allocation11 + $0xc0] sm:$0xff] }
 0x2cf   :  { %v429_v54 = vsel %vm417_vm3, %v427_v51, 0.0 }
 0x2d0   :  { %v420_v55 = vadd.f32 %v419_v53, %v418_v50  ;;  %v430_v56 = vrot.slane %v429_v54, 4  ;;  %v560_v50 = vld [vmem:[#allocation11 + $0xd8] sm:$0xff]  ;;  %v559_v53 = vld [vmem:[#allocation11 + $0xd0] sm:$0xff] }
 0x2d1   :  { %v3511_v51 = vpack.c.bf16 %v560_v50, %v558_v49  ;;  %v649_v49 = vld [vmem:[%s5765_s7 + $0x68] sm:$0xff] }
 0x2d2   :  { %v421_v57 = vrot.slane %v420_v55, 2  ;;  %v431_v58 = vadd.f32 %v430_v56, %v429_v54  ;;  %v3513_v54 = vpack.c.bf16 %v559_v53, %v557_v52  ;;  %v564_v56 = vld [vmem:[#allocation11 + $0xf8] sm:$0xff] }
 0x2d3   :  { %v667_v52 = vld [vmem:[%s5765_s7 + $0xf8] sm:$0xff] }
 0x2d4   :  { %v422_v59 = vadd.f32 %v421_v57, %v420_v55  ;;  %v432_v60 = vrot.slane %v431_v58, 2  ;;  %v562_v55 = vld [vmem:[#allocation11 + $0xe8] sm:$0xff] }
 0x2d5   :  { %v3515_v57 = vpack.c.bf16 %v564_v56, %v562_v55  ;;  %v651_v55 = vld [vmem:[%s5765_s7 + $0x78] sm:$0xff] }
 0x2d6   :  { %v423_v61 = vrot.slane %v422_v59, 1  ;;  %v433_v62 = vadd.f32 %v432_v60, %v431_v58  ;;  %v561_v58 = vld [vmem:[#allocation11 + $0xe0] sm:$0xff] }
 0x2d8   :  { %v424_v63 = vadd.f32 %v423_v61, %v422_v59  ;;  %v434_v0 = vrot.slane %v433_v62, 1  ;;  %v563_v59 = vld [vmem:[#allocation11 + $0xf0] sm:$0xff]  ;;  %v652_v61 = vld [vmem:[%s5765_s7 + $0x80] sm:$0xff] }
 0x2d9   :  { %v3517_v60 = vpack.c.bf16 %v563_v59, %v561_v58 }
 0x2da   :  { %v425_v2 = vmul.f32 0.125, %v424_v63  ;;  %v435_v3 = vadd.f32 %v434_v0, %v433_v62  ;;  %v653_v62 = vld [vmem:[%s5765_s7 + $0x88] sm:$0xff]  ;;  %v636_v63 = vld [vmem:[%s5765_s7] sm:$0xff] }
 0x2db   :  { %v3519_v0 = vpack.c.bf16 %v653_v62, %v652_v61 }
 0x2dc   :  { %v436_v4 = vmul.f32 0.125, %v435_v3  ;;  %v437_v5 = vmul.f32 %v425_v2, %v425_v2  ;;  %v654_v3 = vld [vmem:[%s5765_s7 + $0x90] sm:$0xff] }
 0x2dd   :  { %3520 = vmatprep.subr.bf16.mxu1 %v3519_v0 }
 0x2de   :  { %v438_v6 = vsub.f32 %v436_v4, %v437_v5  ;;  %v655_v4 = vld [vmem:[%s5765_s7 + $0x98] sm:$0xff] }
 0x2e0   :  { %v439_v7 = vadd.f32 1e-05, %v438_v6  ;;  %v3523_v6 = vpack.c.bf16 %v655_v4, %v654_v3  ;;  %v671_v3 = vld [vmem:[#allocation13 + $0x18] sm:$0xff] }
 0x2e2   :  { %4263 = vrsqrt.f32 %v439_v7  ;;  %v638_v7 = vld [vmem:[%s5765_s7 + $0x10] sm:$0xff] }
 0x2ec   :  { %v4264_v9 = vpop.eup %4263 }
 0x2ed   :  { %v441_v10 = vmul.f32 %v4264_v9, %v340_v8  ;;  %v656_v9 = vld [vmem:[%s5765_s7 + $0xa0] sm:$0xff] }
 0x2ef   :  { %v442_v11 = vmul.f32 %v441_v10, %v425_v2  ;;  %v637_v2 = vld [vmem:[%s5765_s7 + $0x8] sm:$0xff] }
 0x2f0   :  { %v3521_v5 = vpack.c.bf16 %v637_v2, %v636_v63  ;;  %v669_v2 = vld [vmem:[#allocation13 + $0x8] sm:$0xff] }
 0x2f1   :  { %v444_v14 = vrot.slane %v442_v11, 7  ;;  %v3551_v4 = vpack.c.bf16 %v671_v3, %v669_v2  ;;  %v952_v2 = vld [vmem:[#allocation16 + $0x238] sm:$0xff] }
 0x2f2   :  { %3522 = vmatpush3.bf16.msra.mxu1 %v3521_v5  ;;  %v668_v5 = vld [vmem:[#allocation13] sm:$0xff] }
 0x2f3   :  { %v446_v17 = vsub.f32 %v340_v8, %v444_v14  ;;  %v639_v8 = vld [vmem:[%s5765_s7 + $0x18] sm:$0xff]  ;;  %3524 = vmatprep.subr.bf16.mxu1 %v3523_v6  ;;  %v641_v14 = vld [vmem:[%s5765_s7 + $0x28] sm:$0xff] }
 0x2f4   :  { %v3525_v11 = vpack.c.bf16 %v639_v8, %v638_v7  ;;  %v670_v6 = vld [vmem:[#allocation13 + $0x10] sm:$0xff] }
 0x2f5   :  { %v448_v22 = vsel %vm447_vm4, %v441_v10, %v446_v17  ;;  %v657_v10 = vld [vmem:[%s5765_s7 + $0xa8] sm:$0xff]  ;;  %v3529_v17 = vpack.c.bf16 %v641_v14, %v640_v13  ;;  %v3553_v7 = vpack.c.bf16 %v670_v6, %v668_v5  ;;  %v882_v8 = vld [vmem:[#allocation16 + $0x8] sm:$0xff]  ;;  %v883_v14 = vld [vmem:[#allocation16 + $0x10] sm:$0xff] }
 0x2f6   :  { %3449 = vmatmul.mubr.msk.f32.vlgmr.msra.gmra.mrb[0].mxu0 %vm246_vm1, %v448_v22  ;;  %v3527_v12 = vpack.c.bf16 %v657_v10, %v656_v9  ;;  %3526 = vmatpush3.bf16.msra.mxu1 %v3525_v11  ;;  %v661_v22 = vld [vmem:[%s5765_s7 + $0xc8] sm:$0xff]  ;;  %v886_v9 = vld [vmem:[#allocation16 + $0x28] sm:$0xff]  ;;  %v884_v10 = vld [vmem:[#allocation16 + $0x18] sm:$0xff] }
 0x2f7   :  { %3490 = vmatpush1.bf16.msra.mxu0 %v3489_v18  ;;  %629 = vmatprep.mubr.f32.mxu0 %v4655_v1  ;;  %v3531_v18 = vpack.c.bf16 %v659_v16, %v658_v15  ;;  %v3535_v24 = vpack.c.bf16 %v661_v22, %v660_v21  ;;  %v3555_v11 = vpack.c.bf16 %v886_v9, %v882_v8  ;;  %v887_v15 = vld [vmem:[#allocation16 + $0x30] sm:$0xff]  ;;  %v960_v8 = vld [vmem:[#allocation16 + $0x278] sm:$0xff] }
 0x2f8   :  { %3492 = vmatprep.subr.bf16.mxu0 %v3491_v19  ;;  %3528 = vmatprep.subr.bf16.mxu1 %v3527_v12  ;;  %v642_v19 = vld [vmem:[%s5765_s7 + $0x30] sm:$0xff]  ;;  %v888_v12 = vld [vmem:[#allocation16 + $0x38] sm:$0xff]  ;;  %v3621_v16 = vpack.c.bf16 %v887_v15, %v883_v14  ;;  %v895_v21 = vld [vmem:[#allocation16 + $0x70] sm:$0xff] }
 0x2f9   :  { %v3533_v23 = vpack.c.bf16 %v643_v20, %v642_v19  ;;  %v3619_v13 = vpack.c.bf16 %v888_v12, %v884_v10  ;;  %v891_v20 = vld [vmem:[#allocation16 + $0x50] sm:$0xff]  ;;  %v968_v14 = vld [vmem:[#allocation16 + $0x2b8] sm:$0xff] }
 0x2fa   :  { %3530 = vmatpush3.bf16.msra.mxu1 %v3529_v17  ;;  %v892_v17 = vld [vmem:[#allocation16 + $0x58] sm:$0xff]  ;;  %v3625_v22 = vpack.c.bf16 %v895_v21, %v891_v20  ;;  %v951_v5 = vld [vmem:[#allocation16 + $0x230] sm:$0xff] }
 0x2fb   :  { %3494 = vmatpush1.bf16.msra.mxu0 %v3493_v25  ;;  %3532 = vmatprep.subr.bf16.mxu1 %v3531_v18  ;;  %v644_v25 = vld [vmem:[%s5765_s7 + $0x40] sm:$0xff]  ;;  %v955_v10 = vld [vmem:[#allocation16 + $0x250] sm:$0xff] }
 0x2fc   :  { %3496 = vmatprep.subr.bf16.mxu0 %v3495_v26  ;;  %v645_v26 = vld [vmem:[%s5765_s7 + $0x48] sm:$0xff]  ;;  %v896_v18 = vld [vmem:[#allocation16 + $0x78] sm:$0xff] }
 0x2fd   :  { %v3537_v29 = vpack.c.bf16 %v645_v26, %v644_v25  ;;  %v3623_v19 = vpack.c.bf16 %v896_v18, %v892_v17  ;;  %v899_v26 = vld [vmem:[#allocation16 + $0x90] sm:$0xff]  ;;  %v976_v20 = vld [vmem:[#allocation16 + $0x2f8] sm:$0xff] }
 0x2fe   :  { %3534 = vmatpush3.bf16.msra.mxu1 %v3533_v23  ;;  %v900_v23 = vld [vmem:[#allocation16 + $0x98] sm:$0xff]  ;;  %v3629_v28 = vpack.c.bf16 %v903_v27, %v899_v26  ;;  %v967_v17 = vld [vmem:[#allocation16 + $0x2b0] sm:$0xff] }
 0x2ff   :  { %3498 = vmatpush1.bf16.msra.mxu0 %v3497_v31  ;;  %3536 = vmatprep.subr.bf16.mxu1 %v3535_v24  ;;  %v646_v31 = vld [vmem:[%s5765_s7 + $0x50] sm:$0xff]  ;;  %v904_v24 = vld [vmem:[#allocation16 + $0xb8] sm:$0xff] }
 0x300   :  { %3500 = vmatprep.subr.bf16.mxu0 %v3499_v32  ;;  %v647_v32 = vld [vmem:[%s5765_s7 + $0x58] sm:$0xff]  ;;  %v3627_v25 = vpack.c.bf16 %v904_v24, %v900_v23  ;;  %v984_v26 = vld [vmem:[#allocation16 + $0x338] sm:$0xff] }
 0x301   :  { %v3541_v33 = vpack.c.bf16 %v647_v32, %v646_v31  ;;  %v907_v32 = vld [vmem:[#allocation16 + $0xd0] sm:$0xff] }
 0x302   :  { %3538 = vmatpush3.bf16.msra.mxu1 %v3537_v29  ;;  %v908_v29 = vld [vmem:[#allocation16 + $0xd8] sm:$0xff]  ;;  %v975_v23 = vld [vmem:[#allocation16 + $0x2f0] sm:$0xff] }
 0x303   :  { %3502 = vmatpush1.bf16.msra.mxu0 %v3501_v38  ;;  %3540 = vmatprep.subr.bf16.mxu1 %v3539_v30  ;;  %v5088_v38 = vsub.s32 1, %v5082_v36  ;;  %v912_v30 = vld [vmem:[#allocation16 + $0xf8] sm:$0xff] }
 0x304   :  { %3504 = vmatprep.subr.bf16.mxu0 %v3503_v39  ;;  %v3631_v31 = vpack.c.bf16 %v912_v30, %v908_v29  ;;  %v983_v29 = vld [vmem:[#allocation16 + $0x330] sm:$0xff] }
 0x306   :  { %3542 = vmatpush3.bf16.msra.mxu1 %v3541_v33  ;;  %v911_v33 = vld [vmem:[#allocation16 + $0xf0] sm:$0xff] }
 0x307   :  { %3506 = vmatpush1.bf16.msra.mxu0 %v3505_v44  ;;  %v3633_v34 = vpack.c.bf16 %v911_v33, %v907_v32  ;;  %v992_v32 = vld [vmem:[#allocation16 + $0x378] sm:$0xff] }
 0x308   :  { %3508 = vmatprep.subr.bf16.mxu0 %v3507_v45 }
 0x30b   :  { %3510 = vmatpush1.bf16.msra.mxu0 %v3509_v48  ;;  %v3543_v48 = vpack.c.bf16 %v665_v47, %v664_v46  ;;  %v928_v46 = vld [vmem:[#allocation16 + $0x178] sm:$0xff] }
 0x30c   :  { %3512 = vmatprep.subr.bf16.mxu0 %v3511_v51  ;;  %v666_v51 = vld [vmem:[%s5765_s7 + $0xf0] sm:$0xff] }
 0x30d   :  { %3544 = vmatprep.subr.bf16.mxu1 %v3543_v48  ;;  %v3547_v53 = vpack.c.bf16 %v667_v52, %v666_v51  ;;  %v923_v48 = vld [vmem:[#allocation16 + $0x150] sm:$0xff]  ;;  %v936_v51 = vld [vmem:[#allocation16 + $0x1b8] sm:$0xff] }
 0x30f   :  { %3514 = vmatpush1.bf16.msra.mxu0 %v3513_v54  ;;  %v650_v54 = vld [vmem:[%s5765_s7 + $0x70] sm:$0xff] }
 0x310   :  { %3516 = vmatprep.subr.bf16.mxu0 %v3515_v57  ;;  %v3549_v56 = vpack.c.bf16 %v651_v55, %v650_v54  ;;  %v935_v54 = vld [vmem:[#allocation16 + $0x1b0] sm:$0xff] }
 0x313   :  { %3518 = vmatpush1.bf16.msra.mxu0 %v3517_v60 }
 0x314   :  { %3552 = vmatprep.subr.bf16.mxu0 %v3551_v4  ;;  %v947_v4 = vld [vmem:[#allocation16 + $0x210] sm:$0xff] }
 0x315   :  { %v3653_v6 = vpack.c.bf16 %v951_v5, %v947_v4  ;;  %v885_v4 = vld [vmem:[#allocation16 + $0x20] sm:$0xff] }
 0x3c9   :  { %v518_v39 = vpop.f32.mrb[0].mxu0 }
 0x3ca   :  { %v525_v40 = vrot.slane %v518_v39, %v5085_v37  ;;  %v3450_v41 = vpop.f32.mrb[1].mxu0  ;;  %v530_v43 = vrot.slane %v518_v39, %v5088_v38  ;;  %v916_v39 = vld [vmem:[#allocation16 + $0x118] sm:$0xff] }
 0x3cc   :  { %v526_v42 = vmul.f32 %v525_v40, %v5000_v35  ;;  %v648_v35 = vld [vmem:[%s5765_s7 + $0x60] sm:$0xff] }
 0x3cd   :  { %v3545_v50 = vpack.c.bf16 %v649_v49, %v648_v35  ;;  %v920_v40 = vld [vmem:[#allocation16 + $0x138] sm:$0xff]  ;;  %v927_v35 = vld [vmem:[#allocation16 + $0x170] sm:$0xff] }
 0x3ce   :  { %v531_v44 = vadd.f32 %v530_v43, %v526_v42  ;;  %v3635_v41 = vpack.c.bf16 %v920_v40, %v916_v39  ;;  %v915_v42 = vld [vmem:[#allocation16 + $0x110] sm:$0xff]  ;;  %v3641_v49 = vpack.c.bf16 %v927_v35, %v923_v48 }
 0x3cf   :  { %3546 = vmatpush3.bf16.msra.mxu1 %v3545_v50  ;;  %v919_v43 = vld [vmem:[#allocation16 + $0x130] sm:$0xff]  ;;  %v932_v50 = vld [vmem:[#allocation16 + $0x198] sm:$0xff] }
 0x3d0   :  { %v532_v45 = vmax.f32 %v531_v44, 0.0  ;;  %3548 = vmatprep.subr.bf16.mxu1 %v3547_v53  ;;  %v3637_v44 = vpack.c.bf16 %v919_v43, %v915_v42  ;;  %v3643_v52 = vpack.c.bf16 %v936_v51, %v932_v50  ;;  %v931_v53 = vld [vmem:[#allocation16 + $0x190] sm:$0xff] }
 0x3d1   :  { %v3645_v55 = vpack.c.bf16 %v935_v54, %v931_v53 }
 0x3d2   :  { %630 = vmatmul.mubr.f32.vlgmr.msra.gmra.mrb[2].mxu0 %v532_v45  ;;  %v924_v45 = vld [vmem:[#allocation16 + $0x158] sm:$0xff] }
 0x3d3   :  { %852 = vmatprep.mubr.f32.mxu0 %v4655_v1  ;;  %3550 = vmatpush3.bf16.msra.mxu1 %v3549_v56  ;;  %v3639_v47 = vpack.c.bf16 %v928_v46, %v924_v45  ;;  %v940_v56 = vld [vmem:[#allocation16 + $0x1d8] sm:$0xff] }
 0x3d4   :  { %3554 = vmatpush1.bf16.msra.mxu0 %v3553_v7  ;;  %3620 = vmatprep.subr.bf16.mxu1 %v3619_v13  ;;  %v956_v7 = vld [vmem:[#allocation16 + $0x258] sm:$0xff] }
 0x3d5   :  { %3556 = vmatprep.subr.bf16.mxu0 %v3555_v11  ;;  %v3655_v9 = vpack.c.bf16 %v960_v8, %v956_v7  ;;  %v959_v11 = vld [vmem:[#allocation16 + $0x270] sm:$0xff]  ;;  %v964_v13 = vld [vmem:[#allocation16 + $0x298] sm:$0xff]  ;;  %v894_v7 = vld [vmem:[#allocation16 + $0x68] sm:$0xff] }
 0x3d6   :  { %v3657_v12 = vpack.c.bf16 %v959_v11, %v955_v10  ;;  %v3659_v15 = vpack.c.bf16 %v968_v14, %v964_v13  ;;  %v889_v11 = vld [vmem:[#allocation16 + $0x40] sm:$0xff]  ;;  %v898_v14 = vld [vmem:[#allocation16 + $0x88] sm:$0xff] }
 0x4a5   :  { %v5118_v57 = vpop.f32.mrb[2].mxu0 }
 0x4a6   :  { %v673_v58 = vmul.f32 %v5118_v57, %v5118_v57  ;;  %v5122_v59 = vpop.f32.mrb[3].mxu0 }
 0x4a7   :  { %v674_v60 = vmul.f32 %v5122_v59, %v5122_v59 }
 0x4a8   :  { %v677_v61 = vrot.slane %v673_v58, 6  ;;  %v944_v58 = vld [vmem:[#allocation16 + $0x1f8] sm:$0xff] }
 0x4a9   :  { %v678_v62 = vrot.slane %v674_v60, 6  ;;  %v3647_v60 = vpack.c.bf16 %v944_v58, %v940_v56 }
 0x4aa   :  { %v681_v0 = vsel %vm345_vm2, %v5118_v57, %v677_v61  ;;  %v939_v61 = vld [vmem:[#allocation16 + $0x1d0] sm:$0xff] }
 0x4ab   :  { %v682_v63 = vsel %vm345_vm2, %v5122_v59, %v678_v62  ;;  %v943_v62 = vld [vmem:[#allocation16 + $0x1f0] sm:$0xff] }
 0x4ac   :  { %747 = vmatprep.mubr.f32.mxu1 %v682_v63  ;;  %v3649_v63 = vpack.c.bf16 %v943_v62, %v939_v61  ;;  %v672_v62 = vld [vmem:[#allocation14] sm:$0x3] }
 0x4ad   :  { %748 = vmatmul.mubr.f32.vlgmr.msra.gmra.mrb[4].mxu1 %v681_v0  ;;  %v948_v0 = vld [vmem:[#allocation16 + $0x218] sm:$0xff] }
 0x4ae   :  { %3622 = vmatpush1.bf16.msra.mxu1 %v3621_v16  ;;  %v3651_v3 = vpack.c.bf16 %v952_v2, %v948_v0  ;;  %v963_v16 = vld [vmem:[#allocation16 + $0x290] sm:$0xff] }
 0x4af   :  { %3624 = vmatprep.subr.bf16.mxu1 %v3623_v19  ;;  %v3661_v18 = vpack.c.bf16 %v967_v17, %v963_v16  ;;  %v972_v19 = vld [vmem:[#allocation16 + $0x2d8] sm:$0xff] }
 0x4b0   :  { %v3663_v21 = vpack.c.bf16 %v976_v20, %v972_v19  ;;  %v901_v19 = vld [vmem:[#allocation16 + $0xa0] sm:$0xff]  ;;  %v906_v20 = vld [vmem:[#allocation16 + $0xc8] sm:$0xff] }
 0x4b2   :  { %3626 = vmatpush1.bf16.msra.mxu1 %v3625_v22  ;;  %v971_v22 = vld [vmem:[#allocation16 + $0x2d0] sm:$0xff] }
 0x4b3   :  { %3628 = vmatprep.subr.bf16.mxu1 %v3627_v25  ;;  %v3665_v24 = vpack.c.bf16 %v975_v23, %v971_v22  ;;  %v980_v25 = vld [vmem:[#allocation16 + $0x318] sm:$0xff] }
 0x4b4   :  { %v3667_v27 = vpack.c.bf16 %v984_v26, %v980_v25  ;;  %v909_v25 = vld [vmem:[#allocation16 + $0xe0] sm:$0xff]  ;;  %v914_v26 = vld [vmem:[#allocation16 + $0x108] sm:$0xff] }
 0x4b6   :  { %3630 = vmatpush1.bf16.msra.mxu1 %v3629_v28  ;;  %v979_v28 = vld [vmem:[#allocation16 + $0x310] sm:$0xff] }
 0x4b7   :  { %3632 = vmatprep.subr.bf16.mxu1 %v3631_v31  ;;  %v3669_v30 = vpack.c.bf16 %v983_v29, %v979_v28  ;;  %v988_v31 = vld [vmem:[#allocation16 + $0x358] sm:$0xff] }
 0x4b8   :  { %v3671_v33 = vpack.c.bf16 %v992_v32, %v988_v31  ;;  %v917_v31 = vld [vmem:[#allocation16 + $0x120] sm:$0xff]  ;;  %v922_v32 = vld [vmem:[#allocation16 + $0x148] sm:$0xff] }
 0x4ba   :  { %3634 = vmatpush1.bf16.msra.mxu1 %v3633_v34 }
 0x4bb   :  { %3636 = vmatprep.subr.bf16.mxu1 %v3635_v41 }
 0x4be   :  { %3638 = vmatpush1.bf16.msra.mxu1 %v3637_v44 }
 0x4bf   :  { %3640 = vmatprep.subr.bf16.mxu1 %v3639_v47 }
 0x4c2   :  { %3642 = vmatpush1.bf16.msra.mxu1 %v3641_v49 }
 0x4c3   :  { %3644 = vmatprep.subr.bf16.mxu1 %v3643_v52 }
 0x4c6   :  { %3646 = vmatpush1.bf16.msra.mxu1 %v3645_v55 }
 0x4c7   :  { %3648 = vmatprep.subr.bf16.mxu1 %v3647_v60 }
 0x4ca   :  { %3650 = vmatpush1.bf16.msra.mxu1 %v3649_v63 }
 0x4cb   :  { %3652 = vmatprep.subr.bf16.mxu1 %v3651_v3  ;;  %v881_v3 = vld [vmem:[#allocation16] sm:$0xff] }
 0x4ce   :  { %3654 = vmatpush1.bf16.msra.mxu1 %v3653_v6  ;;  %v890_v6 = vld [vmem:[#allocation16 + $0x48] sm:$0xff] }
 0x4cf   :  { %3656 = vmatprep.subr.bf16.mxu1 %v3655_v9  ;;  %v3557_v9 = vpack.c.bf16 %v885_v4, %v881_v3  ;;  %v3559_v10 = vpack.c.bf16 %v894_v7, %v890_v6  ;;  %v957_v3 = vld [vmem:[#allocation16 + $0x260] sm:$0xff]  ;;  %v962_v4 = vld [vmem:[#allocation16 + $0x288] sm:$0xff] }
 0x4d2   :  { %3658 = vmatpush1.bf16.msra.mxu1 %v3657_v12  ;;  %v893_v12 = vld [vmem:[#allocation16 + $0x60] sm:$0xff] }
 0x4d3   :  { %3660 = vmatprep.subr.bf16.mxu1 %v3659_v15  ;;  %v902_v15 = vld [vmem:[#allocation16 + $0xa8] sm:$0xff]  ;;  %v3561_v16 = vpack.c.bf16 %v893_v12, %v889_v11 }
 0x4d4   :  { %v3563_v17 = vpack.c.bf16 %v902_v15, %v898_v14  ;;  %v974_v11 = vld [vmem:[#allocation16 + $0x2e8] sm:$0xff]  ;;  %v969_v14 = vld [vmem:[#allocation16 + $0x2c0] sm:$0xff] }
 0x4d5   :  { %v973_v15 = vld [vmem:[#allocation16 + $0x2e0] sm:$0xff] }
 0x4d6   :  { %3662 = vmatpush1.bf16.msra.mxu1 %v3661_v18  ;;  %v897_v18 = vld [vmem:[#allocation16 + $0x80] sm:$0xff] }
 0x4d7   :  { %3664 = vmatprep.subr.bf16.mxu1 %v3663_v21  ;;  %v910_v21 = vld [vmem:[#allocation16 + $0xe8] sm:$0xff]  ;;  %v3565_v22 = vpack.c.bf16 %v901_v19, %v897_v18  ;;  %v3601_v18 = vpack.c.bf16 %v973_v15, %v969_v14  ;;  %v1183_v15 = vld [vmem:[%s5769_s11 + $0x100] sm:$0xff] }
 0x4d8   :  { %v3567_v23 = vpack.c.bf16 %v910_v21, %v906_v20  ;;  %v977_v20 = vld [vmem:[#allocation16 + $0x300] sm:$0xff] }
 0x4d9   :  { %v981_v21 = vld [vmem:[#allocation16 + $0x320] sm:$0xff] }
 0x4da   :  { %3666 = vmatpush1.bf16.msra.mxu1 %v3665_v24  ;;  %v905_v24 = vld [vmem:[#allocation16 + $0xc0] sm:$0xff] }
 0x4db   :  { %3668 = vmatprep.subr.bf16.mxu1 %v3667_v27  ;;  %v918_v27 = vld [vmem:[#allocation16 + $0x128] sm:$0xff]  ;;  %v3569_v28 = vpack.c.bf16 %v909_v25, %v905_v24  ;;  %v3605_v24 = vpack.c.bf16 %v981_v21, %v977_v20 }
 0x4dc   :  { %v3571_v29 = vpack.c.bf16 %v918_v27, %v914_v26  ;;  %v985_v26 = vld [vmem:[#allocation16 + $0x340] sm:$0xff] }
 0x4dd   :  { %v989_v27 = vld [vmem:[#allocation16 + $0x360] sm:$0xff] }
 0x4de   :  { %3670 = vmatpush1.bf16.msra.mxu1 %v3669_v30  ;;  %v913_v30 = vld [vmem:[#allocation16 + $0x100] sm:$0xff] }
 0x4df   :  { %3672 = vmatprep.subr.bf16.mxu1 %v3671_v33  ;;  %v926_v33 = vld [vmem:[#allocation16 + $0x168] sm:$0xff] }
 0x580   :  { %v3216_v34 = vpop.f32.mrb[4].mxu1 }
 0x581   :  { %v3217_v39 = vpop.f32.mrb[5].mxu1 }
 0x582   :  { %v3218_v40 = vadd.f32 %v3217_v39, %v3216_v34  ;;  %v3573_v34 = vpack.c.bf16 %v917_v31, %v913_v30  ;;  %v3575_v39 = vpack.c.bf16 %v926_v33, %v922_v32  ;;  %v991_v30 = vld [vmem:[#allocation16 + $0x370] sm:$0xff]  ;;  %v994_v32 = vld [vmem:[#allocation16 + $0x388] sm:$0xff] }
 0x583   :  { %v998_v33 = vld [vmem:[#allocation16 + $0x3a8] sm:$0xff] }
 0x584   :  { %v754_v41 = vsel %vm753_vm5, %v3218_v40, 0.0  ;;  %v763_v42 = vrot.slane %v3218_v40, 2  ;;  %v921_v40 = vld [vmem:[#allocation16 + $0x140] sm:$0xff] }
 0x585   :  { %v755_v43 = vrot.slane %v754_v41, 4 }
 0x586   :  { %v765_v44 = vsel %vm753_vm5, %v763_v42, 0.0  ;;  %v930_v42 = vld [vmem:[#allocation16 + $0x188] sm:$0xff] }
 0x587   :  { %v756_v45 = vadd.f32 %v755_v43, %v754_v41  ;;  %v766_v46 = vrot.slane %v765_v44, 4  ;;  %v925_v41 = vld [vmem:[#allocation16 + $0x160] sm:$0xff]  ;;  %v934_v43 = vld [vmem:[#allocation16 + $0x1a8] sm:$0xff] }
 0x589   :  { %v757_v47 = vrot.slane %v756_v45, 2  ;;  %v767_v48 = vadd.f32 %v766_v46, %v765_v44  ;;  %v3577_v44 = vpack.c.bf16 %v925_v41, %v921_v40  ;;  %v929_v46 = vld [vmem:[#allocation16 + $0x180] sm:$0xff]  ;;  %v1000_v40 = vld [vmem:[#allocation16 + $0x3b8] sm:$0xff] }
 0x58a   :  { %v993_v41 = vld [vmem:[#allocation16 + $0x380] sm:$0xff] }
 0x58b   :  { %v758_v35 = vadd.f32 %v757_v47, %v756_v45  ;;  %v768_v49 = vrot.slane %v767_v48, 2  ;;  %v3579_v45 = vpack.c.bf16 %v934_v43, %v930_v42  ;;  %v933_v47 = vld [vmem:[#allocation16 + $0x1a0] sm:$0xff] }
 0x58c   :  { %v997_v42 = vld [vmem:[#allocation16 + $0x3a0] sm:$0xff] }
 0x58d   :  { %v759_v50 = vrot.slane %v758_v35, 1  ;;  %v769_v51 = vadd.f32 %v768_v49, %v767_v48  ;;  %v938_v48 = vld [vmem:[#allocation16 + $0x1c8] sm:$0xff]  ;;  %v3581_v49 = vpack.c.bf16 %v933_v47, %v929_v46  ;;  %v999_v46 = vld [vmem:[#allocation16 + $0x3b0] sm:$0xff] }
 0x58f   :  { %v760_v52 = vadd.f32 %v759_v50, %v758_v35  ;;  %v770_v53 = vrot.slane %v769_v51, 1  ;;  %v942_v35 = vld [vmem:[#allocation16 + $0x1e8] sm:$0xff] }
 0x590   :  { %v3583_v50 = vpack.c.bf16 %v942_v35, %v938_v48  ;;  %v1002_v48 = vld [vmem:[#allocation16 + $0x3c8] sm:$0xff] }
 0x591   :  { %v761_v54 = vmul.f32 0.03125, %v760_v52  ;;  %v771_v55 = vadd.f32 %v770_v53, %v769_v51  ;;  %v937_v51 = vld [vmem:[#allocation16 + $0x1c0] sm:$0xff]  ;;  %v946_v53 = vld [vmem:[#allocation16 + $0x208] sm:$0xff] }
 0x592   :  { %v941_v52 = vld [vmem:[#allocation16 + $0x1e0] sm:$0xff]  ;;  %v1006_v35 = vld [vmem:[#allocation16 + $0x3e8] sm:$0xff] }
 0x593   :  { %v772_v56 = vmul.f32 0.03125, %v771_v55  ;;  %v773_v58 = vmul.f32 %v761_v54, %v761_v54  ;;  %v3585_v55 = vpack.c.bf16 %v941_v52, %v937_v51  ;;  %v1008_v51 = vld [vmem:[#allocation16 + $0x3f8] sm:$0xff]  ;;  %v1001_v52 = vld [vmem:[#allocation16 + $0x3c0] sm:$0xff] }
 0x595   :  { %v774_v60 = vsub.f32 %v772_v56, %v773_v58  ;;  %v945_v58 = vld [vmem:[#allocation16 + $0x200] sm:$0xff] }
 0x597   :  { %v775_v61 = vadd.f32 1e-05, %v774_v60  ;;  %v949_v60 = vld [vmem:[#allocation16 + $0x220] sm:$0xff] }
 0x599   :  { %4265 = vrsqrt.f32 %v775_v61  ;;  %v954_v61 = vld [vmem:[#allocation16 + $0x248] sm:$0xff] }
 0x5a3   :  { %v4266_v63 = vpop.eup %4265 }
 0x5a4   :  { %v777_v0 = vmul.f32 %v4266_v63, %v672_v62  ;;  %v3589_v63 = vpack.c.bf16 %v949_v60, %v945_v58  ;;  %v1007_v58 = vld [vmem:[#allocation16 + $0x3f0] sm:$0xff] }
 0x5a6   :  { %v778_v2 = vmul.f32 %v777_v0, %v761_v54  ;;  %v950_v54 = vld [vmem:[#allocation16 + $0x228] sm:$0xff] }
 0x5a7   :  { %v3587_v56 = vpack.c.bf16 %v950_v54, %v946_v53  ;;  %v1005_v53 = vld [vmem:[#allocation16 + $0x3e0] sm:$0xff] }
 0x5a8   :  { %v780_v5 = vrot.slane %v778_v2, 7  ;;  %v953_v2 = vld [vmem:[#allocation16 + $0x240] sm:$0xff] }
 0x5a9   :  { %v3593_v6 = vpack.c.bf16 %v957_v3, %v953_v2  ;;  %v1200_v2 = vld [vmem:[%s5769_s11 + $0x188] sm:$0xff] }
 0x5aa   :  { %v782_v8 = vsub.f32 %v672_v62, %v780_v5  ;;  %v958_v62 = vld [vmem:[#allocation16 + $0x268] sm:$0xff] }
 0x5ab   :  { %v966_v5 = vld [vmem:[#allocation16 + $0x2a8] sm:$0xff] }
 0x5ac   :  { %v783_v13 = vsel %vm447_vm4, %v777_v0, %v782_v8  ;;  %v3591_v0 = vpack.c.bf16 %v958_v62, %v954_v61  ;;  %v3595_v7 = vpack.c.bf16 %v966_v5, %v962_v4  ;;  %v961_v8 = vld [vmem:[#allocation16 + $0x280] sm:$0xff]  ;;  %v1167_v61 = vld [vmem:[%s5769_s11 + $0x80] sm:$0xff] }
 0x5ad   :  { %3144 = vmatmul.mubr.msk.f32.vlgmr.msra.gmra.mrb[4].mxu0 %vm784_vm6, %v783_v13  ;;  %v1168_v62 = vld [vmem:[%s5769_s11 + $0x88] sm:$0xff] }
 0x5ae   :  { %3558 = vmatpush1.bf16.msra.mxu0 %v3557_v9  ;;  %v965_v9 = vld [vmem:[#allocation16 + $0x2a0] sm:$0xff] }
 0x5af   :  { %3560 = vmatprep.subr.bf16.mxu0 %v3559_v10  ;;  %v970_v10 = vld [vmem:[#allocation16 + $0x2c8] sm:$0xff]  ;;  %v3597_v12 = vpack.c.bf16 %v965_v9, %v961_v8 }
 0x5b0   :  { %v3599_v13 = vpack.c.bf16 %v974_v11, %v970_v10 }
 0x5b2   :  { %3562 = vmatpush1.bf16.msra.mxu0 %v3561_v16  ;;  %v978_v16 = vld [vmem:[#allocation16 + $0x308] sm:$0xff] }
 0x5b3   :  { %3564 = vmatprep.subr.bf16.mxu0 %v3563_v17  ;;  %v982_v17 = vld [vmem:[#allocation16 + $0x328] sm:$0xff] }
 0x5b4   :  { %v3603_v19 = vpack.c.bf16 %v982_v17, %v978_v16  ;;  %v1170_v17 = vld [vmem:[%s5769_s11 + $0x98] sm:$0xff] }
 0x5b6   :  { %3566 = vmatpush1.bf16.msra.mxu0 %v3565_v22  ;;  %v986_v22 = vld [vmem:[#allocation16 + $0x348] sm:$0xff] }
 0x5b7   :  { %3568 = vmatprep.subr.bf16.mxu0 %v3567_v23  ;;  %v990_v23 = vld [vmem:[#allocation16 + $0x368] sm:$0xff] }
 0x5b8   :  { %v3607_v25 = vpack.c.bf16 %v990_v23, %v986_v22  ;;  %v1153_v23 = vld [vmem:[%s5769_s11 + $0x10] sm:$0xff] }
 0x5ba   :  { %3570 = vmatpush1.bf16.msra.mxu0 %v3569_v28  ;;  %v987_v28 = vld [vmem:[#allocation16 + $0x350] sm:$0xff] }
 0x5bb   :  { %3572 = vmatprep.subr.bf16.mxu0 %v3571_v29  ;;  %v3609_v29 = vpack.c.bf16 %v989_v27, %v985_v26  ;;  %v3673_v31 = vpack.c.bf16 %v991_v30, %v987_v28  ;;  %v1185_v28 = vld [vmem:[%s5769_s11 + $0x110] sm:$0xff]  ;;  %v1171_v30 = vld [vmem:[%s5769_s11 + $0xa0] sm:$0xff] }
 0x5bd   :  { %3674 = vmatpush1.bf16.msra.mxu1 %v3673_v31  ;;  %v1172_v31 = vld [vmem:[%s5769_s11 + $0xa8] sm:$0xff] }
 0x5be   :  { %3574 = vmatpush1.bf16.msra.mxu0 %v3573_v34  ;;  %v996_v34 = vld [vmem:[#allocation16 + $0x398] sm:$0xff] }
 0x5bf   :  { %3576 = vmatprep.subr.bf16.mxu0 %v3575_v39  ;;  %v3611_v39 = vpack.c.bf16 %v998_v33, %v994_v32  ;;  %v3675_v43 = vpack.c.bf16 %v1000_v40, %v996_v34  ;;  %v1203_v32 = vld [vmem:[%s5769_s11 + $0x1a0] sm:$0xff]  ;;  %v1204_v33 = vld [vmem:[%s5769_s11 + $0x1a8] sm:$0xff] }
 0x5c0   :  { %v1155_v40 = vld [vmem:[%s5769_s11 + $0x20] sm:$0xff] }
 0x5c1   :  { %3676 = vmatprep.subr.bf16.mxu1 %v3675_v43  ;;  %v3723_v43 = vpack.c.bf16 %v1204_v33, %v1203_v32  ;;  %v1181_v32 = vld [vmem:[%s5769_s11 + $0xf0] sm:$0xff]  ;;  %v1182_v33 = vld [vmem:[%s5769_s11 + $0xf8] sm:$0xff] }
 0x5c2   :  { %3578 = vmatpush1.bf16.msra.mxu0 %v3577_v44  ;;  %v3613_v44 = vpack.c.bf16 %v997_v42, %v993_v41  ;;  %v1156_v41 = vld [vmem:[%s5769_s11 + $0x28] sm:$0xff]  ;;  %v3691_v42 = vpack.c.bf16 %v1172_v31, %v1171_v30 }
 0x5c3   :  { %3580 = vmatprep.subr.bf16.mxu0 %v3579_v45  ;;  %v995_v45 = vld [vmem:[#allocation16 + $0x390] sm:$0xff]  ;;  %v1196_v30 = vld [vmem:[%s5769_s11 + $0x168] sm:$0xff] }
 0x5c4   :  { %v3677_v47 = vpack.c.bf16 %v999_v46, %v995_v45  ;;  %v1188_v45 = vld [vmem:[%s5769_s11 + $0x128] sm:$0xff]  ;;  %v1173_v46 = vld [vmem:[%s5769_s11 + $0xb0] sm:$0xff] }
 0x5c6   :  { %3582 = vmatpush1.bf16.msra.mxu0 %v3581_v49  ;;  %v1004_v49 = vld [vmem:[#allocation16 + $0x3d8] sm:$0xff]  ;;  %3678 = vmatpush1.bf16.msra.mxu1 %v3677_v47  ;;  %v1174_v47 = vld [vmem:[%s5769_s11 + $0xb8] sm:$0xff] }
 0x5c7   :  { %3584 = vmatprep.subr.bf16.mxu0 %v3583_v50  ;;  %v3615_v50 = vpack.c.bf16 %v1006_v35, %v1002_v48  ;;  %v3679_v54 = vpack.c.bf16 %v1008_v51, %v1004_v49  ;;  %v1205_v48 = vld [vmem:[%s5769_s11 + $0x1b0] sm:$0xff]  ;;  %v1206_v35 = vld [vmem:[%s5769_s11 + $0x1b8] sm:$0xff]  ;;  %v3693_v49 = vpack.c.bf16 %v1156_v41, %v1155_v40 }
 0x5c8   :  { %v1157_v51 = vld [vmem:[%s5769_s11 + $0x30] sm:$0xff]  ;;  %v1214_v40 = vld [vmem:[%s5769_s11 + $0x1f8] sm:$0xff] }
 0x5c9   :  { %3680 = vmatprep.subr.bf16.mxu1 %v3679_v54  ;;  %v3727_v54 = vpack.c.bf16 %v1206_v35, %v1205_v48  ;;  %v1165_v41 = vld [vmem:[%s5769_s11 + $0x70] sm:$0xff] }
 0x5ca   :  { %3586 = vmatpush1.bf16.msra.mxu0 %v3585_v55  ;;  %v3617_v55 = vpack.c.bf16 %v1005_v53, %v1001_v52  ;;  %v1158_v52 = vld [vmem:[%s5769_s11 + $0x38] sm:$0xff]  ;;  %v3695_v53 = vpack.c.bf16 %v1174_v47, %v1173_v46 }
 0x5cb   :  { %3588 = vmatprep.subr.bf16.mxu0 %v3587_v56  ;;  %v1003_v56 = vld [vmem:[#allocation16 + $0x3d0] sm:$0xff] }
 0x5cc   :  { %v3681_v60 = vpack.c.bf16 %v1007_v58, %v1003_v56  ;;  %v1190_v56 = vld [vmem:[%s5769_s11 + $0x138] sm:$0xff]  ;;  %v1175_v58 = vld [vmem:[%s5769_s11 + $0xc0] sm:$0xff] }
 0x5cd   :  { %v1198_v46 = vld [vmem:[%s5769_s11 + $0x178] sm:$0xff] }
 0x5ce   :  { %3590 = vmatpush1.bf16.msra.mxu0 %v3589_v63  ;;  %3682 = vmatpush1.bf16.msra.mxu1 %v3681_v60  ;;  %v1199_v63 = vld [vmem:[%s5769_s11 + $0x180] sm:$0xff]  ;;  %v1176_v60 = vld [vmem:[%s5769_s11 + $0xc8] sm:$0xff] }
 0x5cf   :  { %3592 = vmatprep.subr.bf16.mxu0 %v3591_v0  ;;  %v3683_v0 = vpack.c.bf16 %v1168_v62, %v1167_v61  ;;  %v3715_v3 = vpack.c.bf16 %v1200_v2, %v1199_v63  ;;  %v1207_v61 = vld [vmem:[%s5769_s11 + $0x1c0] sm:$0xff]  ;;  %v1208_v62 = vld [vmem:[%s5769_s11 + $0x1c8] sm:$0xff]  ;;  %v3697_v63 = vpack.c.bf16 %v1158_v52, %v1157_v51 }
 0x5d0   :  { %v1159_v2 = vld [vmem:[%s5769_s11 + $0x40] sm:$0xff] }
 0x5d1   :  { %3716 = vmatprep.subr.bf16.mxu1 %v3715_v3  ;;  %v1160_v3 = vld [vmem:[%s5769_s11 + $0x48] sm:$0xff] }
 0x5d2   :  { %3594 = vmatpush1.bf16.msra.mxu0 %v3593_v6 }
 0x5d3   :  { %3596 = vmatprep.subr.bf16.mxu0 %v3595_v7 }
 0x5d6   :  { %3598 = vmatpush1.bf16.msra.mxu0 %v3597_v12  ;;  %v1151_v12 = vld [vmem:[%s5769_s11] sm:$0xff] }
 0x5d7   :  { %3600 = vmatprep.subr.bf16.mxu0 %v3599_v13  ;;  %v1152_v13 = vld [vmem:[%s5769_s11 + $0x8] sm:$0xff] }
 0x5d8   :  { %v3685_v21 = vpack.c.bf16 %v1152_v13, %v1151_v12  ;;  %v3701_v12 = vpack.c.bf16 %v1160_v3, %v1159_v2  ;;  %v1216_v2 = vld [vmem:[#allocation17 + $0x8] sm:$0xff]  ;;  %v1215_v3 = vld [vmem:[#allocation17] sm:$0xff] }
 0x5da   :  { %3602 = vmatpush1.bf16.msra.mxu0 %v3601_v18  ;;  %v1201_v18 = vld [vmem:[%s5769_s11 + $0x190] sm:$0xff] }
 0x5db   :  { %3604 = vmatprep.subr.bf16.mxu0 %v3603_v19  ;;  %v1202_v19 = vld [vmem:[%s5769_s11 + $0x198] sm:$0xff] }
 0x5dc   :  { %v3719_v27 = vpack.c.bf16 %v1202_v19, %v1201_v18 }
 0x5de   :  { %3606 = vmatpush1.bf16.msra.mxu0 %v3605_v24  ;;  %v1154_v24 = vld [vmem:[%s5769_s11 + $0x18] sm:$0xff] }
 0x5df   :  { %3608 = vmatprep.subr.bf16.mxu0 %v3607_v25  ;;  %v3689_v34 = vpack.c.bf16 %v1154_v24, %v1153_v23  ;;  %v1212_v24 = vld [vmem:[%s5769_s11 + $0x1e8] sm:$0xff] }
 0x5e2   :  { %3610 = vmatpush1.bf16.msra.mxu0 %v3609_v29  ;;  %v1186_v29 = vld [vmem:[%s5769_s11 + $0x118] sm:$0xff] }
 0x5e3   :  { %3612 = vmatprep.subr.bf16.mxu0 %v3611_v39  ;;  %v3721_v39 = vpack.c.bf16 %v1186_v29, %v1185_v28  ;;  %v1195_v29 = vld [vmem:[%s5769_s11 + $0x160] sm:$0xff] }
 0x5e4   :  { %v3741_v31 = vpack.c.bf16 %v1196_v30, %v1195_v29  ;;  %v1651_v30 = vld [vmem:[#allocation20 + $0x190] sm:$0xff] }
 0x5e6   :  { %3614 = vmatpush1.bf16.msra.mxu0 %v3613_v44  ;;  %v1187_v44 = vld [vmem:[%s5769_s11 + $0x120] sm:$0xff] }
 0x5e7   :  { %3616 = vmatprep.subr.bf16.mxu0 %v3615_v50  ;;  %v3725_v50 = vpack.c.bf16 %v1188_v45, %v1187_v44  ;;  %v1197_v45 = vld [vmem:[%s5769_s11 + $0x170] sm:$0xff] }
 0x5e8   :  { %v3745_v47 = vpack.c.bf16 %v1198_v46, %v1197_v45  ;;  %v1675_v46 = vld [vmem:[#allocation20 + $0x250] sm:$0xff] }
 0x5ea   :  { %3618 = vmatpush1.bf16.msra.mxu0 %v3617_v55  ;;  %v1189_v55 = vld [vmem:[%s5769_s11 + $0x130] sm:$0xff] }
 0x5eb   :  { %3684 = vmatprep.subr.bf16.mxu0 %v3683_v0  ;;  %v3729_v0 = vpack.c.bf16 %v1190_v56, %v1189_v55 }
 0x680   :  { %v854_v4 = vpop.f32.mrb[4].mxu0 }
 0x681   :  { %v862_v5 = vrot.slane %v854_v4, %v5085_v37  ;;  %v856_v6 = vpop.f32.mrb[5].mxu0  ;;  %v872_v9 = vrot.slane %v854_v4, %v5088_v38  ;;  %v3699_v4 = vpack.c.bf16 %v1176_v60, %v1175_v58 }
 0x682   :  { %v866_v7 = vrot.slane %v856_v6, %v5085_v37  ;;  %v876_v11 = vrot.slane %v856_v6, %v5088_v38  ;;  %v1191_v6 = vld [vmem:[%s5769_s11 + $0x140] sm:$0xff] }
 0x683   :  { %v867_v8 = vmul.f32 %v862_v5, %v5118_v57  ;;  %v1184_v57 = vld [vmem:[%s5769_s11 + $0x108] sm:$0xff]  ;;  %v3731_v5 = vpack.c.bf16 %v1208_v62, %v1207_v61 }
 0x684   :  { %v868_v10 = vmul.f32 %v866_v7, %v5122_v59  ;;  %v1169_v59 = vld [vmem:[%s5769_s11 + $0x90] sm:$0xff]  ;;  %v3717_v22 = vpack.c.bf16 %v1184_v57, %v1183_v15  ;;  %v1192_v7 = vld [vmem:[%s5769_s11 + $0x148] sm:$0xff] }
 0x685   :  { %v877_v14 = vadd.f32 %v872_v9, %v867_v8  ;;  %v3687_v26 = vpack.c.bf16 %v1170_v17, %v1169_v59  ;;  %v1177_v8 = vld [vmem:[%s5769_s11 + $0xd0] sm:$0xff]  ;;  %v1178_v9 = vld [vmem:[%s5769_s11 + $0xd8] sm:$0xff]  ;;  %v3733_v13 = vpack.c.bf16 %v1192_v7, %v1191_v6 }
 0x686   :  { %v878_v16 = vadd.f32 %v876_v11, %v868_v10  ;;  %v1209_v10 = vld [vmem:[%s5769_s11 + $0x1d0] sm:$0xff]  ;;  %v1210_v11 = vld [vmem:[%s5769_s11 + $0x1d8] sm:$0xff]  ;;  %v3703_v15 = vpack.c.bf16 %v1178_v9, %v1177_v8 }
 0x687   :  { %v879_v25 = vmax.f32 %v877_v14, 0.0  ;;  %v1161_v14 = vld [vmem:[%s5769_s11 + $0x50] sm:$0xff]  ;;  %v3735_v57 = vpack.c.bf16 %v1210_v11, %v1209_v10  ;;  %v1162_v59 = vld [vmem:[%s5769_s11 + $0x58] sm:$0xff]  ;;  %v1616_v11 = vld [vmem:[#allocation20 + $0x78] sm:$0xff] }
 0x688   :  { %v880_v20 = vmax.f32 %v878_v16, 0.0  ;;  %v1193_v16 = vld [vmem:[%s5769_s11 + $0x150] sm:$0xff]  ;;  %v1194_v17 = vld [vmem:[%s5769_s11 + $0x158] sm:$0xff]  ;;  %v3705_v18 = vpack.c.bf16 %v1162_v59, %v1161_v14  ;;  %v1628_v59 = vld [vmem:[#allocation20 + $0xd8] sm:$0xff] }
 0x689   :  { %v3737_v19 = vpack.c.bf16 %v1194_v17, %v1193_v16  ;;  %v1610_v6 = vld [vmem:[#allocation20 + $0x48] sm:$0xff]  ;;  %v1603_v8 = vld [vmem:[#allocation20 + $0x10] sm:$0xff]  ;;  %v1609_v9 = vld [vmem:[#allocation20 + $0x40] sm:$0xff] }
 0x68a   :  { %1073 = vmatprep.mubr.f32.mxu0 %v880_v20  ;;  %1144 = vmatprep.mubr.f32.mxu1 %v880_v20  ;;  %v1179_v20 = vld [vmem:[%s5769_s11 + $0xe0] sm:$0xff]  ;;  %v3877_v10 = vpack.c.bf16 %v1609_v9, %v1603_v8  ;;  %v1634_v16 = vld [vmem:[#allocation20 + $0x108] sm:$0xff] }
 0x68b   :  { %1074 = vmatmul.mubr.f32.vlgmr.msra.gmra.mrb[6].mxu0 %v879_v25  ;;  %1145 = vmatmul.mubr.f32.vlgmr.msra.gmra.mrb[6].mxu1 %v879_v25  ;;  %v1163_v25 = vld [vmem:[%s5769_s11 + $0x60] sm:$0xff]  ;;  %v3883_v17 = vpack.c.bf16 %v1634_v16, %v1628_v59 }
 0x68c   :  { %3686 = vmatpush3.bf16.msra.mxu0 %v3685_v21  ;;  %3718 = vmatpush3.bf16.msra.mxu1 %v3717_v22  ;;  %v1180_v21 = vld [vmem:[%s5769_s11 + $0xe8] sm:$0xff]  ;;  %v1211_v22 = vld [vmem:[%s5769_s11 + $0x1e0] sm:$0xff] }
 0x68d   :  { %3688 = vmatprep.subr.bf16.mxu0 %v3687_v26  ;;  %3720 = vmatprep.subr.bf16.mxu1 %v3719_v27  ;;  %v3707_v23 = vpack.c.bf16 %v1180_v21, %v1179_v20  ;;  %v1164_v26 = vld [vmem:[%s5769_s11 + $0x68] sm:$0xff]  ;;  %v3739_v27 = vpack.c.bf16 %v1212_v24, %v1211_v22  ;;  %v1615_v14 = vld [vmem:[#allocation20 + $0x70] sm:$0xff]  ;;  %v1646_v22 = vld [vmem:[#allocation20 + $0x168] sm:$0xff] }
 0x68e   :  { %v3709_v28 = vpack.c.bf16 %v1164_v26, %v1163_v25  ;;  %v1640_v21 = vld [vmem:[#allocation20 + $0x138] sm:$0xff]  ;;  %v1639_v24 = vld [vmem:[#allocation20 + $0x130] sm:$0xff]  ;;  %v1645_v25 = vld [vmem:[#allocation20 + $0x160] sm:$0xff] }
 0x68f   :  { %v3889_v26 = vpack.c.bf16 %v1645_v25, %v1639_v24  ;;  %v1724_v9 = vld [vmem:[#allocation20 + $0x3d8] sm:$0xff]  ;;  %v1735_v16 = vld [vmem:[#allocation20 + $0x430] sm:$0xff] }
 0x690   :  { %3690 = vmatpush3.bf16.msra.mxu0 %v3689_v34  ;;  %3722 = vmatpush3.bf16.msra.mxu1 %v3721_v39  ;;  %v1213_v34 = vld [vmem:[%s5769_s11 + $0x1f0] sm:$0xff]  ;;  %v3711_v39 = vpack.c.bf16 %v1182_v33, %v1181_v32  ;;  %v1664_v33 = vld [vmem:[#allocation20 + $0x1f8] sm:$0xff] }
 0x691   :  { %3692 = vmatprep.subr.bf16.mxu0 %v3691_v42  ;;  %3724 = vmatprep.subr.bf16.mxu1 %v3723_v43  ;;  %v1166_v42 = vld [vmem:[%s5769_s11 + $0x78] sm:$0xff]  ;;  %v3743_v43 = vpack.c.bf16 %v1214_v40, %v1213_v34  ;;  %v1760_v25 = vld [vmem:[#allocation20 + $0x4f8] sm:$0xff] }
 0x692   :  { %v3713_v44 = vpack.c.bf16 %v1166_v42, %v1165_v41  ;;  %v1670_v34 = vld [vmem:[#allocation20 + $0x228] sm:$0xff]  ;;  %v1663_v40 = vld [vmem:[#allocation20 + $0x1f0] sm:$0xff]  ;;  %v1669_v41 = vld [vmem:[#allocation20 + $0x220] sm:$0xff] }
 0x693   :  { %v3897_v42 = vpack.c.bf16 %v1669_v41, %v1663_v40 }
 0x694   :  { %3694 = vmatpush3.bf16.msra.mxu0 %v3693_v49  ;;  %3726 = vmatpush3.bf16.msra.mxu1 %v3725_v50 }
 0x695   :  { %3696 = vmatprep.subr.bf16.mxu0 %v3695_v53  ;;  %3728 = vmatprep.subr.bf16.mxu1 %v3727_v54 }
 0x698   :  { %3698 = vmatpush3.bf16.msra.mxu0 %v3697_v63  ;;  %3730 = vmatpush3.bf16.msra.mxu1 %v3729_v0 }
 0x699   :  { %3700 = vmatprep.subr.bf16.mxu0 %v3699_v4  ;;  %3732 = vmatprep.subr.bf16.mxu1 %v3731_v5  ;;  %v1218_v4 = vld [vmem:[#allocation17 + $0x18] sm:$0xff] }
 0x69a   :  { %v1604_v5 = vld [vmem:[#allocation20 + $0x18] sm:$0xff] }
 0x69b   :  { %v3875_v7 = vpack.c.bf16 %v1610_v6, %v1604_v5  ;;  %v1711_v6 = vld [vmem:[#allocation20 + $0x370] sm:$0xff] }
 0x69c   :  { %3702 = vmatpush3.bf16.msra.mxu0 %v3701_v12  ;;  %3734 = vmatpush3.bf16.msra.mxu1 %v3733_v13  ;;  %v1622_v12 = vld [vmem:[#allocation20 + $0xa8] sm:$0xff] }
 0x69d   :  { %3704 = vmatprep.subr.bf16.mxu0 %v3703_v15  ;;  %3736 = vmatprep.subr.bf16.mxu1 %v3735_v57  ;;  %v3879_v13 = vpack.c.bf16 %v1622_v12, %v1616_v11  ;;  %v1621_v15 = vld [vmem:[#allocation20 + $0xa0] sm:$0xff]  ;;  %v1723_v12 = vld [vmem:[#allocation20 + $0x3d0] sm:$0xff] }
 0x69e   :  { %v3881_v57 = vpack.c.bf16 %v1621_v15, %v1615_v14  ;;  %v1736_v15 = vld [vmem:[#allocation20 + $0x438] sm:$0xff] }
 0x6a0   :  { %3706 = vmatpush3.bf16.msra.mxu0 %v3705_v18  ;;  %3738 = vmatpush3.bf16.msra.mxu1 %v3737_v19  ;;  %v1627_v18 = vld [vmem:[#allocation20 + $0xd0] sm:$0xff]  ;;  %v1633_v19 = vld [vmem:[#allocation20 + $0x100] sm:$0xff] }
 0x6a1   :  { %3708 = vmatprep.subr.bf16.mxu0 %v3707_v23  ;;  %3740 = vmatprep.subr.bf16.mxu1 %v3739_v27  ;;  %v3885_v20 = vpack.c.bf16 %v1633_v19, %v1627_v18  ;;  %v3887_v23 = vpack.c.bf16 %v1646_v22, %v1640_v21  ;;  %v1652_v27 = vld [vmem:[#allocation20 + $0x198] sm:$0xff]  ;;  %v1747_v22 = vld [vmem:[#allocation20 + $0x490] sm:$0xff] }
 0x6a2   :  { %v1748_v19 = vld [vmem:[#allocation20 + $0x498] sm:$0xff] }
 0x6a4   :  { %3710 = vmatpush3.bf16.msra.mxu0 %v3709_v28  ;;  %3742 = vmatpush3.bf16.msra.mxu1 %v3741_v31  ;;  %v1658_v28 = vld [vmem:[#allocation20 + $0x1c8] sm:$0xff]  ;;  %v1657_v31 = vld [vmem:[#allocation20 + $0x1c0] sm:$0xff] }
 0x6a5   :  { %3712 = vmatprep.subr.bf16.mxu0 %v3711_v39  ;;  %3744 = vmatprep.subr.bf16.mxu1 %v3743_v43  ;;  %v3891_v29 = vpack.c.bf16 %v1658_v28, %v1652_v27  ;;  %v3893_v32 = vpack.c.bf16 %v1657_v31, %v1651_v30  ;;  %v3895_v39 = vpack.c.bf16 %v1670_v34, %v1664_v33  ;;  %v1676_v43 = vld [vmem:[#allocation20 + $0x258] sm:$0xff]  ;;  %v1759_v28 = vld [vmem:[#allocation20 + $0x4f0] sm:$0xff] }
 0x6a8   :  { %3714 = vmatpush3.bf16.msra.mxu0 %v3713_v44  ;;  %3746 = vmatpush3.bf16.msra.mxu1 %v3745_v47  ;;  %v1682_v44 = vld [vmem:[#allocation20 + $0x288] sm:$0xff]  ;;  %v1681_v47 = vld [vmem:[#allocation20 + $0x280] sm:$0xff] }
 0x6a9   :  { %1415 = vmatprep.subr.mxu0 %v1216_v2  ;;  %3876 = vmatprep.subr.bf16.mxu1 %v3875_v7  ;;  %v3899_v45 = vpack.c.bf16 %v1682_v44, %v1676_v43  ;;  %v1717_v7 = vld [vmem:[#allocation20 + $0x3a0] sm:$0xff] }
 0x6aa   :  { %v3913_v8 = vpack.c.bf16 %v1717_v7, %v1711_v6 }
 0x75e   :  { %v5329_v48 = vpop.f32.mrb[6].mxu0  ;;  %v5331_v35 = vpop.f32.mrb[6].mxu1 }
 0x75f   :  { %v1220_v49 = vmul.f32 %v5329_v48, %v5329_v48  ;;  %v1222_v50 = vmul.f32 %v5331_v35, %v5331_v35  ;;  %v5337_v51 = vpop.f32.mrb[7].mxu0  ;;  %v5339_v52 = vpop.f32.mrb[7].mxu1 }
 0x760   :  { %v1221_v53 = vmul.f32 %v5337_v51, %v5337_v51  ;;  %v1223_v54 = vmul.f32 %v5339_v52, %v5339_v52 }
 0x761   :  { %v1228_v55 = vrot.slane %v1220_v49, 6  ;;  %v1230_v56 = vrot.slane %v1222_v50, 6  ;;  %v3901_v49 = vpack.c.bf16 %v1681_v47, %v1675_v46  ;;  %v1688_v50 = vld [vmem:[#allocation20 + $0x2b8] sm:$0xff] }
 0x762   :  { %v1229_v58 = vrot.slane %v1221_v53, 6  ;;  %v1231_v60 = vrot.slane %v1223_v54, 6  ;;  %v1694_v53 = vld [vmem:[#allocation20 + $0x2e8] sm:$0xff] }
 0x763   :  { %v1236_v63 = vsel %vm345_vm2, %v5329_v48, %v1228_v55  ;;  %v1238_v0 = vsel %vm345_vm2, %v5331_v35, %v1230_v56  ;;  %v3903_v54 = vpack.c.bf16 %v1694_v53, %v1688_v50  ;;  %v1687_v55 = vld [vmem:[#allocation20 + $0x2b0] sm:$0xff]  ;;  %v1693_v56 = vld [vmem:[#allocation20 + $0x2e0] sm:$0xff] }
 0x764   :  { %v1237_v61 = vsel %vm345_vm2, %v5337_v51, %v1229_v58  ;;  %v1239_v62 = vsel %vm345_vm2, %v5339_v52, %v1231_v60  ;;  %v3905_v58 = vpack.c.bf16 %v1693_v56, %v1687_v55  ;;  %v1700_v60 = vld [vmem:[#allocation20 + $0x318] sm:$0xff] }
 0x765   :  { %1304 = vmatprep.mubr.f32.mxu0 %v1237_v61  ;;  %1374 = vmatprep.mubr.f32.mxu1 %v1239_v62  ;;  %v1706_v61 = vld [vmem:[#allocation20 + $0x348] sm:$0xff] }
 0x766   :  { %1305 = vmatmul.mubr.f32.vlgmr.msra.gmra.mrb[8].mxu0 %v1236_v63  ;;  %1375 = vmatmul.mubr.f32.vlgmr.msra.gmra.mrb[8].mxu1 %v1238_v0  ;;  %v3907_v62 = vpack.c.bf16 %v1706_v61, %v1700_v60  ;;  %v1699_v63 = vld [vmem:[#allocation20 + $0x310] sm:$0xff]  ;;  %v1705_v0 = vld [vmem:[#allocation20 + $0x340] sm:$0xff] }
 0x767   :  { %1479 = vmatprep.mubr.f32.mxu0 %v4655_v1  ;;  %1416 = vmatpush1.msra.mxu0 %v1215_v3  ;;  %v3909_v2 = vpack.c.bf16 %v1705_v0, %v1699_v63  ;;  %v1712_v3 = vld [vmem:[#allocation20 + $0x378] sm:$0xff] }
 0x768   :  { %1486 = vmatprep.subr.mxu0 %v1218_v4  ;;  %3878 = vmatpush1.bf16.msra.mxu1 %v3877_v10  ;;  %v1718_v4 = vld [vmem:[#allocation20 + $0x3a8] sm:$0xff] }
 0x769   :  { %3880 = vmatprep.subr.bf16.mxu1 %v3879_v13  ;;  %v3911_v5 = vpack.c.bf16 %v1718_v4, %v1712_v3  ;;  %v1730_v10 = vld [vmem:[#allocation20 + $0x408] sm:$0xff]  ;;  %v1729_v13 = vld [vmem:[#allocation20 + $0x400] sm:$0xff]  ;;  %v1219_v4 = vld [vmem:[#allocation19] sm:$0x3] }
 0x76a   :  { %v3915_v11 = vpack.c.bf16 %v1730_v10, %v1724_v9  ;;  %v3917_v14 = vpack.c.bf16 %v1729_v13, %v1723_v12  ;;  %v1602_v9 = vld [vmem:[#allocation20 + $0x8] sm:$0xff]  ;;  %v1608_v10 = vld [vmem:[#allocation20 + $0x38] sm:$0xff] }
 0x76b   :  { %v1217_v12 = vld [vmem:[#allocation17 + $0x10] sm:$0xff]  ;;  %v3747_v13 = vpack.c.bf16 %v1608_v10, %v1602_v9  ;;  %v1716_v10 = vld [vmem:[#allocation20 + $0x398] sm:$0xff] }
 0x76c   :  { %3882 = vmatpush1.bf16.msra.mxu1 %v3881_v57  ;;  %v1742_v57 = vld [vmem:[#allocation20 + $0x468] sm:$0xff] }
 0x76d   :  { %3884 = vmatprep.subr.bf16.mxu1 %v3883_v17  ;;  %v3919_v59 = vpack.c.bf16 %v1742_v57, %v1736_v15  ;;  %v1741_v17 = vld [vmem:[#allocation20 + $0x460] sm:$0xff]  ;;  %v1607_v15 = vld [vmem:[#allocation20 + $0x30] sm:$0xff]  ;;  %v1710_v9 = vld [vmem:[#allocation20 + $0x368] sm:$0xff] }
 0x76e   :  { %v3921_v18 = vpack.c.bf16 %v1741_v17, %v1735_v16  ;;  %v1620_v16 = vld [vmem:[#allocation20 + $0x98] sm:$0xff] }
 0x770   :  { %3886 = vmatpush1.bf16.msra.mxu1 %v3885_v20  ;;  %v1754_v20 = vld [vmem:[#allocation20 + $0x4c8] sm:$0xff] }
 0x771   :  { %3888 = vmatprep.subr.bf16.mxu1 %v3887_v23  ;;  %v3923_v21 = vpack.c.bf16 %v1754_v20, %v1748_v19  ;;  %v1753_v23 = vld [vmem:[#allocation20 + $0x4c0] sm:$0xff]  ;;  %v1619_v20 = vld [vmem:[#allocation20 + $0x90] sm:$0xff] }
 0x772   :  { %v3925_v24 = vpack.c.bf16 %v1753_v23, %v1747_v22  ;;  %v1613_v19 = vld [vmem:[#allocation20 + $0x60] sm:$0xff]  ;;  %v1632_v22 = vld [vmem:[#allocation20 + $0xf8] sm:$0xff] }
 0x773   :  { %v3753_v23 = vpack.c.bf16 %v1619_v20, %v1613_v19  ;;  %v1734_v19 = vld [vmem:[#allocation20 + $0x428] sm:$0xff]  ;;  %v1740_v20 = vld [vmem:[#allocation20 + $0x458] sm:$0xff] }
 0x774   :  { %3890 = vmatpush1.bf16.msra.mxu1 %v3889_v26  ;;  %v1766_v26 = vld [vmem:[#allocation20 + $0x528] sm:$0xff] }
 0x775   :  { %3892 = vmatprep.subr.bf16.mxu1 %v3891_v29  ;;  %v3927_v27 = vpack.c.bf16 %v1766_v26, %v1760_v25  ;;  %v1765_v29 = vld [vmem:[#allocation20 + $0x520] sm:$0xff]  ;;  %v1631_v26 = vld [vmem:[#allocation20 + $0xf0] sm:$0xff] }
 0x776   :  { %v3929_v30 = vpack.c.bf16 %v1765_v29, %v1759_v28  ;;  %v1625_v25 = vld [vmem:[#allocation20 + $0xc0] sm:$0xff]  ;;  %v1644_v28 = vld [vmem:[#allocation20 + $0x158] sm:$0xff] }
 0x777   :  { %v3757_v29 = vpack.c.bf16 %v1631_v26, %v1625_v25  ;;  %v1746_v25 = vld [vmem:[#allocation20 + $0x488] sm:$0xff]  ;;  %v1752_v26 = vld [vmem:[#allocation20 + $0x4b8] sm:$0xff] }
 0x778   :  { %3894 = vmatpush1.bf16.msra.mxu1 %v3893_v32 }
 0x779   :  { %3896 = vmatprep.subr.bf16.mxu1 %v3895_v39 }
 0x77c   :  { %3898 = vmatpush1.bf16.msra.mxu1 %v3897_v42 }
 0x77d   :  { %3900 = vmatprep.subr.bf16.mxu1 %v3899_v45 }
 0x780   :  { %3902 = vmatpush1.bf16.msra.mxu1 %v3901_v49 }
 0x781   :  { %3904 = vmatprep.subr.bf16.mxu1 %v3903_v54 }
 0x784   :  { %3906 = vmatpush1.bf16.msra.mxu1 %v3905_v58 }
 0x785   :  { %3908 = vmatprep.subr.bf16.mxu1 %v3907_v62 }
 0x788   :  { %3910 = vmatpush1.bf16.msra.mxu1 %v3909_v2 }
 0x789   :  { %3912 = vmatprep.subr.bf16.mxu1 %v3911_v5 }
 0x78c   :  { %3914 = vmatpush1.bf16.msra.mxu1 %v3913_v8 }
 0x78d   :  { %3916 = vmatprep.subr.bf16.mxu1 %v3915_v11 }
 0x790   :  { %3918 = vmatpush1.bf16.msra.mxu1 %v3917_v14  ;;  %v1601_v14 = vld [vmem:[#allocation20] sm:$0xff] }
 0x791   :  { %3920 = vmatprep.subr.bf16.mxu1 %v3919_v59  ;;  %v1614_v59 = vld [vmem:[#allocation20 + $0x68] sm:$0xff]  ;;  %v3749_v17 = vpack.c.bf16 %v1607_v15, %v1601_v14  ;;  %v1715_v14 = vld [vmem:[#allocation20 + $0x390] sm:$0xff] }
 0x792   :  { %v1722_v15 = vld [vmem:[#allocation20 + $0x3c8] sm:$0xff] }
 0x794   :  { %3922 = vmatpush1.bf16.msra.mxu1 %v3921_v18  ;;  %v3751_v18 = vpack.c.bf16 %v1620_v16, %v1614_v59 }
 0x795   :  { %3924 = vmatprep.subr.bf16.mxu1 %v3923_v21  ;;  %v1626_v21 = vld [vmem:[#allocation20 + $0xc8] sm:$0xff] }
 0x798   :  { %3926 = vmatpush1.bf16.msra.mxu1 %v3925_v24  ;;  %v3755_v24 = vpack.c.bf16 %v1632_v22, %v1626_v21  ;;  %v3791_v22 = vpack.c.bf16 %v1740_v20, %v1734_v19 }
 0x799   :  { %3928 = vmatprep.subr.bf16.mxu1 %v3927_v27  ;;  %v1638_v27 = vld [vmem:[#allocation20 + $0x128] sm:$0xff] }
 0x79c   :  { %3930 = vmatpush1.bf16.msra.mxu1 %v3929_v30  ;;  %v3759_v30 = vpack.c.bf16 %v1644_v28, %v1638_v27  ;;  %v3795_v28 = vpack.c.bf16 %v1752_v26, %v1746_v25  ;;  %v1795_v26 = vld [vmem:[#allocation20 + $0x610] sm:$0xff] }
 0x839   :  { %v3251_v31 = vpop.f32.mrb[8].mxu0  ;;  %v3286_v32 = vpop.f32.mrb[8].mxu1 }
 0x83a   :  { %v3252_v33 = vpop.f32.mrb[9].mxu0  ;;  %v3287_v34 = vpop.f32.mrb[9].mxu1 }
 0x83b   :  { %v3253_v39 = vadd.f32 %v3252_v33, %v3251_v31  ;;  %v3288_v40 = vadd.f32 %v3287_v34, %v3286_v32  ;;  %v1637_v31 = vld [vmem:[#allocation20 + $0x120] sm:$0xff]  ;;  %v1643_v32 = vld [vmem:[#allocation20 + $0x150] sm:$0xff]  ;;  %v1650_v33 = vld [vmem:[#allocation20 + $0x188] sm:$0xff] }
 0x83c   :  { %v1656_v34 = vld [vmem:[#allocation20 + $0x1b8] sm:$0xff] }
 0x83d   :  { %v1377_v41 = vadd.f32 %v3288_v40, %v3253_v39  ;;  %v3761_v39 = vpack.c.bf16 %v1643_v32, %v1637_v31  ;;  %v3763_v40 = vpack.c.bf16 %v1656_v34, %v1650_v33  ;;  %v1758_v31 = vld [vmem:[#allocation20 + $0x4e8] sm:$0xff]  ;;  %v1764_v32 = vld [vmem:[#allocation20 + $0x518] sm:$0xff] }
 0x83e   :  { %v3799_v34 = vpack.c.bf16 %v1764_v32, %v1758_v31  ;;  %v1808_v31 = vld [vmem:[#allocation20 + $0x678] sm:$0xff]  ;;  %v1814_v32 = vld [vmem:[#allocation20 + $0x6a8] sm:$0xff] }
 0x83f   :  { %v1381_v42 = vsel %vm1380_vm7, %v1377_v41, 0.0  ;;  %v1390_v43 = vrot.slane %v1377_v41, 2  ;;  %v1649_v41 = vld [vmem:[#allocation20 + $0x180] sm:$0xff] }
 0x840   :  { %v1382_v44 = vrot.slane %v1381_v42, 4 }
 0x841   :  { %v1392_v45 = vsel %vm1380_vm7, %v1390_v43, 0.0  ;;  %v1662_v43 = vld [vmem:[#allocation20 + $0x1e8] sm:$0xff] }
 0x842   :  { %v1383_v46 = vadd.f32 %v1382_v44, %v1381_v42  ;;  %v1393_v47 = vrot.slane %v1392_v45, 4  ;;  %v1655_v42 = vld [vmem:[#allocation20 + $0x1b0] sm:$0xff]  ;;  %v1668_v44 = vld [vmem:[#allocation20 + $0x218] sm:$0xff] }
 0x844   :  { %v1384_v49 = vrot.slane %v1383_v46, 2  ;;  %v1394_v50 = vadd.f32 %v1393_v47, %v1392_v45  ;;  %v3765_v45 = vpack.c.bf16 %v1655_v42, %v1649_v41  ;;  %v1661_v47 = vld [vmem:[#allocation20 + $0x1e0] sm:$0xff]  ;;  %v1770_v42 = vld [vmem:[#allocation20 + $0x548] sm:$0xff] }
 0x846   :  { %v1385_v53 = vadd.f32 %v1384_v49, %v1383_v46  ;;  %v1395_v54 = vrot.slane %v1394_v50, 2  ;;  %v3767_v46 = vpack.c.bf16 %v1668_v44, %v1662_v43  ;;  %v1667_v49 = vld [vmem:[#allocation20 + $0x210] sm:$0xff]  ;;  %v1776_v43 = vld [vmem:[#allocation20 + $0x578] sm:$0xff] }
 0x847   :  { %v1772_v44 = vld [vmem:[#allocation20 + $0x558] sm:$0xff] }
 0x848   :  { %v1386_v55 = vrot.slane %v1385_v53, 1  ;;  %v1396_v56 = vadd.f32 %v1395_v54, %v1394_v50  ;;  %v1674_v50 = vld [vmem:[#allocation20 + $0x248] sm:$0xff]  ;;  %v3769_v54 = vpack.c.bf16 %v1667_v49, %v1661_v47  ;;  %v1769_v47 = vld [vmem:[#allocation20 + $0x540] sm:$0xff]  ;;  %v1775_v49 = vld [vmem:[#allocation20 + $0x570] sm:$0xff] }
 0x84a   :  { %v1387_v58 = vadd.f32 %v1386_v55, %v1385_v53  ;;  %v1397_v60 = vrot.slane %v1396_v56, 1  ;;  %v1680_v53 = vld [vmem:[#allocation20 + $0x278] sm:$0xff] }
 0x84b   :  { %v3771_v55 = vpack.c.bf16 %v1680_v53, %v1674_v50  ;;  %v3805_v53 = vpack.c.bf16 %v1775_v49, %v1769_v47  ;;  %v3943_v49 = vpack.c.bf16 %v1814_v32, %v1808_v31  ;;  %v1853_v32 = vld [vmem:[#allocation20 + $0x7e0] sm:$0xff] }
 0x84c   :  { %v1388_v61 = vmul.f32 0.0078125, %v1387_v58  ;;  %v1398_v62 = vadd.f32 %v1397_v60, %v1396_v56  ;;  %v1673_v56 = vld [vmem:[#allocation20 + $0x240] sm:$0xff]  ;;  %v1679_v58 = vld [vmem:[#allocation20 + $0x270] sm:$0xff]  ;;  %v1686_v60 = vld [vmem:[#allocation20 + $0x2a8] sm:$0xff] }
 0x84e   :  { %v1399_v63 = vmul.f32 0.0078125, %v1398_v62  ;;  %v1400_v0 = vmul.f32 %v1388_v61, %v1388_v61  ;;  %v3773_v62 = vpack.c.bf16 %v1679_v58, %v1673_v56  ;;  %v1782_v58 = vld [vmem:[#allocation20 + $0x5a8] sm:$0xff] }
 0x850   :  { %v1401_v2 = vsub.f32 %v1399_v63, %v1400_v0  ;;  %v1685_v0 = vld [vmem:[#allocation20 + $0x2a0] sm:$0xff] }
 0x852   :  { %v1402_v3 = vadd.f32 1e-05, %v1401_v2  ;;  %v1691_v2 = vld [vmem:[#allocation20 + $0x2d0] sm:$0xff] }
 0x854   :  { %4267 = vrsqrt.f32 %v1402_v3  ;;  %v1698_v3 = vld [vmem:[#allocation20 + $0x308] sm:$0xff] }
 0x85e   :  { %v4268_v5 = vpop.eup %4267 }
 0x85f   :  { %v1404_v6 = vmul.f32 %v4268_v5, %v1219_v4  ;;  %v3777_v5 = vpack.c.bf16 %v1691_v2, %v1685_v0  ;;  %v1781_v0 = vld [vmem:[#allocation20 + $0x5a0] sm:$0xff]  ;;  %v1787_v2 = vld [vmem:[#allocation20 + $0x5d0] sm:$0xff] }
 0x861   :  { %v1405_v7 = vmul.f32 %v1404_v6, %v1388_v61  ;;  %v1692_v61 = vld [vmem:[#allocation20 + $0x2d8] sm:$0xff] }
 0x862   :  { %v3775_v63 = vpack.c.bf16 %v1692_v61, %v1686_v60  ;;  %v1788_v60 = vld [vmem:[#allocation20 + $0x5d8] sm:$0xff] }
 0x863   :  { %v1407_v8 = vrot.slane %v1405_v7, 7  ;;  %v1697_v7 = vld [vmem:[#allocation20 + $0x300] sm:$0xff]  ;;  %v1784_v61 = vld [vmem:[#allocation20 + $0x5b8] sm:$0xff] }
 0x865   :  { %v1409_v11 = vsub.f32 %v1219_v4, %v1407_v8  ;;  %v1704_v4 = vld [vmem:[#allocation20 + $0x338] sm:$0xff]  ;;  %v1703_v8 = vld [vmem:[#allocation20 + $0x330] sm:$0xff] }
 0x867   :  { %v1410_v57 = vsel %vm447_vm4, %v1404_v6, %v1409_v11  ;;  %v3779_v6 = vpack.c.bf16 %v1704_v4, %v1698_v3  ;;  %v3781_v11 = vpack.c.bf16 %v1703_v8, %v1697_v7  ;;  %v3809_v4 = vpack.c.bf16 %v1787_v2, %v1781_v0  ;;  %v1794_v8 = vld [vmem:[#allocation20 + $0x608] sm:$0xff] }
 0x868   :  { %3145 = vmatmul.mubr.msk.f32.vlgmr.msra.gmra.mrb[10].mxu0 %vm1411_vm8, %v1410_v57 }
 0x869   :  { %1487 = vmatpush1.msra.mxu0 %v1217_v12  ;;  %1550 = vmatprep.mubr.f32.mxu0 %v4655_v1  ;;  %v3783_v12 = vpack.c.bf16 %v1716_v10, %v1710_v9  ;;  %v1800_v9 = vld [vmem:[#allocation20 + $0x638] sm:$0xff] }
 0x86a   :  { %3748 = vmatprep.subr.bf16.mxu0 %v3747_v13  ;;  %v1709_v13 = vld [vmem:[#allocation20 + $0x360] sm:$0xff]  ;;  %v1796_v10 = vld [vmem:[#allocation20 + $0x618] sm:$0xff] }
 0x86b   :  { %v3785_v59 = vpack.c.bf16 %v1715_v14, %v1709_v13 }
 0x86c   :  { %3146 = vmatmul.mubr.msk.f32.vlgmr.msra.gmra.mrb[12].mxu0 %vm1411_vm8, %v1410_v57  ;;  %v1728_v57 = vld [vmem:[#allocation20 + $0x3f8] sm:$0xff] }
 0x86d   :  { %3750 = vmatpush1.bf16.msra.mxu0 %v3749_v17  ;;  %v3787_v16 = vpack.c.bf16 %v1728_v57, %v1722_v15  ;;  %v1721_v17 = vld [vmem:[#allocation20 + $0x3c0] sm:$0xff] }
 0x86e   :  { %3752 = vmatprep.subr.bf16.mxu0 %v3751_v18  ;;  %v1727_v18 = vld [vmem:[#allocation20 + $0x3f0] sm:$0xff] }
 0x86f   :  { %v3789_v21 = vpack.c.bf16 %v1727_v18, %v1721_v17 }
 0x871   :  { %3754 = vmatpush1.bf16.msra.mxu0 %v3753_v23  ;;  %v1733_v23 = vld [vmem:[#allocation20 + $0x420] sm:$0xff] }
 0x872   :  { %3756 = vmatprep.subr.bf16.mxu0 %v3755_v24  ;;  %v1739_v24 = vld [vmem:[#allocation20 + $0x450] sm:$0xff] }
 0x873   :  { %v3793_v27 = vpack.c.bf16 %v1739_v24, %v1733_v23 }
 0x875   :  { %3758 = vmatpush1.bf16.msra.mxu0 %v3757_v29  ;;  %v1745_v29 = vld [vmem:[#allocation20 + $0x480] sm:$0xff] }
 0x876   :  { %3760 = vmatprep.subr.bf16.mxu0 %v3759_v30  ;;  %v1751_v30 = vld [vmem:[#allocation20 + $0x4b0] sm:$0xff] }
 0x877   :  { %v3797_v33 = vpack.c.bf16 %v1751_v30, %v1745_v29 }
 0x879   :  { %3762 = vmatpush1.bf16.msra.mxu0 %v3761_v39  ;;  %v1757_v39 = vld [vmem:[#allocation20 + $0x4e0] sm:$0xff] }
 0x87a   :  { %3764 = vmatprep.subr.bf16.mxu0 %v3763_v40  ;;  %v1763_v40 = vld [vmem:[#allocation20 + $0x510] sm:$0xff] }
 0x87b   :  { %v3801_v41 = vpack.c.bf16 %v1763_v40, %v1757_v39 }
 0x87d   :  { %3766 = vmatpush1.bf16.msra.mxu0 %v3765_v45  ;;  %v3803_v45 = vpack.c.bf16 %v1776_v43, %v1770_v42  ;;  %v1805_v43 = vld [vmem:[#allocation20 + $0x660] sm:$0xff] }
 0x87e   :  { %3768 = vmatprep.subr.bf16.mxu0 %v3767_v46  ;;  %v1778_v46 = vld [vmem:[#allocation20 + $0x588] sm:$0xff] }
 0x87f   :  { %v3931_v50 = vpack.c.bf16 %v1778_v46, %v1772_v44  ;;  %v1811_v44 = vld [vmem:[#allocation20 + $0x690] sm:$0xff] }
 0x881   :  { %3770 = vmatpush1.bf16.msra.mxu0 %v3769_v54  ;;  %v1771_v54 = vld [vmem:[#allocation20 + $0x550] sm:$0xff]  ;;  %3932 = vmatprep.subr.bf16.mxu1 %v3931_v50 }
 0x882   :  { %3772 = vmatprep.subr.bf16.mxu0 %v3771_v55  ;;  %v1777_v55 = vld [vmem:[#allocation20 + $0x580] sm:$0xff]  ;;  %v1807_v50 = vld [vmem:[#allocation20 + $0x670] sm:$0xff] }
 0x883   :  { %v3933_v56 = vpack.c.bf16 %v1777_v55, %v1771_v54  ;;  %v1820_v55 = vld [vmem:[#allocation20 + $0x6d8] sm:$0xff] }
 0x885   :  { %3774 = vmatpush1.bf16.msra.mxu0 %v3773_v62  ;;  %3934 = vmatpush1.bf16.msra.mxu1 %v3933_v56  ;;  %v3807_v62 = vpack.c.bf16 %v1788_v60, %v1782_v58  ;;  %v1826_v56 = vld [vmem:[#allocation20 + $0x708] sm:$0xff]  ;;  %v3817_v60 = vpack.c.bf16 %v1811_v44, %v1805_v43  ;;  %v1872_v43 = vld [vmem:[#allocation20 + $0x878] sm:$0xff] }
 0x886   :  { %3776 = vmatprep.subr.bf16.mxu0 %v3775_v63  ;;  %v1790_v63 = vld [vmem:[#allocation20 + $0x5e8] sm:$0xff]  ;;  %v3947_v2 = vpack.c.bf16 %v1826_v56, %v1820_v55  ;;  %v1868_v44 = vld [vmem:[#allocation20 + $0x858] sm:$0xff]  ;;  %v1867_v55 = vld [vmem:[#allocation20 + $0x850] sm:$0xff] }
 0x887   :  { %v3935_v3 = vpack.c.bf16 %v1790_v63, %v1784_v61  ;;  %v1823_v63 = vld [vmem:[#allocation20 + $0x6f0] sm:$0xff]  ;;  %v1873_v56 = vld [vmem:[#allocation20 + $0x880] sm:$0xff] }
 0x889   :  { %3778 = vmatpush1.bf16.msra.mxu0 %v3777_v5  ;;  %v1783_v5 = vld [vmem:[#allocation20 + $0x5b0] sm:$0xff]  ;;  %3936 = vmatprep.subr.bf16.mxu1 %v3935_v3 }
 0x88a   :  { %3780 = vmatprep.subr.bf16.mxu0 %v3779_v6  ;;  %v1789_v6 = vld [vmem:[#allocation20 + $0x5e0] sm:$0xff]  ;;  %v1819_v3 = vld [vmem:[#allocation20 + $0x6d0] sm:$0xff] }
 0x88b   :  { %v3937_v7 = vpack.c.bf16 %v1789_v6, %v1783_v5  ;;  %v1830_v5 = vld [vmem:[#allocation20 + $0x728] sm:$0xff]  ;;  %v1836_v6 = vld [vmem:[#allocation20 + $0x758] sm:$0xff] }
 0x88d   :  { %3782 = vmatpush1.bf16.msra.mxu0 %v3781_v11  ;;  %3938 = vmatpush1.bf16.msra.mxu1 %v3937_v7  ;;  %v3811_v11 = vpack.c.bf16 %v1800_v9, %v1794_v8  ;;  %v1832_v7 = vld [vmem:[#allocation20 + $0x738] sm:$0xff]  ;;  %v1838_v8 = vld [vmem:[#allocation20 + $0x768] sm:$0xff] }
 0x88e   :  { %3784 = vmatprep.subr.bf16.mxu0 %v3783_v12  ;;  %v1802_v12 = vld [vmem:[#allocation20 + $0x648] sm:$0xff] }
 0x88f   :  { %v3939_v13 = vpack.c.bf16 %v1802_v12, %v1796_v10  ;;  %v1835_v12 = vld [vmem:[#allocation20 + $0x750] sm:$0xff] }
 0x891   :  { %3786 = vmatpush1.bf16.msra.mxu0 %v3785_v59  ;;  %3940 = vmatprep.subr.bf16.mxu1 %v3939_v13  ;;  %v3823_v13 = vpack.c.bf16 %v1836_v6, %v1830_v5 }
 0x892   :  { %3788 = vmatprep.subr.bf16.mxu0 %v3787_v16 }
 0x895   :  { %3790 = vmatpush1.bf16.msra.mxu0 %v3789_v21  ;;  %v1793_v21 = vld [vmem:[#allocation20 + $0x600] sm:$0xff] }
 0x896   :  { %3792 = vmatprep.subr.bf16.mxu0 %v3791_v22  ;;  %v1799_v22 = vld [vmem:[#allocation20 + $0x630] sm:$0xff] }
 0x899   :  { %3794 = vmatpush1.bf16.msra.mxu0 %v3793_v27  ;;  %v1801_v27 = vld [vmem:[#allocation20 + $0x640] sm:$0xff] }
 0x89a   :  { %3796 = vmatprep.subr.bf16.mxu0 %v3795_v28  ;;  %v1806_v28 = vld [vmem:[#allocation20 + $0x668] sm:$0xff]  ;;  %v3941_v42 = vpack.c.bf16 %v1801_v27, %v1795_v26  ;;  %v1849_v26 = vld [vmem:[#allocation20 + $0x7c0] sm:$0xff] }
 0x89b   :  { %v1854_v27 = vld [vmem:[#allocation20 + $0x7e8] sm:$0xff] }
 0x89d   :  { %3798 = vmatpush1.bf16.msra.mxu0 %v3797_v33 }
 0x89e   :  { %3800 = vmatprep.subr.bf16.mxu0 %v3799_v34  ;;  %v3813_v34 = vpack.c.bf16 %v1799_v22, %v1793_v21  ;;  %v1841_v21 = vld [vmem:[#allocation20 + $0x780] sm:$0xff]  ;;  %v1847_v22 = vld [vmem:[#allocation20 + $0x7b0] sm:$0xff] }
 0x8a1   :  { %3802 = vmatpush1.bf16.msra.mxu0 %v3801_v41 }
 0x8a2   :  { %3804 = vmatprep.subr.bf16.mxu0 %v3803_v45 }
 0x8a5   :  { %3806 = vmatpush1.bf16.msra.mxu0 %v3805_v53  ;;  %v1818_v53 = vld [vmem:[#allocation20 + $0x6c8] sm:$0xff] }
 0x8a6   :  { %3808 = vmatprep.subr.bf16.mxu0 %v3807_v62  ;;  %v1817_v62 = vld [vmem:[#allocation20 + $0x6c0] sm:$0xff] }
 0x8a7   :  { %v3821_v9 = vpack.c.bf16 %v1823_v63, %v1817_v62  ;;  %v1880_v62 = vld [vmem:[#allocation20 + $0x8b8] sm:$0xff]  ;;  %v1886_v63 = vld [vmem:[#allocation20 + $0x8e8] sm:$0xff] }
 0x8a8   :  { %v3967_v6 = vpack.c.bf16 %v1886_v63, %v1880_v62  ;;  %v1927_v62 = vld [vmem:[#allocation20 + $0xa30] sm:$0xff]  ;;  %v1933_v63 = vld [vmem:[#allocation20 + $0xa60] sm:$0xff] }
 0x8a9   :  { %3810 = vmatpush1.bf16.msra.mxu0 %v3809_v4  ;;  %v1825_v4 = vld [vmem:[#allocation20 + $0x700] sm:$0xff] }
 0x8aa   :  { %3812 = vmatprep.subr.bf16.mxu0 %v3811_v11  ;;  %v3949_v10 = vpack.c.bf16 %v1825_v4, %v1819_v3  ;;  %v1829_v11 = vld [vmem:[#allocation20 + $0x720] sm:$0xff]  ;;  %v1883_v4 = vld [vmem:[#allocation20 + $0x8d0] sm:$0xff] }
 0x8ab   :  { %v1877_v3 = vld [vmem:[#allocation20 + $0x8a0] sm:$0xff] }
 0x93b   :  { %v1481_v14 = vpop.f32.mrb[10].mxu0 }
 0x93c   :  { %v1560_v15 = vrot.slane %v1481_v14, %v5085_v37  ;;  %v1483_v57 = vpop.f32.mrb[11].mxu0  ;;  %v1580_v17 = vrot.slane %v1481_v14, %v5088_v38  ;;  %v3951_v14 = vpack.c.bf16 %v1838_v8, %v1832_v7  ;;  %v1879_v7 = vld [vmem:[#allocation20 + $0x8b0] sm:$0xff]  ;;  %v1885_v8 = vld [vmem:[#allocation20 + $0x8e0] sm:$0xff] }
 0x93d   :  { %v1564_v59 = vrot.slane %v1483_v57, %v5085_v37  ;;  %v1584_v19 = vrot.slane %v1483_v57, %v5088_v38  ;;  %v1837_v57 = vld [vmem:[#allocation20 + $0x760] sm:$0xff] }
 0x93e   :  { %v1573_v16 = vmul.f32 %v1560_v15, %v5329_v48  ;;  %v1812_v48 = vld [vmem:[#allocation20 + $0x698] sm:$0xff]  ;;  %v1831_v15 = vld [vmem:[#allocation20 + $0x730] sm:$0xff] }
 0x93f   :  { %v1574_v18 = vmul.f32 %v1564_v59, %v5337_v51  ;;  %v1552_v20 = vpop.f32.mrb[12].mxu0  ;;  %v3815_v47 = vpack.c.bf16 %v1812_v48, %v1806_v28  ;;  %v1842_v59 = vld [vmem:[#allocation20 + $0x788] sm:$0xff]  ;;  %v1860_v28 = vld [vmem:[#allocation20 + $0x818] sm:$0xff]  ;;  %v3829_v48 = vpack.c.bf16 %v1847_v22, %v1841_v21 }
 0x940   :  { %v1593_v23 = vadd.f32 %v1580_v17, %v1573_v16  ;;  %v1568_v24 = vrot.slane %v1552_v20, %v5085_v37  ;;  %v1554_v25 = vpop.f32.mrb[13].mxu0  ;;  %v1588_v33 = vrot.slane %v1552_v20, %v5088_v38  ;;  %v1848_v16 = vld [vmem:[#allocation20 + $0x7b8] sm:$0xff]  ;;  %v3953_v20 = vpack.c.bf16 %v1837_v57, %v1831_v15  ;;  %v1889_v15 = vld [vmem:[#allocation20 + $0x900] sm:$0xff]  ;;  %v1895_v57 = vld [vmem:[#allocation20 + $0x930] sm:$0xff] }
 0x941   :  { %v1594_v29 = vadd.f32 %v1584_v19, %v1574_v18  ;;  %v1572_v30 = vrot.slane %v1554_v25, %v5085_v37  ;;  %v1592_v40 = vrot.slane %v1554_v25, %v5088_v38  ;;  %v1844_v17 = vld [vmem:[#allocation20 + $0x798] sm:$0xff]  ;;  %v1850_v18 = vld [vmem:[#allocation20 + $0x7c8] sm:$0xff]  ;;  %v3825_v19 = vpack.c.bf16 %v1835_v12, %v1829_v11  ;;  %v1843_v25 = vld [vmem:[#allocation20 + $0x790] sm:$0xff] }
 0x942   :  { %v1575_v51 = vmul.f32 %v1568_v24, %v5331_v35  ;;  %v5372_v45 = vmax.f32 %v1593_v23, 0.0  ;;  %v1813_v35 = vld [vmem:[#allocation20 + $0x6a0] sm:$0xff]  ;;  %v3827_v23 = vpack.c.bf16 %v1848_v16, %v1842_v59  ;;  %v3955_v24 = vpack.c.bf16 %v1850_v18, %v1844_v17  ;;  %v1892_v11 = vld [vmem:[#allocation20 + $0x918] sm:$0xff]  ;;  %v1898_v12 = vld [vmem:[#allocation20 + $0x948] sm:$0xff] }
 0x943   :  { %v1576_v39 = vmul.f32 %v1572_v30, %v5339_v52  ;;  %v5370_v41 = vmax.f32 %v1594_v29, 0.0  ;;  %v1824_v52 = vld [vmem:[#allocation20 + $0x6f8] sm:$0xff]  ;;  %v3945_v61 = vpack.c.bf16 %v1813_v35, %v1807_v50  ;;  %v1862_v30 = vld [vmem:[#allocation20 + $0x828] sm:$0xff]  ;;  %v3957_v31 = vpack.c.bf16 %v1849_v26, %v1843_v25  ;;  %v1865_v35 = vld [vmem:[#allocation20 + $0x840] sm:$0xff] }
 0x944   :  { %v5374_v46 = vadd.f32 %v1588_v33, %v1575_v51  ;;  %v3819_v0 = vpack.c.bf16 %v1824_v52, %v1818_v53  ;;  %v1856_v29 = vld [vmem:[#allocation20 + $0x7f8] sm:$0xff]  ;;  %v1859_v51 = vld [vmem:[#allocation20 + $0x810] sm:$0xff]  ;;  %v3831_v33 = vpack.c.bf16 %v1860_v28, %v1854_v27  ;;  %v3971_v16 = vpack.c.bf16 %v1898_v12, %v1892_v11  ;;  %v1897_v18 = vld [vmem:[#allocation20 + $0x940] sm:$0xff] }
 0x945   :  { %v1596_v54 = vadd.f32 %v1592_v40, %v1576_v39  ;;  %2049 = vmatprep.mubr.f32.mxu0 %v5370_v41  ;;  %2191 = vmatprep.mubr.f32.mxu1 %v5370_v41  ;;  %v1855_v39 = vld [vmem:[#allocation20 + $0x7f0] sm:$0xff]  ;;  %v1861_v40 = vld [vmem:[#allocation20 + $0x820] sm:$0xff]  ;;  %v1904_v21 = vld [vmem:[#allocation20 + $0x978] sm:$0xff] }
 0x946   :  { %2050 = vmatmul.mubr.f32.vlgmr.msra.gmra.mrb[14].mxu0 %v5372_v45  ;;  %2192 = vmatmul.mubr.f32.vlgmr.msra.gmra.mrb[10].mxu1 %v5372_v45  ;;  %v3961_v50 = vpack.c.bf16 %v1861_v40, %v1855_v39  ;;  %v1871_v53 = vld [vmem:[#allocation20 + $0x870] sm:$0xff]  ;;  %v1910_v22 = vld [vmem:[#allocation20 + $0x9a8] sm:$0xff]  ;;  %v1901_v25 = vld [vmem:[#allocation20 + $0x960] sm:$0xff] }
 0x947   :  { %3814 = vmatpush1.bf16.msra.mxu0 %v3813_v34  ;;  %3942 = vmatpush1.bf16.msra.mxu1 %v3941_v42  ;;  %v5380_v58 = vmax.f32 %v1596_v54, 0.0  ;;  %v3959_v34 = vpack.c.bf16 %v1862_v30, %v1856_v29  ;;  %v1866_v42 = vld [vmem:[#allocation20 + $0x848] sm:$0xff]  ;;  %v1891_v17 = vld [vmem:[#allocation20 + $0x910] sm:$0xff]  ;;  %v3975_v28 = vpack.c.bf16 %v1910_v22, %v1904_v21  ;;  %v1909_v30 = vld [vmem:[#allocation20 + $0x9a0] sm:$0xff] }
 0x948   :  { %3816 = vmatprep.subr.bf16.mxu0 %v3815_v47  ;;  %3944 = vmatprep.subr.bf16.mxu1 %v3943_v49  ;;  %v1874_v47 = vld [vmem:[#allocation20 + $0x888] sm:$0xff]  ;;  %v3833_v49 = vpack.c.bf16 %v1859_v51, %v1853_v32  ;;  %v3835_v54 = vpack.c.bf16 %v1872_v43, %v1866_v42  ;;  %v1907_v26 = vld [vmem:[#allocation20 + $0x990] sm:$0xff]  ;;  %v1916_v32 = vld [vmem:[#allocation20 + $0x9d8] sm:$0xff] }
 0x949   :  { %2120 = vmatprep.mubr.f32.mxu0 %v5380_v58  ;;  %2262 = vmatprep.mubr.f32.mxu1 %v5380_v58  ;;  %v3963_v52 = vpack.c.bf16 %v1874_v47, %v1868_v44  ;;  %v1903_v29 = vld [vmem:[#allocation20 + $0x970] sm:$0xff]  ;;  %v1922_v51 = vld [vmem:[#allocation20 + $0xa08] sm:$0xff]  ;;  %v1913_v39 = vld [vmem:[#allocation20 + $0x9c0] sm:$0xff] }
 0x94a   :  { %v1919_v40 = vld [vmem:[#allocation20 + $0x9f0] sm:$0xff]  ;;  %v3979_v43 = vpack.c.bf16 %v1922_v51, %v1916_v32  ;;  %v1921_v47 = vld [vmem:[#allocation20 + $0xa00] sm:$0xff] }
 0x94b   :  { %3818 = vmatpush1.bf16.msra.mxu0 %v3817_v60  ;;  %3946 = vmatpush1.bf16.msra.mxu1 %v3945_v61  ;;  %v1878_v60 = vld [vmem:[#allocation20 + $0x8a8] sm:$0xff]  ;;  %v1884_v61 = vld [vmem:[#allocation20 + $0x8d8] sm:$0xff]  ;;  %v1915_v44 = vld [vmem:[#allocation20 + $0x9d0] sm:$0xff] }
 0x94c   :  { %3820 = vmatprep.subr.bf16.mxu0 %v3819_v0  ;;  %3948 = vmatprep.subr.bf16.mxu1 %v3947_v2  ;;  %v3837_v0 = vpack.c.bf16 %v1871_v53, %v1865_v35  ;;  %v3965_v2 = vpack.c.bf16 %v1873_v56, %v1867_v55  ;;  %v3839_v5 = vpack.c.bf16 %v1884_v61, %v1878_v60  ;;  %v1928_v35 = vld [vmem:[#allocation20 + $0xa38] sm:$0xff]  ;;  %v1934_v53 = vld [vmem:[#allocation20 + $0xa68] sm:$0xff]  ;;  %v1925_v55 = vld [vmem:[#allocation20 + $0xa20] sm:$0xff] }
 0x94d   :  { %v1931_v56 = vld [vmem:[#allocation20 + $0xa50] sm:$0xff]  ;;  %v3983_v61 = vpack.c.bf16 %v1934_v53, %v1928_v35  ;;  %v1945_v12 = vld [vmem:[#allocation20 + $0xac0] sm:$0xff] }
 0x94e   :  { %v1939_v11 = vld [vmem:[#allocation20 + $0xa90] sm:$0xff]  ;;  %v1957_v22 = vld [vmem:[#allocation20 + $0xb20] sm:$0xff] }
 0x94f   :  { %3822 = vmatpush1.bf16.msra.mxu0 %v3821_v9  ;;  %3950 = vmatpush1.bf16.msra.mxu1 %v3949_v10  ;;  %v1890_v9 = vld [vmem:[#allocation20 + $0x908] sm:$0xff]  ;;  %v1896_v10 = vld [vmem:[#allocation20 + $0x938] sm:$0xff]  ;;  %v1951_v21 = vld [vmem:[#allocation20 + $0xaf0] sm:$0xff] }
 0x950   :  { %3824 = vmatprep.subr.bf16.mxu0 %v3823_v13  ;;  %3952 = vmatprep.subr.bf16.mxu1 %v3951_v14  ;;  %v3841_v13 = vpack.c.bf16 %v1883_v4, %v1877_v3  ;;  %v3969_v14 = vpack.c.bf16 %v1885_v8, %v1879_v7  ;;  %v3843_v59 = vpack.c.bf16 %v1896_v10, %v1890_v9  ;;  %v1940_v3 = vld [vmem:[#allocation20 + $0xa98] sm:$0xff]  ;;  %v1946_v4 = vld [vmem:[#allocation20 + $0xac8] sm:$0xff]  ;;  %v1937_v7 = vld [vmem:[#allocation20 + $0xa80] sm:$0xff] }
 0x951   :  { %v1943_v8 = vld [vmem:[#allocation20 + $0xab0] sm:$0xff]  ;;  %v3987_v10 = vpack.c.bf16 %v1946_v4, %v1940_v3  ;;  %v1969_v51 = vld [vmem:[#allocation20 + $0xb80] sm:$0xff]  ;;  %v5385_v3 = vmax.f32 %v5374_v46, 0.0 }
 0x952   :  { %v1963_v32 = vld [vmem:[#allocation20 + $0xb50] sm:$0xff]  ;;  %v1981_v53 = vld [vmem:[#allocation20 + $0xbe0] sm:$0xff] }
 0x953   :  { %3826 = vmatpush1.bf16.msra.mxu0 %v3825_v19  ;;  %3954 = vmatpush1.bf16.msra.mxu1 %v3953_v20  ;;  %v1902_v19 = vld [vmem:[#allocation20 + $0x968] sm:$0xff]  ;;  %v1908_v20 = vld [vmem:[#allocation20 + $0x998] sm:$0xff]  ;;  %v1975_v35 = vld [vmem:[#allocation20 + $0xbb0] sm:$0xff] }
 0x954   :  { %3828 = vmatprep.subr.bf16.mxu0 %v3827_v23  ;;  %3956 = vmatprep.subr.bf16.mxu1 %v3955_v24  ;;  %v3845_v23 = vpack.c.bf16 %v1895_v57, %v1889_v15  ;;  %v3973_v24 = vpack.c.bf16 %v1897_v18, %v1891_v17  ;;  %v3847_v27 = vpack.c.bf16 %v1908_v20, %v1902_v19  ;;  %v1952_v15 = vld [vmem:[#allocation20 + $0xaf8] sm:$0xff]  ;;  %v1958_v57 = vld [vmem:[#allocation20 + $0xb28] sm:$0xff]  ;;  %v1949_v17 = vld [vmem:[#allocation20 + $0xae0] sm:$0xff] }
 0x955   :  { %v1955_v18 = vld [vmem:[#allocation20 + $0xb10] sm:$0xff]  ;;  %v3991_v20 = vpack.c.bf16 %v1958_v57, %v1952_v15  ;;  %v2428_v46 = vld [vmem:[%s5790_s21 + $0x88] sm:$0xff]  ;;  %v2429_v57 = vld [vmem:[%s5790_s21 + $0x90] sm:$0xff] }
 0x956   :  { %v2412_v15 = vld [vmem:[%s5790_s21 + $0x8] sm:$0xff] }
 0x957   :  { %3830 = vmatpush1.bf16.msra.mxu0 %v3829_v48  ;;  %3958 = vmatpush1.bf16.msra.mxu1 %v3957_v31  ;;  %v1914_v48 = vld [vmem:[#allocation20 + $0x9c8] sm:$0xff]  ;;  %v1920_v31 = vld [vmem:[#allocation20 + $0x9f8] sm:$0xff] }
 0x958   :  { %3832 = vmatprep.subr.bf16.mxu0 %v3831_v33  ;;  %3960 = vmatprep.subr.bf16.mxu1 %v3959_v34  ;;  %v3849_v33 = vpack.c.bf16 %v1907_v26, %v1901_v25  ;;  %v3977_v34 = vpack.c.bf16 %v1909_v30, %v1903_v29  ;;  %v3851_v42 = vpack.c.bf16 %v1920_v31, %v1914_v48  ;;  %v1964_v25 = vld [vmem:[#allocation20 + $0xb58] sm:$0xff]  ;;  %v1970_v26 = vld [vmem:[#allocation20 + $0xb88] sm:$0xff]  ;;  %v1961_v29 = vld [vmem:[#allocation20 + $0xb40] sm:$0xff] }
 0x959   :  { %v1967_v30 = vld [vmem:[#allocation20 + $0xb70] sm:$0xff]  ;;  %v3995_v31 = vpack.c.bf16 %v1970_v26, %v1964_v25  ;;  %v1641_v26 = vld [vmem:[#allocation20 + $0x140] sm:$0xff] }
 0x95b   :  { %3834 = vmatpush1.bf16.msra.mxu0 %v3833_v49  ;;  %3962 = vmatpush1.bf16.msra.mxu1 %v3961_v50  ;;  %v1926_v49 = vld [vmem:[#allocation20 + $0xa28] sm:$0xff]  ;;  %v1932_v50 = vld [vmem:[#allocation20 + $0xa58] sm:$0xff] }
 0x95c   :  { %3836 = vmatprep.subr.bf16.mxu0 %v3835_v54  ;;  %3964 = vmatprep.subr.bf16.mxu1 %v3963_v52  ;;  %v3853_v54 = vpack.c.bf16 %v1919_v40, %v1913_v39  ;;  %v3981_v52 = vpack.c.bf16 %v1921_v47, %v1915_v44  ;;  %v3855_v60 = vpack.c.bf16 %v1932_v50, %v1926_v49  ;;  %v1976_v39 = vld [vmem:[#allocation20 + $0xbb8] sm:$0xff]  ;;  %v1982_v40 = vld [vmem:[#allocation20 + $0xbe8] sm:$0xff]  ;;  %v1973_v44 = vld [vmem:[#allocation20 + $0xba0] sm:$0xff] }
 0x95d   :  { %v3999_v49 = vpack.c.bf16 %v1982_v40, %v1976_v39  ;;  %v1979_v50 = vld [vmem:[#allocation20 + $0xbd0] sm:$0xff]  ;;  %v1653_v40 = vld [vmem:[#allocation20 + $0x1a0] sm:$0xff] }
 0x95f   :  { %3838 = vmatpush1.bf16.msra.mxu0 %v3837_v0  ;;  %3966 = vmatpush1.bf16.msra.mxu1 %v3965_v2  ;;  %v1938_v0 = vld [vmem:[#allocation20 + $0xa88] sm:$0xff]  ;;  %v1944_v2 = vld [vmem:[#allocation20 + $0xab8] sm:$0xff] }
 0x960   :  { %3840 = vmatprep.subr.bf16.mxu0 %v3839_v5  ;;  %3968 = vmatprep.subr.bf16.mxu1 %v3967_v6  ;;  %v3857_v5 = vpack.c.bf16 %v1931_v56, %v1925_v55  ;;  %v3985_v6 = vpack.c.bf16 %v1933_v63, %v1927_v62  ;;  %v3859_v9 = vpack.c.bf16 %v1944_v2, %v1938_v0  ;;  %v1611_v62 = vld [vmem:[#allocation20 + $0x50] sm:$0xff]  ;;  %v1618_v63 = vld [vmem:[#allocation20 + $0x88] sm:$0xff]  ;;  %v1624_v0 = vld [vmem:[#allocation20 + $0xb8] sm:$0xff] }
 0x961   :  { %v3873_v55 = vpack.c.bf16 %v1979_v50, %v1973_v44  ;;  %v4001_v56 = vpack.c.bf16 %v1981_v53, %v1975_v35  ;;  %v4007_v4 = vpack.c.bf16 %v1624_v0, %v1618_v63  ;;  %v2418_v44 = vld [vmem:[%s5790_s21 + $0x38] sm:$0xff]  ;;  %v2435_v50 = vld [vmem:[%s5790_s21 + $0xc0] sm:$0xff]  ;;  %v2436_v35 = vld [vmem:[%s5790_s21 + $0xc8] sm:$0xff] }
 0x962   :  { %v1666_v53 = vld [vmem:[#allocation20 + $0x208] sm:$0xff]  ;;  %v1671_v0 = vld [vmem:[#allocation20 + $0x230] sm:$0xff] }
 0x963   :  { %3842 = vmatpush1.bf16.msra.mxu0 %v3841_v13  ;;  %3970 = vmatpush1.bf16.msra.mxu1 %v3969_v14  ;;  %v1950_v13 = vld [vmem:[#allocation20 + $0xae8] sm:$0xff]  ;;  %v1956_v14 = vld [vmem:[#allocation20 + $0xb18] sm:$0xff] }
 0x964   :  { %3844 = vmatprep.subr.bf16.mxu0 %v3843_v59  ;;  %3972 = vmatprep.subr.bf16.mxu1 %v3971_v16  ;;  %v3861_v59 = vpack.c.bf16 %v1943_v8, %v1937_v7  ;;  %v3989_v16 = vpack.c.bf16 %v1945_v12, %v1939_v11  ;;  %v3863_v19 = vpack.c.bf16 %v1956_v14, %v1950_v13  ;;  %v1630_v7 = vld [vmem:[#allocation20 + $0xe8] sm:$0xff]  ;;  %v1636_v8 = vld [vmem:[#allocation20 + $0x118] sm:$0xff] }
 0x965   :  { %v2427_v11 = vld [vmem:[%s5790_s21 + $0x80] sm:$0xff] }
 0x966   :  { %v2411_v12 = vld [vmem:[%s5790_s21] sm:$0xff]  ;;  %v4131_v14 = vpack.c.bf16 %v2428_v46, %v2427_v11  ;;  %v2421_v11 = vld [vmem:[%s5790_s21 + $0x50] sm:$0xff]  ;;  %v2422_v46 = vld [vmem:[%s5790_s21 + $0x58] sm:$0xff] }
 0x967   :  { %3846 = vmatpush1.bf16.msra.mxu0 %v3845_v23  ;;  %3974 = vmatpush1.bf16.msra.mxu1 %v3973_v24  ;;  %v1962_v23 = vld [vmem:[#allocation20 + $0xb48] sm:$0xff]  ;;  %v1968_v24 = vld [vmem:[#allocation20 + $0xb78] sm:$0xff] }
 0x968   :  { %3848 = vmatprep.subr.bf16.mxu0 %v3847_v27  ;;  %3976 = vmatprep.subr.bf16.mxu1 %v3975_v28  ;;  %v3865_v27 = vpack.c.bf16 %v1955_v18, %v1949_v17  ;;  %v3993_v28 = vpack.c.bf16 %v1957_v22, %v1951_v21  ;;  %v3867_v48 = vpack.c.bf16 %v1968_v24, %v1962_v23  ;;  %v1642_v21 = vld [vmem:[#allocation20 + $0x148] sm:$0xff]  ;;  %v1648_v22 = vld [vmem:[#allocation20 + $0x178] sm:$0xff] }
 0x969   :  { %v4133_v17 = vpack.c.bf16 %v2412_v15, %v2411_v12  ;;  %v2432_v23 = vld [vmem:[%s5790_s21 + $0xa8] sm:$0xff] }
 0x96a   :  { %v2440_v15 = vld [vmem:[%s5790_s21 + $0xe8] sm:$0xff] }
 0x96b   :  { %3850 = vmatpush1.bf16.msra.mxu0 %v3849_v33  ;;  %3978 = vmatpush1.bf16.msra.mxu1 %v3977_v34  ;;  %v1974_v33 = vld [vmem:[#allocation20 + $0xba8] sm:$0xff]  ;;  %v1980_v34 = vld [vmem:[#allocation20 + $0xbd8] sm:$0xff] }
 0x96c   :  { %3852 = vmatprep.subr.bf16.mxu0 %v3851_v42  ;;  %3980 = vmatprep.subr.bf16.mxu1 %v3979_v43  ;;  %v3869_v42 = vpack.c.bf16 %v1967_v30, %v1961_v29  ;;  %v3997_v43 = vpack.c.bf16 %v1969_v51, %v1963_v32  ;;  %v3871_v47 = vpack.c.bf16 %v1980_v34, %v1974_v33  ;;  %v2416_v29 = vld [vmem:[%s5790_s21 + $0x28] sm:$0xff]  ;;  %v2434_v32 = vld [vmem:[%s5790_s21 + $0xb8] sm:$0xff] }
 0x96d   :  { %v4015_v30 = vpack.c.bf16 %v1648_v22, %v1642_v21  ;;  %v1654_v51 = vld [vmem:[#allocation20 + $0x1a8] sm:$0xff]  ;;  %v1660_v33 = vld [vmem:[#allocation20 + $0x1d8] sm:$0xff] }
 0x96e   :  { %v1702_v21 = vld [vmem:[#allocation20 + $0x328] sm:$0xff]  ;;  %v1708_v22 = vld [vmem:[#allocation20 + $0x358] sm:$0xff] }
 0x96f   :  { %3854 = vmatpush1.bf16.msra.mxu0 %v3853_v54  ;;  %3982 = vmatpush1.bf16.msra.mxu1 %v3981_v52  ;;  %v1606_v54 = vld [vmem:[#allocation20 + $0x28] sm:$0xff]  ;;  %v1612_v52 = vld [vmem:[#allocation20 + $0x58] sm:$0xff] }
 0x970   :  { %3856 = vmatprep.subr.bf16.mxu0 %v3855_v60  ;;  %3984 = vmatprep.subr.bf16.mxu1 %v3983_v61  ;;  %v4003_v60 = vpack.c.bf16 %v1612_v52, %v1606_v54  ;;  %v1605_v61 = vld [vmem:[#allocation20 + $0x20] sm:$0xff]  ;;  %v1672_v54 = vld [vmem:[#allocation20 + $0x238] sm:$0xff] }
 0x971   :  { %v4005_v2 = vpack.c.bf16 %v1611_v62, %v1605_v61  ;;  %v2419_v61 = vld [vmem:[%s5790_s21 + $0x40] sm:$0xff]  ;;  %v2420_v62 = vld [vmem:[%s5790_s21 + $0x48] sm:$0xff]  ;;  %v4023_v63 = vpack.c.bf16 %v1672_v54, %v1666_v53 }
 0x972   :  { %v1756_v53 = vld [vmem:[#allocation20 + $0x4d8] sm:$0xff] }
 0x973   :  { %3858 = vmatpush1.bf16.msra.mxu0 %v3857_v5  ;;  %3986 = vmatpush1.bf16.msra.mxu1 %v3985_v6  ;;  %v1617_v5 = vld [vmem:[#allocation20 + $0x80] sm:$0xff]  ;;  %v1623_v6 = vld [vmem:[#allocation20 + $0xb0] sm:$0xff] }
 0x974   :  { %3860 = vmatprep.subr.bf16.mxu0 %v3859_v9  ;;  %3988 = vmatprep.subr.bf16.mxu1 %v3987_v10  ;;  %v1629_v9 = vld [vmem:[#allocation20 + $0xe0] sm:$0xff]  ;;  %v1635_v10 = vld [vmem:[#allocation20 + $0x110] sm:$0xff]  ;;  %v4009_v13 = vpack.c.bf16 %v1623_v6, %v1617_v5  ;;  %v1678_v5 = vld [vmem:[#allocation20 + $0x268] sm:$0xff] }
 0x975   :  { %v4013_v25 = vpack.c.bf16 %v1635_v10, %v1629_v9  ;;  %v1684_v6 = vld [vmem:[#allocation20 + $0x298] sm:$0xff]  ;;  %v1677_v9 = vld [vmem:[#allocation20 + $0x260] sm:$0xff] }
 0x976   :  { %v4027_v12 = vpack.c.bf16 %v1684_v6, %v1678_v5  ;;  %v1780_v5 = vld [vmem:[#allocation20 + $0x598] sm:$0xff] }
 0x977   :  { %3862 = vmatpush1.bf16.msra.mxu0 %v3861_v59  ;;  %3990 = vmatpush1.bf16.msra.mxu1 %v3989_v16  ;;  %v2430_v59 = vld [vmem:[%s5790_s21 + $0x98] sm:$0xff]  ;;  %v4011_v16 = vpack.c.bf16 %v1636_v8, %v1630_v7  ;;  %v4149_v7 = vpack.c.bf16 %v2420_v62, %v2419_v61  ;;  %v1768_v61 = vld [vmem:[#allocation20 + $0x538] sm:$0xff] }
 0x978   :  { %3864 = vmatprep.subr.bf16.mxu0 %v3863_v19  ;;  %3992 = vmatprep.subr.bf16.mxu1 %v3991_v20  ;;  %v4135_v18 = vpack.c.bf16 %v2430_v59, %v2429_v57  ;;  %v2414_v19 = vld [vmem:[%s5790_s21 + $0x18] sm:$0xff]  ;;  %v2431_v20 = vld [vmem:[%s5790_s21 + $0xa0] sm:$0xff] }
 0x979   :  { %v1690_v57 = vld [vmem:[#allocation20 + $0x2c8] sm:$0xff]  ;;  %v1696_v59 = vld [vmem:[#allocation20 + $0x2f8] sm:$0xff] }
 0x97b   :  { %3866 = vmatpush1.bf16.msra.mxu0 %v3865_v27  ;;  %3994 = vmatpush1.bf16.msra.mxu1 %v3993_v28  ;;  %v4139_v27 = vpack.c.bf16 %v2432_v23, %v2431_v20  ;;  %v2415_v28 = vld [vmem:[%s5790_s21 + $0x20] sm:$0xff] }
 0x97c   :  { %3868 = vmatprep.subr.bf16.mxu0 %v3867_v48  ;;  %3996 = vmatprep.subr.bf16.mxu1 %v3995_v31  ;;  %v1647_v48 = vld [vmem:[#allocation20 + $0x170] sm:$0xff]  ;;  %v2433_v31 = vld [vmem:[%s5790_s21 + $0xb0] sm:$0xff]  ;;  %v4141_v34 = vpack.c.bf16 %v2416_v29, %v2415_v28  ;;  %v1720_v28 = vld [vmem:[#allocation20 + $0x3b8] sm:$0xff] }
 0x97d   :  { %v4017_v39 = vpack.c.bf16 %v1647_v48, %v1641_v26  ;;  %v1695_v20 = vld [vmem:[#allocation20 + $0x2f0] sm:$0xff]  ;;  %v1713_v48 = vld [vmem:[#allocation20 + $0x380] sm:$0xff] }
 0x97e   :  { %v1707_v26 = vld [vmem:[#allocation20 + $0x350] sm:$0xff] }
 0x97f   :  { %3870 = vmatpush1.bf16.msra.mxu0 %v3869_v42  ;;  %3998 = vmatpush1.bf16.msra.mxu1 %v3997_v43  ;;  %v4143_v42 = vpack.c.bf16 %v2434_v32, %v2433_v31  ;;  %v2417_v43 = vld [vmem:[%s5790_s21 + $0x30] sm:$0xff]  ;;  %v1719_v31 = vld [vmem:[#allocation20 + $0x3b0] sm:$0xff] }
 0x980   :  { %3872 = vmatprep.subr.bf16.mxu0 %v3871_v47  ;;  %4000 = vmatprep.subr.bf16.mxu1 %v3999_v49  ;;  %v4019_v47 = vpack.c.bf16 %v1660_v33, %v1654_v51  ;;  %v1659_v49 = vld [vmem:[#allocation20 + $0x1d0] sm:$0xff]  ;;  %v4145_v52 = vpack.c.bf16 %v2418_v44, %v2417_v43  ;;  %v1726_v32 = vld [vmem:[#allocation20 + $0x3e8] sm:$0xff]  ;;  %v1732_v51 = vld [vmem:[#allocation20 + $0x418] sm:$0xff]  ;;  %v4041_v33 = vpack.c.bf16 %v1719_v31, %v1713_v48 }
 0x981   :  { %v1744_v43 = vld [vmem:[#allocation20 + $0x478] sm:$0xff] }
 0x982   :  { %v1840_v48 = vld [vmem:[#allocation20 + $0x778] sm:$0xff] }
 0x983   :  { %3874 = vmatpush1.bf16.msra.mxu0 %v3873_v55  ;;  %4002 = vmatpush1.bf16.msra.mxu1 %v4001_v56  ;;  %v4021_v55 = vpack.c.bf16 %v1659_v49, %v1653_v40  ;;  %v1665_v56 = vld [vmem:[#allocation20 + $0x200] sm:$0xff]  ;;  %v1731_v40 = vld [vmem:[#allocation20 + $0x410] sm:$0xff] }
 0x984   :  { %4004 = vmatprep.subr.bf16.mxu0 %v4003_v60  ;;  %4132 = vmatprep.subr.bf16.mxu1 %v4131_v14  ;;  %v4147_v60 = vpack.c.bf16 %v2436_v35, %v2435_v50  ;;  %v4025_v8 = vpack.c.bf16 %v1671_v0, %v1665_v56  ;;  %v2439_v14 = vld [vmem:[%s5790_s21 + $0xe0] sm:$0xff]  ;;  %v1737_v49 = vld [vmem:[#allocation20 + $0x440] sm:$0xff]  ;;  %v1750_v35 = vld [vmem:[#allocation20 + $0x4a8] sm:$0xff] }
 0x985   :  { %v1743_v50 = vld [vmem:[#allocation20 + $0x470] sm:$0xff]  ;;  %v1761_v0 = vld [vmem:[#allocation20 + $0x500] sm:$0xff] }
 0x986   :  { %2121 = vmatmul.mubr.f32.vlgmr.msra.gmra.mrb[14].mxu0 %v5385_v3  ;;  %2263 = vmatmul.mubr.f32.vlgmr.msra.gmra.mrb[10].mxu1 %v5385_v3  ;;  %v4049_v54 = vpack.c.bf16 %v1743_v50, %v1737_v49  ;;  %v1755_v56 = vld [vmem:[#allocation20 + $0x4d0] sm:$0xff]  ;;  %v1857_v50 = vld [vmem:[#allocation20 + $0x800] sm:$0xff] }
 0x987   :  { %4006 = vmatpush1.bf16.msra.mxu0 %v4005_v2  ;;  %2333 = vmatprep.mubr.f32.mxu0 %v5370_v41  ;;  %v2413_v41 = vld [vmem:[%s5790_s21 + $0x10] sm:$0xff] }
 0x988   :  { %4008 = vmatprep.subr.bf16.mxu0 %v4007_v4  ;;  %4134 = vmatpush3.bf16.msra.mxu1 %v4133_v17  ;;  %v4137_v24 = vpack.c.bf16 %v2414_v19, %v2413_v41  ;;  %v2437_v2 = vld [vmem:[%s5790_s21 + $0xd0] sm:$0xff]  ;;  %v2438_v4 = vld [vmem:[%s5790_s21 + $0xd8] sm:$0xff]  ;;  %v4031_v41 = vpack.c.bf16 %v1696_v59, %v1690_v57  ;;  %v1804_v57 = vld [vmem:[#allocation20 + $0x658] sm:$0xff] }
 0x989   :  { %4136 = vmatprep.subr.bf16.mxu1 %v4135_v18  ;;  %v4151_v10 = vpack.c.bf16 %v2438_v4, %v2437_v2  ;;  %v4155_v18 = vpack.c.bf16 %v2440_v15, %v2439_v14  ;;  %v1689_v19 = vld [vmem:[#allocation20 + $0x2c0] sm:$0xff]  ;;  %v1767_v2 = vld [vmem:[#allocation20 + $0x530] sm:$0xff]  ;;  %v1774_v4 = vld [vmem:[#allocation20 + $0x568] sm:$0xff] }
 0x98a   :  { %v4033_v23 = vpack.c.bf16 %v1695_v20, %v1689_v19  ;;  %v4057_v6 = vpack.c.bf16 %v1767_v2, %v1761_v0  ;;  %v1791_v14 = vld [vmem:[#allocation20 + $0x5f0] sm:$0xff]  ;;  %v1798_v15 = vld [vmem:[#allocation20 + $0x628] sm:$0xff]  ;;  %v1816_v19 = vld [vmem:[#allocation20 + $0x6b8] sm:$0xff] }
 0x98b   :  { %4010 = vmatpush1.bf16.msra.mxu0 %v4009_v13  ;;  %v1683_v13 = vld [vmem:[#allocation20 + $0x290] sm:$0xff]  ;;  %v1882_v0 = vld [vmem:[#allocation20 + $0x8c8] sm:$0xff]  ;;  %v1888_v2 = vld [vmem:[#allocation20 + $0x8f8] sm:$0xff] }
 0x98c   :  { %4012 = vmatprep.subr.bf16.mxu0 %v4011_v16  ;;  %4138 = vmatpush3.bf16.msra.mxu1 %v4137_v24  ;;  %v4153_v16 = vpack.c.bf16 %v2422_v46, %v2421_v11  ;;  %v4029_v17 = vpack.c.bf16 %v1683_v13, %v1677_v9  ;;  %v4035_v24 = vpack.c.bf16 %v1708_v22, %v1702_v21  ;;  %v1779_v9 = vld [vmem:[#allocation20 + $0x590] sm:$0xff]  ;;  %v1792_v11 = vld [vmem:[#allocation20 + $0x5f8] sm:$0xff]  ;;  %v1785_v13 = vld [vmem:[#allocation20 + $0x5c0] sm:$0xff] }
 0x98d   :  { %4140 = vmatprep.subr.bf16.mxu1 %v4139_v27  ;;  %v1714_v27 = vld [vmem:[#allocation20 + $0x388] sm:$0xff]  ;;  %v4065_v59 = vpack.c.bf16 %v1791_v14, %v1785_v13  ;;  %v1809_v22 = vld [vmem:[#allocation20 + $0x680] sm:$0xff]  ;;  %v1900_v14 = vld [vmem:[#allocation20 + $0x958] sm:$0xff] }
 0x98e   :  { %v1894_v13 = vld [vmem:[#allocation20 + $0x928] sm:$0xff] }
 0x98f   :  { %4014 = vmatpush1.bf16.msra.mxu0 %v4013_v25  ;;  %v1701_v25 = vld [vmem:[#allocation20 + $0x320] sm:$0xff] }
 0x990   :  { %4016 = vmatprep.subr.bf16.mxu0 %v4015_v30  ;;  %4142 = vmatpush3.bf16.msra.mxu1 %v4141_v34  ;;  %v4037_v29 = vpack.c.bf16 %v1707_v26, %v1701_v25  ;;  %v4039_v30 = vpack.c.bf16 %v1720_v28, %v1714_v27  ;;  %v4043_v34 = vpack.c.bf16 %v1732_v51, %v1726_v32  ;;  %v1828_v25 = vld [vmem:[#allocation20 + $0x718] sm:$0xff]  ;;  %v1821_v28 = vld [vmem:[#allocation20 + $0x6e0] sm:$0xff] }
 0x991   :  { %4144 = vmatprep.subr.bf16.mxu1 %v4143_v42  ;;  %v1738_v42 = vld [vmem:[#allocation20 + $0x448] sm:$0xff]  ;;  %v1833_v51 = vld [vmem:[#allocation20 + $0x740] sm:$0xff] }
 0x993   :  { %4018 = vmatpush1.bf16.msra.mxu0 %v4017_v39  ;;  %v1725_v39 = vld [vmem:[#allocation20 + $0x3e0] sm:$0xff] }
 0x994   :  { %4020 = vmatprep.subr.bf16.mxu0 %v4019_v47  ;;  %4146 = vmatpush3.bf16.msra.mxu1 %v4145_v52  ;;  %v4045_v44 = vpack.c.bf16 %v1731_v40, %v1725_v39  ;;  %v4047_v47 = vpack.c.bf16 %v1744_v43, %v1738_v42  ;;  %v4051_v52 = vpack.c.bf16 %v1756_v53, %v1750_v35  ;;  %v1852_v39 = vld [vmem:[#allocation20 + $0x7d8] sm:$0xff]  ;;  %v1851_v42 = vld [vmem:[#allocation20 + $0x7d0] sm:$0xff]  ;;  %v1858_v43 = vld [vmem:[#allocation20 + $0x808] sm:$0xff] }
 0x995   :  { %4148 = vmatprep.subr.bf16.mxu1 %v4147_v60  ;;  %v1762_v60 = vld [vmem:[#allocation20 + $0x508] sm:$0xff]  ;;  %v1863_v35 = vld [vmem:[#allocation20 + $0x830] sm:$0xff] }
 0x996   :  { %v1870_v53 = vld [vmem:[#allocation20 + $0x868] sm:$0xff] }
 0x997   :  { %4022 = vmatpush1.bf16.msra.mxu0 %v4021_v55  ;;  %v1749_v55 = vld [vmem:[#allocation20 + $0x4a0] sm:$0xff] }
 0x998   :  { %4024 = vmatprep.subr.bf16.mxu0 %v4023_v63  ;;  %4150 = vmatpush3.bf16.msra.mxu1 %v4149_v7  ;;  %v4053_v62 = vpack.c.bf16 %v1755_v56, %v1749_v55  ;;  %v4055_v63 = vpack.c.bf16 %v1768_v61, %v1762_v60  ;;  %v4059_v7 = vpack.c.bf16 %v1780_v5, %v1774_v4  ;;  %v2424_v55 = vld [vmem:[%s5790_s21 + $0x68] sm:$0xff]  ;;  %v2441_v4 = vld [vmem:[%s5790_s21 + $0xf0] sm:$0xff]  ;;  %v2442_v5 = vld [vmem:[%s5790_s21 + $0xf8] sm:$0xff] }
 0x999   :  { %4152 = vmatprep.subr.bf16.mxu1 %v4151_v10  ;;  %v1786_v10 = vld [vmem:[#allocation20 + $0x5c8] sm:$0xff]  ;;  %v4089_v56 = vpack.c.bf16 %v1863_v35, %v1857_v50  ;;  %v1953_v35 = vld [vmem:[#allocation20 + $0xb00] sm:$0xff] }
 0x99b   :  { %4026 = vmatpush1.bf16.msra.mxu0 %v4025_v8  ;;  %v1773_v8 = vld [vmem:[#allocation20 + $0x560] sm:$0xff] }
 0x99c   :  { %4028 = vmatprep.subr.bf16.mxu0 %v4027_v12  ;;  %4154 = vmatpush3.bf16.msra.mxu1 %v4153_v16  ;;  %v4061_v46 = vpack.c.bf16 %v1779_v9, %v1773_v8  ;;  %v4063_v12 = vpack.c.bf16 %v1792_v11, %v1786_v10  ;;  %v4067_v16 = vpack.c.bf16 %v1804_v57, %v1798_v15  ;;  %v2426_v8 = vld [vmem:[%s5790_s21 + $0x78] sm:$0xff]  ;;  %v2459_v15 = vld [vmem:[%s5790_s21 + $0x180] sm:$0xff]  ;;  %v2460_v57 = vld [vmem:[%s5790_s21 + $0x188] sm:$0xff] }
 0x99d   :  { %4156 = vmatprep.subr.bf16.mxu1 %v4155_v18  ;;  %v1803_v18 = vld [vmem:[#allocation20 + $0x650] sm:$0xff]  ;;  %v4095_v11 = vpack.c.bf16 %v1888_v2, %v1882_v0 }
 0x99f   :  { %4030 = vmatpush1.bf16.msra.mxu0 %v4029_v17  ;;  %v1797_v17 = vld [vmem:[#allocation20 + $0x620] sm:$0xff] }
 0x9a0   :  { %4032 = vmatprep.subr.bf16.mxu0 %v4031_v41  ;;  %v1810_v41 = vld [vmem:[#allocation20 + $0x688] sm:$0xff]  ;;  %v4069_v20 = vpack.c.bf16 %v1803_v18, %v1797_v17  ;;  %v4099_v17 = vpack.c.bf16 %v1900_v14, %v1894_v13  ;;  %v1893_v18 = vld [vmem:[#allocation20 + $0x920] sm:$0xff] }
 0x9a1   :  { %v4071_v21 = vpack.c.bf16 %v1816_v19, %v1810_v41  ;;  %v1899_v41 = vld [vmem:[#allocation20 + $0x950] sm:$0xff]  ;;  %v1906_v19 = vld [vmem:[#allocation20 + $0x988] sm:$0xff]  ;;  %v2444_v13 = vld [vmem:[%s5790_s21 + $0x108] sm:$0xff] }
 0x9a3   :  { %4034 = vmatpush1.bf16.msra.mxu0 %v4033_v23  ;;  %v1815_v23 = vld [vmem:[#allocation20 + $0x6b0] sm:$0xff] }
 0x9a4   :  { %4036 = vmatprep.subr.bf16.mxu0 %v4035_v24  ;;  %v1822_v24 = vld [vmem:[#allocation20 + $0x6e8] sm:$0xff]  ;;  %v4073_v26 = vpack.c.bf16 %v1815_v23, %v1809_v22  ;;  %v1905_v23 = vld [vmem:[#allocation20 + $0x980] sm:$0xff] }
 0x9a5   :  { %v4075_v27 = vpack.c.bf16 %v1828_v25, %v1822_v24  ;;  %v1911_v24 = vld [vmem:[#allocation20 + $0x9b0] sm:$0xff]  ;;  %v1918_v25 = vld [vmem:[#allocation20 + $0x9e8] sm:$0xff] }
 0x9a7   :  { %4038 = vmatpush1.bf16.msra.mxu0 %v4037_v29  ;;  %v1827_v29 = vld [vmem:[#allocation20 + $0x710] sm:$0xff] }
 0x9a8   :  { %4040 = vmatprep.subr.bf16.mxu0 %v4039_v30  ;;  %v1834_v30 = vld [vmem:[#allocation20 + $0x748] sm:$0xff]  ;;  %v4077_v31 = vpack.c.bf16 %v1827_v29, %v1821_v28  ;;  %v1917_v29 = vld [vmem:[#allocation20 + $0x9e0] sm:$0xff] }
 0x9a9   :  { %v4079_v32 = vpack.c.bf16 %v1840_v48, %v1834_v30  ;;  %v1923_v30 = vld [vmem:[#allocation20 + $0xa10] sm:$0xff]  ;;  %v1930_v48 = vld [vmem:[#allocation20 + $0xa48] sm:$0xff] }
 0x9ab   :  { %4042 = vmatpush1.bf16.msra.mxu0 %v4041_v33  ;;  %v1839_v33 = vld [vmem:[#allocation20 + $0x770] sm:$0xff] }
 0x9ac   :  { %4044 = vmatprep.subr.bf16.mxu0 %v4043_v34  ;;  %v1846_v34 = vld [vmem:[#allocation20 + $0x7a8] sm:$0xff] }
 0x9ad   :  { %v4083_v40 = vpack.c.bf16 %v1852_v39, %v1846_v34  ;;  %v1935_v34 = vld [vmem:[#allocation20 + $0xa70] sm:$0xff]  ;;  %v1942_v39 = vld [vmem:[#allocation20 + $0xaa8] sm:$0xff] }
 0x9af   :  { %4046 = vmatpush1.bf16.msra.mxu0 %v4045_v44  ;;  %v1864_v44 = vld [vmem:[#allocation20 + $0x838] sm:$0xff] }
 0x9b0   :  { %4048 = vmatprep.subr.bf16.mxu0 %v4047_v47  ;;  %v4087_v49 = vpack.c.bf16 %v1864_v44, %v1858_v43  ;;  %v1947_v43 = vld [vmem:[#allocation20 + $0xad0] sm:$0xff]  ;;  %v1954_v44 = vld [vmem:[#allocation20 + $0xb08] sm:$0xff] }
 0x9b3   :  { %4050 = vmatpush1.bf16.msra.mxu0 %v4049_v54  ;;  %v1876_v54 = vld [vmem:[#allocation20 + $0x898] sm:$0xff] }
 0x9b4   :  { %4052 = vmatprep.subr.bf16.mxu0 %v4051_v52  ;;  %v2423_v52 = vld [vmem:[%s5790_s21 + $0x60] sm:$0xff]  ;;  %v4091_v61 = vpack.c.bf16 %v1876_v54, %v1870_v53  ;;  %v1966_v54 = vld [vmem:[#allocation20 + $0xb68] sm:$0xff] }
 0x9b5   :  { %v4157_v60 = vpack.c.bf16 %v2424_v55, %v2423_v52  ;;  %v1959_v53 = vld [vmem:[#allocation20 + $0xb30] sm:$0xff]  ;;  %v1972_v52 = vld [vmem:[#allocation20 + $0xb98] sm:$0xff] }
 0x9b6   :  { %v4121_v55 = vpack.c.bf16 %v1959_v53, %v1953_v35  ;;  %v2471_v35 = vld [vmem:[%s5790_s21 + $0x1e0] sm:$0xff]  ;;  %v2472_v53 = vld [vmem:[%s5790_s21 + $0x1e8] sm:$0xff] }
 0x9b7   :  { %4054 = vmatpush1.bf16.msra.mxu0 %v4053_v62  ;;  %v1869_v62 = vld [vmem:[#allocation20 + $0x860] sm:$0xff]  ;;  %4158 = vmatpush3.bf16.msra.mxu1 %v4157_v60 }
 0x9b8   :  { %4056 = vmatprep.subr.bf16.mxu0 %v4055_v63  ;;  %v1875_v63 = vld [vmem:[#allocation20 + $0x890] sm:$0xff]  ;;  %v1965_v60 = vld [vmem:[#allocation20 + $0xb60] sm:$0xff] }
 0x9b9   :  { %v4093_v9 = vpack.c.bf16 %v1875_v63, %v1869_v62  ;;  %v1978_v62 = vld [vmem:[#allocation20 + $0xbc8] sm:$0xff]  ;;  %v1984_v63 = vld [vmem:[#allocation20 + $0xbf8] sm:$0xff] }
 0x9ba   :  { %v4127_v2 = vpack.c.bf16 %v1984_v63, %v1978_v62 }
 0x9bb   :  { %4058 = vmatpush1.bf16.msra.mxu0 %v4057_v6  ;;  %v4159_v6 = vpack.c.bf16 %v2442_v5, %v2441_v4  ;;  %v1977_v4 = vld [vmem:[#allocation20 + $0xbc0] sm:$0xff]  ;;  %v1983_v5 = vld [vmem:[#allocation20 + $0xbf0] sm:$0xff] }
 0x9bc   :  { %4060 = vmatprep.subr.bf16.mxu0 %v4059_v7  ;;  %v2425_v7 = vld [vmem:[%s5790_s21 + $0x70] sm:$0xff] }
 0x9bd   :  { %v4161_v10 = vpack.c.bf16 %v2426_v8, %v2425_v7  ;;  %4160 = vmatprep.subr.bf16.mxu1 %v4159_v6  ;;  %v4129_v6 = vpack.c.bf16 %v1983_v5, %v1977_v4  ;;  %v2491_v5 = vld [vmem:[%s5790_s21 + $0x280] sm:$0xff] }
 0x9bf   :  { %4062 = vmatpush1.bf16.msra.mxu0 %v4061_v46  ;;  %v1881_v46 = vld [vmem:[#allocation20 + $0x8c0] sm:$0xff]  ;;  %4162 = vmatpush3.bf16.msra.mxu1 %v4161_v10 }
 0x9c0   :  { %4064 = vmatprep.subr.bf16.mxu0 %v4063_v12  ;;  %v1887_v12 = vld [vmem:[#allocation20 + $0x8f0] sm:$0xff] }
 0x9c3   :  { %4066 = vmatpush1.bf16.msra.mxu0 %v4065_v59  ;;  %v4163_v59 = vpack.c.bf16 %v2460_v57, %v2459_v15  ;;  %v2461_v15 = vld [vmem:[%s5790_s21 + $0x190] sm:$0xff]  ;;  %v2462_v57 = vld [vmem:[%s5790_s21 + $0x198] sm:$0xff] }
 0x9c4   :  { %4068 = vmatprep.subr.bf16.mxu0 %v4067_v16  ;;  %v4097_v16 = vpack.c.bf16 %v1887_v12, %v1881_v46 }
 0x9c5   :  { %4164 = vmatprep.subr.bf16.mxu1 %v4163_v59 }
 0x9c6   :  { %2334 = vmatmul.mubr.f32.vlgmr.msra.gmra.mrb[16].mxu0 %v5372_v45  ;;  %v4081_v45 = vpack.c.bf16 %v1839_v33, %v1833_v51  ;;  %v1929_v33 = vld [vmem:[#allocation20 + $0xa40] sm:$0xff] }
 0x9c7   :  { %4070 = vmatpush1.bf16.msra.mxu0 %v4069_v20  ;;  %2404 = vmatprep.mubr.f32.mxu0 %v5380_v58  ;;  %v1845_v58 = vld [vmem:[#allocation20 + $0x7a0] sm:$0xff]  ;;  %v1912_v20 = vld [vmem:[#allocation20 + $0x9b8] sm:$0xff] }
 0x9c8   :  { %4072 = vmatprep.subr.bf16.mxu0 %v4071_v21  ;;  %v4085_v47 = vpack.c.bf16 %v1851_v42, %v1845_v58  ;;  %v4101_v21 = vpack.c.bf16 %v1899_v41, %v1893_v18  ;;  %v4103_v22 = vpack.c.bf16 %v1912_v20, %v1906_v19  ;;  %v1941_v42 = vld [vmem:[#allocation20 + $0xaa0] sm:$0xff]  ;;  %v4167_v41 = vpack.c.bf16 %v2462_v57, %v2461_v15  ;;  %v2446_v20 = vld [vmem:[%s5790_s21 + $0x118] sm:$0xff] }
 0x9c9   :  { %v2445_v19 = vld [vmem:[%s5790_s21 + $0x110] sm:$0xff]  ;;  %v2494_v15 = vld [vmem:[%s5790_s21 + $0x298] sm:$0xff] }
 0x9cb   :  { %4074 = vmatpush1.bf16.msra.mxu0 %v4073_v26  ;;  %v1924_v26 = vld [vmem:[#allocation20 + $0xa18] sm:$0xff] }
 0x9cc   :  { %4076 = vmatprep.subr.bf16.mxu0 %v4075_v27  ;;  %v4105_v27 = vpack.c.bf16 %v1911_v24, %v1905_v23  ;;  %v4107_v28 = vpack.c.bf16 %v1924_v26, %v1918_v25  ;;  %v2464_v23 = vld [vmem:[%s5790_s21 + $0x1a8] sm:$0xff]  ;;  %v4169_v25 = vpack.c.bf16 %v2446_v20, %v2445_v19 }
 0x9cd   :  { %v2496_v19 = vld [vmem:[%s5790_s21 + $0x2a8] sm:$0xff] }
 0x9cf   :  { %4078 = vmatpush1.bf16.msra.mxu0 %v4077_v31  ;;  %v1936_v31 = vld [vmem:[#allocation20 + $0xa78] sm:$0xff] }
 0x9d0   :  { %4080 = vmatprep.subr.bf16.mxu0 %v4079_v32  ;;  %v4109_v32 = vpack.c.bf16 %v1923_v30, %v1917_v29  ;;  %v4111_v51 = vpack.c.bf16 %v1936_v31, %v1930_v48  ;;  %v2465_v29 = vld [vmem:[%s5790_s21 + $0x1b0] sm:$0xff]  ;;  %v2466_v30 = vld [vmem:[%s5790_s21 + $0x1b8] sm:$0xff] }
 0x9d1   :  { %v4175_v31 = vpack.c.bf16 %v2466_v30, %v2465_v29  ;;  %v2482_v29 = vld [vmem:[%s5790_s21 + $0x238] sm:$0xff]  ;;  %v2499_v30 = vld [vmem:[%s5790_s21 + $0x2c0] sm:$0xff] }
 0x9d3   :  { %4082 = vmatpush1.bf16.msra.mxu0 %v4081_v45  ;;  %v1948_v45 = vld [vmem:[#allocation20 + $0xad8] sm:$0xff] }
 0x9d4   :  { %4084 = vmatprep.subr.bf16.mxu0 %v4083_v40  ;;  %v4113_v40 = vpack.c.bf16 %v1935_v34, %v1929_v33  ;;  %v4115_v58 = vpack.c.bf16 %v1948_v45, %v1942_v39  ;;  %v2467_v33 = vld [vmem:[%s5790_s21 + $0x1c0] sm:$0xff]  ;;  %v2468_v34 = vld [vmem:[%s5790_s21 + $0x1c8] sm:$0xff] }
 0x9d5   :  { %v4179_v45 = vpack.c.bf16 %v2468_v34, %v2467_v33  ;;  %v2484_v33 = vld [vmem:[%s5790_s21 + $0x248] sm:$0xff]  ;;  %v2501_v34 = vld [vmem:[%s5790_s21 + $0x2d0] sm:$0xff] }
 0x9d7   :  { %4086 = vmatpush1.bf16.msra.mxu0 %v4085_v47  ;;  %v1960_v47 = vld [vmem:[#allocation20 + $0xb38] sm:$0xff] }
 0x9d8   :  { %4088 = vmatprep.subr.bf16.mxu0 %v4087_v49  ;;  %v4117_v49 = vpack.c.bf16 %v1947_v43, %v1941_v42  ;;  %v4119_v50 = vpack.c.bf16 %v1960_v47, %v1954_v44  ;;  %v2469_v42 = vld [vmem:[%s5790_s21 + $0x1d0] sm:$0xff]  ;;  %v2470_v43 = vld [vmem:[%s5790_s21 + $0x1d8] sm:$0xff] }
 0x9d9   :  { %v4183_v47 = vpack.c.bf16 %v2470_v43, %v2469_v42  ;;  %v2486_v42 = vld [vmem:[%s5790_s21 + $0x258] sm:$0xff]  ;;  %v2503_v43 = vld [vmem:[%s5790_s21 + $0x2e0] sm:$0xff] }
 0x9db   :  { %4090 = vmatpush1.bf16.msra.mxu0 %v4089_v56  ;;  %v4123_v56 = vpack.c.bf16 %v1972_v52, %v1966_v54  ;;  %v4187_v52 = vpack.c.bf16 %v2472_v53, %v2471_v35  ;;  %v2488_v35 = vld [vmem:[%s5790_s21 + $0x268] sm:$0xff]  ;;  %v2505_v53 = vld [vmem:[%s5790_s21 + $0x2f0] sm:$0xff] }
 0x9dc   :  { %4092 = vmatprep.subr.bf16.mxu0 %v4091_v61  ;;  %v1971_v61 = vld [vmem:[#allocation20 + $0xb90] sm:$0xff] }
 0x9dd   :  { %v4125_v0 = vpack.c.bf16 %v1971_v61, %v1965_v60  ;;  %v2473_v60 = vld [vmem:[%s5790_s21 + $0x1f0] sm:$0xff]  ;;  %v2474_v61 = vld [vmem:[%s5790_s21 + $0x1f8] sm:$0xff] }
 0x9de   :  { %v4191_v63 = vpack.c.bf16 %v2474_v61, %v2473_v60  ;;  %v2490_v60 = vld [vmem:[%s5790_s21 + $0x278] sm:$0xff] }
 0x9df   :  { %4094 = vmatpush1.bf16.msra.mxu0 %v4093_v9 }
 0x9e0   :  { %4096 = vmatprep.subr.bf16.mxu0 %v4095_v11 }
 0x9e3   :  { %4098 = vmatpush1.bf16.msra.mxu0 %v4097_v16 }
 0x9e4   :  { %4100 = vmatprep.subr.bf16.mxu0 %v4099_v17 }
 0x9e7   :  { %4102 = vmatpush1.bf16.msra.mxu0 %v4101_v21 }
 0x9e8   :  { %4104 = vmatprep.subr.bf16.mxu0 %v4103_v22  ;;  %v2463_v22 = vld [vmem:[%s5790_s21 + $0x1a0] sm:$0xff] }
 0x9e9   :  { %v4171_v26 = vpack.c.bf16 %v2464_v23, %v2463_v22  ;;  %v2479_v22 = vld [vmem:[%s5790_s21 + $0x220] sm:$0xff]  ;;  %v2480_v23 = vld [vmem:[%s5790_s21 + $0x228] sm:$0xff] }
 0x9eb   :  { %4106 = vmatpush1.bf16.msra.mxu0 %v4105_v27  ;;  %v2447_v27 = vld [vmem:[%s5790_s21 + $0x120] sm:$0xff] }
 0x9ec   :  { %4108 = vmatprep.subr.bf16.mxu0 %v4107_v28  ;;  %v2448_v28 = vld [vmem:[%s5790_s21 + $0x128] sm:$0xff] }
 0x9ed   :  { %v4173_v48 = vpack.c.bf16 %v2448_v28, %v2447_v27  ;;  %v2481_v28 = vld [vmem:[%s5790_s21 + $0x230] sm:$0xff] }
 0x9ef   :  { %4110 = vmatpush1.bf16.msra.mxu0 %v4109_v32  ;;  %v2449_v32 = vld [vmem:[%s5790_s21 + $0x130] sm:$0xff] }
 0x9f0   :  { %4112 = vmatprep.subr.bf16.mxu0 %v4111_v51  ;;  %v2450_v51 = vld [vmem:[%s5790_s21 + $0x138] sm:$0xff] }
 0x9f1   :  { %v4177_v39 = vpack.c.bf16 %v2450_v51, %v2449_v32  ;;  %v2483_v51 = vld [vmem:[%s5790_s21 + $0x240] sm:$0xff] }
 0x9f3   :  { %4114 = vmatpush1.bf16.msra.mxu0 %v4113_v40  ;;  %v2451_v40 = vld [vmem:[%s5790_s21 + $0x140] sm:$0xff] }
 0x9f4   :  { %4116 = vmatprep.subr.bf16.mxu0 %v4115_v58  ;;  %v2452_v58 = vld [vmem:[%s5790_s21 + $0x148] sm:$0xff] }
 0x9f5   :  { %v4181_v44 = vpack.c.bf16 %v2452_v58, %v2451_v40  ;;  %v2485_v58 = vld [vmem:[%s5790_s21 + $0x250] sm:$0xff] }
 0x9f7   :  { %4118 = vmatpush1.bf16.msra.mxu0 %v4117_v49  ;;  %v2453_v49 = vld [vmem:[%s5790_s21 + $0x150] sm:$0xff] }
 0x9f8   :  { %4120 = vmatprep.subr.bf16.mxu0 %v4119_v50  ;;  %v2454_v50 = vld [vmem:[%s5790_s21 + $0x158] sm:$0xff] }
 0x9f9   :  { %v4185_v54 = vpack.c.bf16 %v2454_v50, %v2453_v49  ;;  %v2487_v50 = vld [vmem:[%s5790_s21 + $0x260] sm:$0xff] }
 0x9fb   :  { %4122 = vmatpush1.bf16.msra.mxu0 %v4121_v55  ;;  %v2455_v55 = vld [vmem:[%s5790_s21 + $0x160] sm:$0xff] }
 0x9fc   :  { %4124 = vmatprep.subr.bf16.mxu0 %v4123_v56  ;;  %v2456_v56 = vld [vmem:[%s5790_s21 + $0x168] sm:$0xff] }
 0x9fd   :  { %v4189_v62 = vpack.c.bf16 %v2456_v56, %v2455_v55  ;;  %v2489_v56 = vld [vmem:[%s5790_s21 + $0x270] sm:$0xff] }
 0x9fe   :  { %v4225_v61 = vpack.c.bf16 %v2490_v60, %v2489_v56 }
 0x9ff   :  { %4126 = vmatpush1.bf16.msra.mxu0 %v4125_v0  ;;  %v2457_v0 = vld [vmem:[%s5790_s21 + $0x170] sm:$0xff] }
 0xa00   :  { %4128 = vmatprep.subr.bf16.mxu0 %v4127_v2  ;;  %v2458_v2 = vld [vmem:[%s5790_s21 + $0x178] sm:$0xff] }
 0xa03   :  { %4130 = vmatpush1.bf16.msra.mxu0 %v4129_v6  ;;  %v2492_v6 = vld [vmem:[%s5790_s21 + $0x288] sm:$0xff] }
 0xa06   :  { %2405 = vmatmul.mubr.f32.vlgmr.msra.gmra.mrb[16].mxu0 %v5385_v3  ;;  %v2443_v3 = vld [vmem:[%s5790_s21 + $0x100] sm:$0xff] }
 0xa07   :  { %v4165_v17 = vpack.c.bf16 %v2444_v13, %v2443_v3  ;;  %v2476_v3 = vld [vmem:[%s5790_s21 + $0x208] sm:$0xff] }
 0xa59   :  { %v5495_v7 = vpop.f32.mrb[14].mxu0  ;;  %v5497_v8 = vpop.f32.mrb[10].mxu1 }
 0xa5a   :  { %v2511_v9 = vmul.f32 %v5495_v7, %v5495_v7  ;;  %v5501_v10 = vpop.f32.mrb[15].mxu0  ;;  %v5503_v11 = vpop.f32.mrb[11].mxu1  ;;  %v2513_v4 = vmul.f32 %v5497_v8, %v5497_v8 }
 0xa5b   :  { %v2512_v46 = vmul.f32 %v5501_v10, %v5501_v10  ;;  %v2514_v12 = vmul.f32 %v5503_v11, %v5503_v11 }
 0xa5c   :  { %v2523_v14 = vrot.slane %v2511_v9, 6  ;;  %v4193_v9 = vpack.c.bf16 %v2458_v2, %v2457_v0  ;;  %v2525_v13 = vrot.slane %v2513_v4, 6 }
 0xa5d   :  { %v2524_v59 = vrot.slane %v2512_v46, 6  ;;  %v2526_v16 = vrot.slane %v2514_v12, 6  ;;  %v4195_v46 = vpack.c.bf16 %v2492_v6, %v2491_v5  ;;  %v2475_v12 = vld [vmem:[%s5790_s21 + $0x200] sm:$0xff] }
 0xa5e   :  { %v2535_v21 = vsel %vm345_vm2, %v5495_v7, %v2523_v14  ;;  %v2493_v14 = vld [vmem:[%s5790_s21 + $0x290] sm:$0xff]  ;;  %v4197_v57 = vpack.c.bf16 %v2476_v3, %v2475_v12 }
 0xa5f   :  { %v2536_v18 = vsel %vm345_vm2, %v5501_v10, %v2524_v59  ;;  %v2538_v24 = vsel %vm345_vm2, %v5503_v11, %v2526_v16  ;;  %v4199_v59 = vpack.c.bf16 %v2494_v15, %v2493_v14  ;;  %v2477_v16 = vld [vmem:[%s5790_s21 + $0x210] sm:$0xff] }
 0xa60   :  { %2605 = vmatprep.mubr.f32.mxu1 %v2536_v18  ;;  %v2537_v18 = vsel %vm345_vm2, %v5497_v8, %v2525_v13  ;;  %v2507_v13 = vld [vmem:[#allocation22] sm:$0x77]  ;;  %v2508_v14 = vld [vmem:[#allocation22 + $0x8] sm:$0x77] }
 0xa61   :  { %2606 = vmatmul.mubr.f32.vlgmr.msra.gmra.mrb[12].mxu1 %v2535_v21  ;;  %v2785_v15 = vcombine.high %v2507_v13, %v2507_v13 }
 0xa62   :  { %4166 = vmatpush3.bf16.msra.mxu1 %v4165_v17  ;;  %2675 = vmatprep.mubr.f32.mxu1 %v2538_v24  ;;  %v2478_v17 = vld [vmem:[%s5790_s21 + $0x218] sm:$0xff]  ;;  %v2497_v24 = vld [vmem:[%s5790_s21 + $0x2b0] sm:$0xff] }
 0xa63   :  { %4168 = vmatprep.subr.bf16.mxu1 %v4167_v41  ;;  %v2495_v41 = vld [vmem:[%s5790_s21 + $0x2a0] sm:$0xff]  ;;  %v4201_v20 = vpack.c.bf16 %v2478_v17, %v2477_v16 }
 0xa64   :  { %v4203_v21 = vpack.c.bf16 %v2496_v19, %v2495_v41 }
 0xa66   :  { %4170 = vmatpush3.bf16.msra.mxu1 %v4169_v25  ;;  %v2498_v25 = vld [vmem:[%s5790_s21 + $0x2b8] sm:$0xff] }
 0xa67   :  { %4172 = vmatprep.subr.bf16.mxu1 %v4171_v26  ;;  %v4205_v26 = vpack.c.bf16 %v2480_v23, %v2479_v22  ;;  %v4207_v27 = vpack.c.bf16 %v2498_v25, %v2497_v24 }
 0xa6a   :  { %4174 = vmatpush3.bf16.msra.mxu1 %v4173_v48  ;;  %v2500_v48 = vld [vmem:[%s5790_s21 + $0x2c8] sm:$0xff] }
 0xa6b   :  { %4176 = vmatprep.subr.bf16.mxu1 %v4175_v31  ;;  %v4209_v31 = vpack.c.bf16 %v2482_v29, %v2481_v28  ;;  %v4211_v32 = vpack.c.bf16 %v2500_v48, %v2499_v30 }
 0xa6e   :  { %4178 = vmatpush3.bf16.msra.mxu1 %v4177_v39  ;;  %v2502_v39 = vld [vmem:[%s5790_s21 + $0x2d8] sm:$0xff] }
 0xa6f   :  { %4180 = vmatprep.subr.bf16.mxu1 %v4179_v45  ;;  %v4213_v45 = vpack.c.bf16 %v2484_v33, %v2483_v51  ;;  %v4215_v40 = vpack.c.bf16 %v2502_v39, %v2501_v34 }
 0xa72   :  { %4182 = vmatpush3.bf16.msra.mxu1 %v4181_v44  ;;  %v2504_v44 = vld [vmem:[%s5790_s21 + $0x2e8] sm:$0xff] }
 0xa73   :  { %4184 = vmatprep.subr.bf16.mxu1 %v4183_v47  ;;  %v4217_v47 = vpack.c.bf16 %v2486_v42, %v2485_v58  ;;  %v4219_v49 = vpack.c.bf16 %v2504_v44, %v2503_v43  ;;  %v2510_v43 = vld [vmem:[#allocation23] sm:$0x3] }
 0xa76   :  { %4186 = vmatpush3.bf16.msra.mxu1 %v4185_v54  ;;  %v2506_v54 = vld [vmem:[%s5790_s21 + $0x2f8] sm:$0xff]  ;;  %s4657_s21 = smov [#allocation25]  }
 0xa77   :  { %4188 = vmatprep.subr.bf16.mxu1 %v4187_v52  ;;  %v4221_v52 = vpack.c.bf16 %v2488_v35, %v2487_v50  ;;  %v4223_v55 = vpack.c.bf16 %v2506_v54, %v2505_v53  ;;  %v2509_v35 = vld [vmem:[#allocation22 + $0x10] sm:$0x77]  ;;  %s3125_s17 = sshll.u32 %s4657_s21, 4  ;;  %s3126_s17 = int_to_ptr.vmem [resolvable:$true] %s3125_s17 }
 0xa78   :  { %v2787_v54 = vcombine.high %v2509_v35, %v2509_v35  ;;  %s4591_s19 = scalar_lea.vmem %s3126_s17, 192  ;;  %p4596_p1 = scmp.lt.s32.totalorder %s3126_s17, %s3126_s17 }
 0xa79   :  { %p4592_p0 = scmp.ne.s32.totalorder %s3126_s17, %s4591_s19  ;;  %p4597_p2 = scmp.lt.s32.totalorder %s4591_s19, %s4591_s19 }
 0xa7a   :  { %4190 = vmatpush3.bf16.msra.mxu1 %v4189_v62 }
 0xa7b   :  { %4192 = vmatprep.subr.bf16.mxu1 %v4191_v63  ;;  %p4598_p3 = por %p4597_p2, %p4596_p1 }
 0xa7d   :  { %p4599_p4 = pnand %p4598_p3, %p4592_p0 }
 0xa7e   :  { %4194 = vmatpush3.bf16.msra.mxu1 %v4193_v9 }
 0xa7f   :  { %4196 = vmatprep.subr.bf16.mxu1 %v4195_v46 }
 0xa81   :  { %2676 = vmatmul.mubr.f32.vlgmr.msra.gmra.mrb[14].mxu1 %v2537_v18 }
 0xa82   :  { %4198 = vmatpush3.bf16.msra.mxu1 %v4197_v57  ;;  %v2786_v57 = vcombine.high %v2508_v14, %v2508_v14 }
 0xa83   :  { %4200 = vmatprep.subr.bf16.mxu1 %v4199_v59 }
 0xa86   :  { %4202 = vmatpush3.bf16.msra.mxu1 %v4201_v20 }
 0xa87   :  { %4204 = vmatprep.subr.bf16.mxu1 %v4203_v21 }
 0xa8a   :  { %4206 = vmatpush3.bf16.msra.mxu1 %v4205_v26 }
 0xa8b   :  { %4208 = vmatprep.subr.bf16.mxu1 %v4207_v27 }
 0xa8e   :  { %4210 = vmatpush3.bf16.msra.mxu1 %v4209_v31 }
 0xa8f   :  { %4212 = vmatprep.subr.bf16.mxu1 %v4211_v32 }
 0xa92   :  { %4214 = vmatpush3.bf16.msra.mxu1 %v4213_v45 }
 0xa93   :  { %4216 = vmatprep.subr.bf16.mxu1 %v4215_v40 }
 0xa96   :  { %4218 = vmatpush3.bf16.msra.mxu1 %v4217_v47 }
 0xa97   :  { %4220 = vmatprep.subr.bf16.mxu1 %v4219_v49 }
 0xa9a   :  { %4222 = vmatpush3.bf16.msra.mxu1 %v4221_v52 }
 0xa9b   :  { %4224 = vmatprep.subr.bf16.mxu1 %v4223_v55 }
 0xa9e   :  { %4226 = vmatpush3.bf16.msra.mxu1 %v4225_v61 }
 0xa9f   :  { %3147 = vmatprep.subr.msk.mxu1 %vm2792_vm9, %v2785_v15 }
 0xad9   :  { %v5705_v62 = vpop.f32.mrb[16].mxu0 }
 0xada   :  { %v2515_v63 = vmul.f32 %v5705_v62, %v5705_v62  ;;  %v5709_v0 = vpop.f32.mrb[17].mxu0 }
 0xadb   :  { %v2516_v2 = vmul.f32 %v5709_v0, %v5709_v0 }
 0xadc   :  { %v2527_v4 = vrot.slane %v2515_v63, 6 }
 0xadd   :  { %v2528_v5 = vrot.slane %v2516_v2, 6 }
 0xade   :  { %v2539_v9 = vsel %vm345_vm2, %v5705_v62, %v2527_v4 }
 0xadf   :  { %v2540_v6 = vsel %vm345_vm2, %v5709_v0, %v2528_v5 }
 0xae0   :  { %2745 = vmatprep.mubr.f32.mxu1 %v2540_v6 }
 0xae1   :  { %2746 = vmatmul.mubr.f32.vlgmr.msra.gmra.mrb[16].mxu1 %v2539_v9 }
 0xae2   :  { %2869 = vmatprep.mubr.f32.mxu1 %v4655_v1  ;;  %3148 = vmatpush1.msk.msra.mxu1 %vm2792_vm9, %v2507_v13 }
 0xae3   :  { %3150 = vmatprep.subr.msk.mxu1 %vm2792_vm9, %v2786_v57 }
 0xb34   :  { %v3321_v46 = vpop.f32.mrb[12].mxu1 }
 0xb35   :  { %v3322_v12 = vpop.f32.mrb[13].mxu1 }
 0xb36   :  { %v3323_v3 = vadd.f32 %v3322_v12, %v3321_v46 }
 0xb54   :  { %v3356_v59 = vpop.f32.mrb[14].mxu1 }
 0xb55   :  { %v3357_v16 = vpop.f32.mrb[15].mxu1 }
 0xb56   :  { %v3358_v17 = vadd.f32 %v3357_v16, %v3356_v59 }
 0xb58   :  { %v2678_v18 = vadd.f32 %v3358_v17, %v3323_v3 }
 0xbb4   :  { %v3391_v41 = vpop.f32.mrb[16].mxu1 }
 0xbb5   :  { %v3392_v19 = vpop.f32.mrb[17].mxu1 }
 0xbb6   :  { %v3393_v20 = vadd.f32 %v3392_v19, %v3391_v41 }
 0xbb8   :  { %v2748_v21 = vadd.f32 %v3393_v20, %v2678_v18 }
 0xbba   :  { %v2752_v22 = vsel %vm2751_vm10, %v2748_v21, 0.0  ;;  %v2761_v23 = vrot.slane %v2748_v21, 2  ;;  %v4656_v21 = vmov 1983009808  }
 0xbbb   :  { %v2753_v24 = vrot.slane %v2752_v22, 4 }
 0xbbc   :  { %v2763_v25 = vsel %vm2751_vm10, %v2761_v23, 0.0 }
 0xbbd   :  { %v2754_v26 = vadd.f32 %v2753_v24, %v2752_v22  ;;  %v2764_v27 = vrot.slane %v2763_v25, 4  ;;  %v3093_v22 = vunpack.c.l.s4 %v4656_v21 }
 0xbbf   :  { %v2755_v28 = vrot.slane %v2754_v26, 2  ;;  %v2765_v29 = vadd.f32 %v2764_v27, %v2763_v25  ;;  %v3094_v25 = vunpack.c.0.s8 %v3093_v22 }
 0xbc1   :  { %v2756_v30 = vadd.f32 %v2755_v28, %v2754_v26  ;;  %v2766_v48 = vrot.slane %v2765_v29, 2 }
 0xbc3   :  { %v2757_v31 = vrot.slane %v2756_v30, 1  ;;  %v2767_v32 = vadd.f32 %v2766_v48, %v2765_v29 }
 0xbc5   :  { %v2758_v51 = vadd.f32 %v2757_v31, %v2756_v30  ;;  %v2768_v33 = vrot.slane %v2767_v32, 1 }
 0xbc7   :  { %v2759_v34 = vmul.f32 0.001953125, %v2758_v51  ;;  %v2769_v39 = vadd.f32 %v2768_v33, %v2767_v32 }
 0xbc9   :  { %v2770_v45 = vmul.f32 0.001953125, %v2769_v39  ;;  %v2771_v40 = vmul.f32 %v2759_v34, %v2759_v34 }
 0xbcb   :  { %v2772_v58 = vsub.f32 %v2770_v45, %v2771_v40 }
 0xbcd   :  { %v2773_v42 = vadd.f32 1e-05, %v2772_v58 }
 0xbcf   :  { %4269 = vrsqrt.f32 %v2773_v42 }
 0xbd9   :  { %v4270_v44 = vpop.eup %4269 }
 0xbda   :  { %v2775_v47 = vmul.f32 %v4270_v44, %v2510_v43 }
 0xbdc   :  { %v2776_v49 = vmul.f32 %v2775_v47, %v2759_v34 }
 0xbde   :  { %v2778_v50 = vrot.slane %v2776_v49, 7 }
 0xbe0   :  { %v2780_v53 = vsub.f32 %v2510_v43, %v2778_v50 }
 0xbe2   :  { %v2781_v52 = vsel %vm447_vm4, %v2775_v47, %v2780_v53 }
 0xbe3   :  { %3149 = vmatmul.mubr.msk.f32.vlgmr.msra.gmra.mrb[18].mxu1 %vm2788_vm11, %v2781_v52 }
 0xbe4   :  { %3151 = vmatpush1.msk.msra.mxu1 %vm2792_vm9, %v2508_v14  ;;  %2940 = vmatprep.mubr.f32.mxu1 %v4655_v1 }
 0xbe5   :  { %3153 = vmatprep.subr.msk.mxu1 %vm2792_vm9, %v2787_v54 }
 0xbe7   :  { %3152 = vmatmul.mubr.msk.f32.vlgmr.msra.gmra.mrb[20].mxu1 %vm2788_vm11, %v2781_v52 }
 0xbe8   :  { %3154 = vmatpush1.msk.msra.mxu1 %vm2792_vm9, %v2509_v35  ;;  %3011 = vmatprep.mubr.f32.mxu1 %v4655_v1 }
 0xbeb   :  { %3155 = vmatmul.mubr.msk.f32.vlgmr.msra.gmra.mrb[22].mxu1 %vm2788_vm11, %v2781_v52 }
 0xcb6   :  { %v2871_v55 = vpop.f32.mrb[18].mxu1 }
 0xcb7   :  { %v3021_v56 = vrot.slane %v2871_v55, %v5085_v37  ;;  %v2873_v60 = vpop.f32.mrb[19].mxu1  ;;  %v3051_v2 = vrot.slane %v2871_v55, %v5088_v38 }
 0xcb8   :  { %v3025_v61 = vrot.slane %v2873_v60, %v5085_v37  ;;  %v3055_v5 = vrot.slane %v2873_v60, %v5088_v38 }
 0xcb9   :  { %v3042_v63 = vmul.f32 %v3021_v56, %v5495_v7 }
 0xcba   :  { %v3043_v4 = vmul.f32 %v3025_v61, %v5501_v10  ;;  %v2942_v6 = vpop.f32.mrb[20].mxu1 }
 0xcbb   :  { %v3072_v9 = vadd.f32 %v3051_v2, %v3042_v63  ;;  %v3029_v46 = vrot.slane %v2942_v6, %v5085_v37  ;;  %v2944_v1 = vpop.f32.mrb[21].mxu1  ;;  %v3059_v14 = vrot.slane %v2942_v6, %v5088_v38 }
 0xcbc   :  { %v3073_v12 = vadd.f32 %v3055_v5, %v3043_v4  ;;  %v3033_v3 = vrot.slane %v2944_v1, %v5085_v37  ;;  %v3063_v10 = vrot.slane %v2944_v1, %v5088_v38 }
 0xcbd   :  { %4271 = vtanh.f32 %v3072_v9  ;;  %v3044_v13 = vmul.f32 %v3029_v46, %v5497_v8 }
 0xcbe   :  { %4273 = vtanh.f32 %v3073_v12  ;;  %v3045_v7 = vmul.f32 %v3033_v3, %v5503_v11  ;;  %v3013_v15 = vpop.f32.mrb[22].mxu1 }
 0xcbf   :  { %v3074_v57 = vadd.f32 %v3059_v14, %v3044_v13  ;;  %v3037_v59 = vrot.slane %v3013_v15, %v5085_v37  ;;  %v3015_v16 = vpop.f32.mrb[23].mxu1  ;;  %v3067_v8 = vrot.slane %v3013_v15, %v5088_v38 }
 0xcc0   :  { %v3075_v17 = vadd.f32 %v3063_v10, %v3045_v7  ;;  %v3041_v18 = vrot.slane %v3015_v16, %v5085_v37  ;;  %v3071_v11 = vrot.slane %v3015_v16, %v5088_v38 }
 0xcc1   :  { %4275 = vtanh.f32 %v3074_v57  ;;  %v3046_v41 = vmul.f32 %v3037_v59, %v5705_v62  ;;  %v3097_v62 = vsub.s32 %v3094_v25, %v5082_v36 }
 0xcc2   :  { %4277 = vtanh.f32 %v3075_v17  ;;  %v3047_v19 = vmul.f32 %v3041_v18, %v5709_v0 }
 0xcc3   :  { %v3076_v20 = vadd.f32 %v3067_v8, %v3046_v41 }
 0xcc4   :  { %v3077_v23 = vadd.f32 %v3071_v11, %v3047_v19 }
 0xcc5   :  { %4279 = vtanh.f32 %v3076_v20 }
 0xcc6   :  { %4281 = vtanh.f32 %v3077_v23 }
 0xcc7   :  { %v4272_v24 = vpop.eup %4271 }
 0xcc8   :  { %v4274_v26 = vpop.eup %4273 }
 0xcc9   :  { %v3090_v37 = vcombine.low %v4272_v24, %v4274_v26 }
 0xccb   :  { %v4276_v27 = vpop.eup %4275  ;;  %v3098_v30 = vrot.slane %v3090_v37, %v3097_v62 }
 0xccc   :  { %v4278_v28 = vpop.eup %4277 }
 0xccd   :  { %v3091_v29 = vcombine.low %v4276_v27, %v4278_v28 }
 0xccf   :  { %v4280_v0 = vpop.eup %4279  ;;  %v3105_v38 = vrot.slane %v3091_v29, %v3097_v62 }
 0xcd0   :  { %v4282_v48 = vpop.eup %4281 }
 0xcd1   :  { %v3106_v31 = vcombine.low %v3098_v30, %v3105_v38  ;;  %v3107_v32 = vcombine.low %v4280_v0, %v4282_v48 }
 0xcd3   :  { %3117 = vst [vmem:[#allocation25] sm:$0xff] %v3106_v31  ;;  %3156 = vst.sshfl [vmem:[#allocation25 + $0x8] sm:$0x33 pattern:$0x76325410] %v3107_v32 }
 0xcd4   :  { %4602 = shalt.err (!%p4599_p4)
}
 0xcd5   :  { %s5791_s3 = sld [smem:[#allocation39_spill]] }
 0xcdb   :  { %s4603_s15 = scalar_lea.hbm %s5791_s3, 192 }
 0xcdc   :  { %p4604_p5 = scmp.ne.s32.totalorder %s5791_s3, %s4603_s15  ;;  %p4607_p6 = scmp.lt.u32.totalorder %s4603_s15, %s5791_s3 }
 0xcde   :  { %p4609_p7 = pnand %p4607_p6, %p4604_p5 }
 0xce0   :  { %4612 = shalt.err (!%p4609_p7)
}
 0xce1   :  { %3128 = dma.vmem_to_hbm [thread:$0]  %s3126_s17, 192, %s5791_s3, [#allocation4]  }
 0xce2   :  { %4629 = dma.done.wait [#allocation4], 192  }
 0xce3   :  { %4630 = vsyncadd [#allocation4], 4294967104 }
 0xce4   :  { %3132 = vsyncpa [#allocation3], 1 }
 0xce5   :  { %3133 = vsyncpa [#allocation6], 1 }
 0xce6   :  { %3134 = vsyncpa [#allocation9], 1 }
 0xce7   :  { %3135 = vsyncpa [#allocation12], 1 }
 0xce8   :  { %3136 = vsyncpa [#allocation15], 1 }
 0xce9   :  { %3137 = vsyncpa [#allocation18], 1 }
 0xcea   :  { %3138 = vsyncpa [#allocation21], 1 }
 0xceb   :  { %3139 = vsyncpa [#allocation24], 1 }
 0xcec   :  { %3140 = vsyncpa [#allocation4], 1 }

</bundles_post_ra>
